<compile_context>
chip_gen: v7x
topology: tpu7x:2x2x1
jax: 0.10.0
libtpu: 0.0.40
codegen_flags: <defaults>
</compile_context>

<pallas_src>
import math

import numpy as np
import jax
import jax.numpy as jnp
from jax.experimental import pallas as pl
from jax.experimental.pallas import tpu as pltpu

# ---------------- synthetic hyper-parameters (small, forward-consistent) -----
B = 2            # batch
T = 16           # number of time frames
D = 32           # embedding dim (d_model)
H = 4            # attention heads
DH = D // H      # head dim
FF = 64          # feed-forward dim
NUM_LAYERS = 2   # transformer encoder layers
K = 4            # positional-conv kernel size (even -> trim last frame, HuBERT style)
G = 4            # positional-conv groups
PAD = K // 2
EPS = 1e-5       # LayerNorm eps (PyTorch default)

# im2col tap order: the "center" tap (== un-shifted input x) goes first so the residual
# input is a plain prefix lane-slice of the slab inside the kernel.
TAP_ORDER = [PAD] + [k for k in range(K) if k != PAD]

# lane-dense output packing: 128//D consecutive (B*T, D) rows per 128-lane output row.
LPR = 128 // D                 # activation rows per output sublane row (= 4)
OUT_ROWS = (B * T) // LPR      # output sublane rows (= 8); B*T*D == OUT_ROWS * 128
assert D * LPR == 128 and OUT_ROWS * LPR == B * T


# ---------------- elementwise helpers (used both in-kernel and in reference) -
def _erf(x):
    # Abramowitz & Stegun 7.1.26 (|err| < 1.5e-7 vs exact erf); exp/mul/add/abs/where
    # only, guaranteed to lower in Mosaic.  Applied once to a tiny (B*T, D) slab.
    a1, a2, a3, a4, a5 = 0.254829592, -0.284496736, 1.421413741, -1.453152027, 1.061405429
    p = 0.3275911
    sign = jnp.where(x >= 0.0, 1.0, -1.0)
    ax = jnp.abs(x)
    t = 1.0 / (1.0 + p * ax)
    poly = ((((a5 * t + a4) * t + a3) * t + a2) * t + a1) * t
    return sign * (1.0 - poly * jnp.exp(-ax * ax))


def _gelu(x):
    return 0.5 * x * (1.0 + _erf(x * (1.0 / math.sqrt(2.0))))


def _layer_norm(x, w, b):
    mu = jnp.mean(x, axis=-1, keepdims=True)
    var = jnp.mean((x - mu) ** 2, axis=-1, keepdims=True)
    return (x - mu) * jax.lax.rsqrt(var + EPS) * w + b


# ---------------- single fused kernel: pos-conv embedding + transformer ------
def _hubert_fused_kernel(col_ref, convw_ref, convb_ref,
                         wqkv_ref, bqkv_ref, wo_ref, bo_ref,
                         w1_ref, b1_ref, w2_ref, b2_ref,
                         ln1w_ref, ln1b_ref, ln2w_ref, ln2b_ref,
                         out_ref):
    # col_ref: (B*T, K*D) lane-dense im2col slab of the padded input (center tap first).
    col = col_ref[...]
    x0 = col[:, :D]                              # residual input frames (prefix slice)

    # --- positional grouped conv as ONE matmul over the K*D = 128 contraction dim ---
    acc = jnp.dot(col, convw_ref[...], preferred_element_type=jnp.float32) + convb_ref[...]
    x = x0 + _gelu(acc)                          # residual positional embedding

    # --- post-LN TransformerEncoder layers (weights indexed by static layer id) ---
    # TODO(synk): at real depth/width, put layers on a grid axis and stream bf16 weights
    # (pipeline_mode=pl.Buffered(2), explicit vmem_limit_bytes) instead of Python-unrolling
    # with all fp32 weights resident; keep the activation as a resident accumulator.
    for l in range(NUM_LAYERS):
        wqkv = wqkv_ref[l]          # (D, 3D)  (1/sqrt(DH) pre-folded into Q columns)
        bqkv = bqkv_ref[l]          # (1, 3D)
        wo = wo_ref[l]              # (D, D)
        bo = bo_ref[l]              # (1, D)

        # QKV projection for all batch*time rows in one MXU push
        qkv = jnp.dot(x, wqkv, preferred_element_type=jnp.float32) + bqkv   # (B*T, 3D)
        qkv3 = qkv.reshape(B, T, 3 * D)                                     # (B, T, 3D)

        # TODO(synk): at real scale collapse this head loop into a head-major (B*H,T,DH)
        # batched dot_general with flash-style key tiling; multi-batch-dim dot_general /
        # 4-D transposes are avoided here to stay on the known-good Mosaic lowering path.
        attn = None
        for h in range(H):                               # static head unroll, batched over B
            q_h = qkv3[:, :, h * DH:(h + 1) * DH]                # (B, T, DH)
            k_h = qkv3[:, :, D + h * DH:D + (h + 1) * DH]        # (B, T, DH)
            v_h = qkv3[:, :, 2 * D + h * DH:2 * D + (h + 1) * DH]

            # scores = q @ k^T, batched over batch dim (scale already folded in)
            s = jax.lax.dot_general(q_h, k_h, (((2,), (2,)), ((0,), (0,))),
                                    preferred_element_type=jnp.float32)     # (B, T, T)
            s = s - jnp.max(s, axis=-1, keepdims=True)
            p = jnp.exp(s)
            # EUP approximate reciprocal instead of VALU divide
            p = p * pl.reciprocal(jnp.sum(p, axis=-1, keepdims=True), approx=True)

            ctx = jax.lax.dot_general(p, v_h, (((2,), (1,)), ((0,), (0,))),
                                      preferred_element_type=jnp.float32)   # (B, T, DH)
            # out_proj applied per-head slice of Wo (no in-kernel concatenate)
            ho = jnp.dot(ctx.reshape(B * T, DH), wo[h * DH:(h + 1) * DH, :],
                         preferred_element_type=jnp.float32)
            attn = (ho + bo) if attn is None else (attn + ho)   # seed with head 0 + bias

        # dropout is identity in eval mode
        x1 = _layer_norm(x + attn, ln1w_ref[l], ln1b_ref[l])     # norm1 (post-LN)

        # feed-forward (Linear -> ReLU -> Linear), post-LN norm2
        h1 = jnp.dot(x1, w1_ref[l], preferred_element_type=jnp.float32) + b1_ref[l]
        h1 = jnp.maximum(h1, 0.0)
        ff = jnp.dot(h1, w2_ref[l], preferred_element_type=jnp.float32) + b2_ref[l]
        x = _layer_norm(x1 + ff, ln2w_ref[l], ln2b_ref[l])

    # --- lane-dense (OUT_ROWS, 128) store: pack 128//D consecutive activation rows per
    # output row so the final store is one unmasked full-lane slab (wrapper reshapes back
    # to (B, T, D)).  At real HuBERT D (multiple of 128) this packing disappears because
    # the activation is already lane-dense.
    rows = []
    for r in range(OUT_ROWS):
        segs = [x[LPR * r + j:LPR * r + j + 1, :] for j in range(LPR)]   # LPR x (1, D)
        rows.append(jnp.concatenate(segs, axis=1))                       # (1, 128)
    out_ref[...] = jnp.concatenate(rows, axis=0).astype(out_ref.dtype)   # (8, 128)


def _im2col(x):
    # Build the (B*T, K*D) cross-correlation slab in the wrapper (plain XLA ops).
    xpad = jnp.pad(x, ((0, 0), (PAD, PAD), (0, 0)))                       # (B, T+2*PAD, D)
    cols = jnp.concatenate([xpad[:, k:k + T, :] for k in TAP_ORDER], axis=-1)  # (B, T, K*D)
    return cols.reshape(B * T, K * D)


def hubert_encoder_forward(x, params):
    col = _im2col(x)

    args = (col,
            params["conv_w_cat"], params["conv_b"],
            params["wqkv"], params["bqkv"], params["wo"], params["bo"],
            params["w1"], params["b1"], params["w2"], params["b2"],
            params["ln1w"], params["ln1b"], params["ln2w"], params["ln2b"])

    def full_spec(a):
        return pl.BlockSpec(a.shape, lambda _, nd=a.ndim: (0,) * nd)

    # TODO(synk): at real scale add a "parallel" row-tile grid axis (uses both v7x
    # TensorCores), stream one bf16 layer per grid step, and tile attention over keys
    # (flash); here the whole problem is ~1 vreg so a single grid step is the right shape.
    out = pl.pallas_call(
        _hubert_fused_kernel,
        out_shape=jax.ShapeDtypeStruct((OUT_ROWS, 128), x.dtype),
        grid=(1,),                       # single step: whole (B*T, D) slab at once
        in_specs=[full_spec(a) for a in args],
        out_specs=pl.BlockSpec((OUT_ROWS, 128), lambda _: (0, 0)),
        compiler_params=pltpu.CompilerParams(dimension_semantics=("arbitrary",)),
    )(*args)
    return out.reshape(B, T, D)


# ---------------- deterministic parameter construction -----------------------
def init_params(key):
    scale = 0.02
    gsz = D // G
    keys = jax.random.split(key, 2 + NUM_LAYERS)

    # PyTorch Conv1d(D, D, K, padding=K//2, groups=G) weight: (D, D/G, K)
    conv_w = scale * jax.random.normal(keys[0], (D, gsz, K), jnp.float32)
    conv_b = scale * jax.random.normal(keys[1], (D,), jnp.float32)
    # TODO(synk): weight_norm_/remove_weight_norm_ are parameterization-only and have no
    # forward-pass effect here; plain weights are used directly.

    # grouped conv weight -> K block-diagonal (D_in, D_out) per-tap matrices
    cw = np.asarray(conv_w)
    w_taps = np.zeros((K, D, D), np.float32)
    for k in range(K):
        for g in range(G):
            sl = slice(g * gsz, (g + 1) * gsz)
            # out[t, c_out] = sum_{k, c_in_local} xpad[t+k, c_in] * w[c_out, c_in_local, k]
            w_taps[k, sl, sl] = cw[sl, :, k].T
    # concatenate taps (in TAP_ORDER, matching the im2col slab) into one (K*D, D) matrix.
    # TODO(synk): at real D/G the block-diagonal form wastes (G-1)/G MXU flops on zeros;
    # use per-group matmuls there instead.
    conv_w_cat = np.concatenate([w_taps[k] for k in TAP_ORDER], axis=0)

    attn_scale = 1.0 / math.sqrt(DH)

    stacks = {n: [] for n in ("wqkv", "bqkv", "wo", "bo", "w1", "b1", "w2", "b2",
                              "ln1w", "ln1b", "ln2w", "ln2b")}
    for i in range(NUM_LAYERS):
        lk = jax.random.split(keys[2 + i], 8)
        wqkv = scale * jax.random.normal(lk[0], (3 * D, D), jnp.float32)  # in_proj_weight
        bqkv = scale * jax.random.normal(lk[1], (3 * D,), jnp.float32)
        wo = scale * jax.random.normal(lk[2], (D, D), jnp.float32)        # out_proj.weight
        bo = scale * jax.random.normal(lk[3], (D,), jnp.float32)
        w1 = scale * jax.random.normal(lk[4], (FF, D), jnp.float32)       # linear1.weight
        b1 = scale * jax.random.normal(lk[5], (FF,), jnp.float32)
        w2 = scale * jax.random.normal(lk[6], (D, FF), jnp.float32)       # linear2.weight
        b2 = scale * jax.random.normal(lk[7], (D,), jnp.float32)

        # pre-transpose so kernels compute x @ W (== x @ W_torch.T) and fold the
        # 1/sqrt(DH) attention scale into the Q part of in_proj weight AND bias.
        # TODO(synk): at real scale cast these matmul weights to bf16 here (keep f32
        # accumulation and f32 LayerNorm/GELU/softmax math in-kernel).
        wqkv_t = np.asarray(wqkv).T.copy()        # (D, 3D)
        bqkv_n = np.asarray(bqkv).copy()          # (3D,)
        wqkv_t[:, :D] *= attn_scale
        bqkv_n[:D] *= attn_scale

        stacks["wqkv"].append(wqkv_t)
        stacks["bqkv"].append(bqkv_n.reshape(1, 3 * D))
        stacks["wo"].append(np.asarray(wo).T)
        stacks["bo"].append(np.asarray(bo).reshape(1, D))
        stacks["w1"].append(np.asarray(w1).T)
        stacks["b1"].append(np.asarray(b1).reshape(1, FF))
        stacks["w2"].append(np.asarray(w2).T)
        stacks["b2"].append(np.asarray(b2).reshape(1, D))
        stacks["ln1w"].append(np.ones((1, D), np.float32))
        stacks["ln1b"].append(np.zeros((1, D), np.float32))
        stacks["ln2w"].append(np.ones((1, D), np.float32))
        stacks["ln2b"].append(np.zeros((1, D), np.float32))

    params = {n: jnp.asarray(np.stack(v)) for n, v in stacks.items()}  # leading layer axis
    params["conv_w_taps"] = jnp.asarray(w_taps)
    params["conv_w_cat"] = jnp.asarray(conv_w_cat)
    params["conv_b"] = jnp.asarray(conv_b).reshape(1, D)
    return params


# ---------------- pure-JAX reference (same math, for verification) -----------
def ref_forward(x, params):
    xpad = jnp.pad(x, ((0, 0), (PAD, PAD), (0, 0)))
    acc = jnp.zeros((B, T, D), jnp.float32) + params["conv_b"].reshape(1, 1, D)
    for k in range(K):
        acc = acc + jnp.einsum("btd,de->bte", xpad[:, k:k + T, :], params["conv_w_taps"][k])
    x = x + _gelu(acc)

    for l in range(NUM_LAYERS):
        qkv = jnp.einsum("btd,de->bte", x, params["wqkv"][l]) + params["bqkv"][l]
        q = qkv[..., :D].reshape(B, T, H, DH)
        k_ = qkv[..., D:2 * D].reshape(B, T, H, DH)
        v = qkv[..., 2 * D:].reshape(B, T, H, DH)
        s = jnp.einsum("bqhd,bkhd->bhqk", q, k_)     # 1/sqrt(DH) already folded into Q
        s = s - jnp.max(s, axis=-1, keepdims=True)
        p = jnp.exp(s)
        p = p / jnp.sum(p, axis=-1, keepdims=True)
        ctx = jnp.einsum("bhqk,bkhd->bqhd", p, v).reshape(B, T, D)
        attn = ctx @ params["wo"][l] + params["bo"][l]
        x1 = _layer_norm(x + attn, params["ln1w"][l], params["ln1b"][l])
        h1 = jnp.maximum(x1 @ params["w1"][l] + params["b1"][l], 0.0)
        ff = h1 @ params["w2"][l] + params["b2"][l]
        x = _layer_norm(x1 + ff, params["ln2w"][l], params["ln2b"][l])
    return x


if __name__ == "__main__":
    key = jax.random.PRNGKey(0)
    pkey, xkey = jax.random.split(key)
    params = init_params(pkey)
    x = jax.random.normal(xkey, (B, T, D), jnp.float32)

    out = hubert_encoder_forward(x, params)
    out = jax.block_until_ready(out)

    ref = ref_forward(x, params)
    assert out.shape == (B, T, D) and out.dtype == jnp.float32
    # tolerance 2e-3: the kernel uses the EUP approximate reciprocal in softmax,
    # the reference uses an exact divide.
    assert bool(jnp.allclose(out, ref, atol=2e-3, rtol=2e-3)), "Pallas output mismatch vs reference"
    print("KERNEL_OK")
</pallas_src>

<mosaic_0001>
module attributes {stable_mosaic.version = 11 : i64} {
  func.func @_hubert_fused_kernel(%arg0: i32, %arg1: memref<32x128xf32, #tpu.memory_space<vmem>>, %arg2: memref<128x32xf32, #tpu.memory_space<vmem>>, %arg3: memref<1x32xf32, #tpu.memory_space<vmem>>, %arg4: memref<2x32x96xf32, #tpu.memory_space<vmem>>, %arg5: memref<2x1x96xf32, #tpu.memory_space<vmem>>, %arg6: memref<2x32x32xf32, #tpu.memory_space<vmem>>, %arg7: memref<2x1x32xf32, #tpu.memory_space<vmem>>, %arg8: memref<2x32x64xf32, #tpu.memory_space<vmem>>, %arg9: memref<2x1x64xf32, #tpu.memory_space<vmem>>, %arg10: memref<2x64x32xf32, #tpu.memory_space<vmem>>, %arg11: memref<2x1x32xf32, #tpu.memory_space<vmem>>, %arg12: memref<2x1x32xf32, #tpu.memory_space<vmem>>, %arg13: memref<2x1x32xf32, #tpu.memory_space<vmem>>, %arg14: memref<2x1x32xf32, #tpu.memory_space<vmem>>, %arg15: memref<2x1x32xf32, #tpu.memory_space<vmem>>, %arg16: memref<8x128xf32, #tpu.memory_space<vmem>>) attributes {dimension_semantics = [#tpu.dimension_semantics<arbitrary>], iteration_bounds = array<i64: 1>, scalar_prefetch = 0 : i64, scratch_operands = 0 : i64, tpu.core_type = #tpu.core_type<tc>, window_params = [{pipeline_mode = #tpu.pipeline_mode<synchronous>, transform_indices = @transform_0, window_bounds = array<i64: 32, 128>}, {pipeline_mode = #tpu.pipeline_mode<synchronous>, transform_indices = @transform_1, window_bounds = array<i64: 128, 32>}, {pipeline_mode = #tpu.pipeline_mode<synchronous>, transform_indices = @transform_2, window_bounds = array<i64: 1, 32>}, {pipeline_mode = #tpu.pipeline_mode<synchronous>, transform_indices = @transform_3, window_bounds = array<i64: 2, 32, 96>}, {pipeline_mode = #tpu.pipeline_mode<synchronous>, transform_indices = @transform_4, window_bounds = array<i64: 2, 1, 96>}, {pipeline_mode = #tpu.pipeline_mode<synchronous>, transform_indices = @transform_5, window_bounds = array<i64: 2, 32, 32>}, {pipeline_mode = #tpu.pipeline_mode<synchronous>, transform_indices = @transform_6, window_bounds = array<i64: 2, 1, 32>}, {pipeline_mode = #tpu.pipeline_mode<synchronous>, transform_indices = @transform_7, window_bounds = array<i64: 2, 32, 64>}, {pipeline_mode = #tpu.pipeline_mode<synchronous>, transform_indices = @transform_8, window_bounds = array<i64: 2, 1, 64>}, {pipeline_mode = #tpu.pipeline_mode<synchronous>, transform_indices = @transform_9, window_bounds = array<i64: 2, 64, 32>}, {pipeline_mode = #tpu.pipeline_mode<synchronous>, transform_indices = @transform_10, window_bounds = array<i64: 2, 1, 32>}, {pipeline_mode = #tpu.pipeline_mode<synchronous>, transform_indices = @transform_11, window_bounds = array<i64: 2, 1, 32>}, {pipeline_mode = #tpu.pipeline_mode<synchronous>, transform_indices = @transform_12, window_bounds = array<i64: 2, 1, 32>}, {pipeline_mode = #tpu.pipeline_mode<synchronous>, transform_indices = @transform_13, window_bounds = array<i64: 2, 1, 32>}, {pipeline_mode = #tpu.pipeline_mode<synchronous>, transform_indices = @transform_14, window_bounds = array<i64: 2, 1, 32>}, {pipeline_mode = #tpu.pipeline_mode<synchronous>, transform_indices = @transform_15, window_bounds = array<i64: 8, 128>}]} {
    %c0 = arith.constant 0 : index
    %c0_0 = arith.constant 0 : index
    %0 = vector.load %arg1[%c0, %c0_0] : memref<32x128xf32, #tpu.memory_space<vmem>>, vector<32x128xf32>
    %1 = vector.extract_strided_slice %0 {offsets = [0, 0], sizes = [32, 32], strides = [1, 1]} : vector<32x128xf32> to vector<32x32xf32>
    %c0_1 = arith.constant 0 : index
    %c0_2 = arith.constant 0 : index
    %2 = vector.load %arg2[%c0_1, %c0_2] : memref<128x32xf32, #tpu.memory_space<vmem>>, vector<128x32xf32>
    %cst = arith.constant dense<0.000000e+00> : vector<32x32xf32>
    %3 = tpu.matmul %0, %2, %cst {dimension_numbers = #tpu.dot_dimension_numbers<[1], [0], [0], [1], [0, 0, 1, 1], [], []>} : vector<32x128xf32>, vector<128x32xf32>, vector<32x32xf32> -> vector<32x32xf32>
    %c0_3 = arith.constant 0 : index
    %c0_4 = arith.constant 0 : index
    %4 = vector.load %arg3[%c0_3, %c0_4] : memref<1x32xf32, #tpu.memory_space<vmem>>, vector<1x32xf32>
    %5 = vector.broadcast %4 : vector<1x32xf32> to vector<32x32xf32>
    %6 = arith.addf %3, %5 : vector<32x32xf32>
    %cst_5 = arith.constant 5.000000e-01 : f32
    %7 = vector.broadcast %cst_5 : f32 to vector<32x32xf32>
    %8 = arith.mulf %7, %6 : vector<32x32xf32>
    %cst_6 = arith.constant 0.707106769 : f32
    %9 = vector.broadcast %cst_6 : f32 to vector<32x32xf32>
    %10 = arith.mulf %6, %9 : vector<32x32xf32>
    %cst_7 = arith.constant 0.000000e+00 : f32
    %11 = vector.broadcast %cst_7 : f32 to vector<32x32xf32>
    %12 = arith.cmpf oge, %10, %11 : vector<32x32xf32>
    %cst_8 = arith.constant 1.000000e+00 : f32
    %cst_9 = arith.constant -1.000000e+00 : f32
    %13 = vector.broadcast %cst_8 : f32 to vector<32x32xf32>
    %14 = vector.broadcast %cst_9 : f32 to vector<32x32xf32>
    %15 = arith.select %12, %13, %14 : vector<32x32xi1>, vector<32x32xf32>
    %16 = math.absf %10 : vector<32x32xf32>
    %cst_10 = arith.constant 0.327591091 : f32
    %17 = vector.broadcast %cst_10 : f32 to vector<32x32xf32>
    %18 = arith.mulf %17, %16 : vector<32x32xf32>
    %cst_11 = arith.constant 1.000000e+00 : f32
    %19 = vector.broadcast %cst_11 : f32 to vector<32x32xf32>
    %20 = arith.addf %19, %18 : vector<32x32xf32>
    %cst_12 = arith.constant 1.000000e+00 : f32
    %21 = vector.broadcast %cst_12 : f32 to vector<32x32xf32>
    %22 = arith.divf %21, %20 : vector<32x32xf32>
    %cst_13 = arith.constant 1.06140542 : f32
    %23 = vector.broadcast %cst_13 : f32 to vector<32x32xf32>
    %24 = arith.mulf %23, %22 : vector<32x32xf32>
    %cst_14 = arith.constant -1.45315206 : f32
    %25 = vector.broadcast %cst_14 : f32 to vector<32x32xf32>
    %26 = arith.addf %24, %25 : vector<32x32xf32>
    %27 = arith.mulf %26, %22 : vector<32x32xf32>
    %cst_15 = arith.constant 1.42141378 : f32
    %28 = vector.broadcast %cst_15 : f32 to vector<32x32xf32>
    %29 = arith.addf %27, %28 : vector<32x32xf32>
    %30 = arith.mulf %29, %22 : vector<32x32xf32>
    %cst_16 = arith.constant -0.284496725 : f32
    %31 = vector.broadcast %cst_16 : f32 to vector<32x32xf32>
    %32 = arith.addf %30, %31 : vector<32x32xf32>
    %33 = arith.mulf %32, %22 : vector<32x32xf32>
    %cst_17 = arith.constant 0.254829586 : f32
    %34 = vector.broadcast %cst_17 : f32 to vector<32x32xf32>
    %35 = arith.addf %33, %34 : vector<32x32xf32>
    %36 = arith.mulf %35, %22 : vector<32x32xf32>
    %cst_18 = arith.constant 0.000000e+00 : f32
    %37 = vector.broadcast %cst_18 : f32 to vector<32x32xf32>
    %38 = arith.subf %37, %16 : vector<32x32xf32>
    %39 = arith.mulf %38, %16 : vector<32x32xf32>
    %40 = math.exp %39 : vector<32x32xf32>
    %41 = arith.mulf %36, %40 : vector<32x32xf32>
    %cst_19 = arith.constant 1.000000e+00 : f32
    %42 = vector.broadcast %cst_19 : f32 to vector<32x32xf32>
    %43 = arith.subf %42, %41 : vector<32x32xf32>
    %44 = arith.mulf %15, %43 : vector<32x32xf32>
    %cst_20 = arith.constant 1.000000e+00 : f32
    %45 = vector.broadcast %cst_20 : f32 to vector<32x32xf32>
    %46 = arith.addf %45, %44 : vector<32x32xf32>
    %47 = arith.mulf %8, %46 : vector<32x32xf32>
    %48 = arith.addf %1, %47 : vector<32x32xf32>
    %c0_21 = arith.constant 0 : index
    %c0_22 = arith.constant 0 : index
    %c0_23 = arith.constant 0 : index
    %49 = vector.load %arg4[%c0_21, %c0_22, %c0_23] : memref<2x32x96xf32, #tpu.memory_space<vmem>>, vector<1x32x96xf32>
    %50 = vector.shape_cast %49 : vector<1x32x96xf32> to vector<32x96xf32>
    %c0_24 = arith.constant 0 : index
    %c0_25 = arith.constant 0 : index
    %c0_26 = arith.constant 0 : index
    %51 = vector.load %arg5[%c0_24, %c0_25, %c0_26] : memref<2x1x96xf32, #tpu.memory_space<vmem>>, vector<1x1x96xf32>
    %52 = vector.shape_cast %51 : vector<1x1x96xf32> to vector<1x96xf32>
    %c0_27 = arith.constant 0 : index
    %c0_28 = arith.constant 0 : index
    %c0_29 = arith.constant 0 : index
    %53 = vector.load %arg6[%c0_27, %c0_28, %c0_29] : memref<2x32x32xf32, #tpu.memory_space<vmem>>, vector<1x32x32xf32>
    %54 = vector.shape_cast %53 : vector<1x32x32xf32> to vector<32x32xf32>
    %c0_30 = arith.constant 0 : index
    %c0_31 = arith.constant 0 : index
    %c0_32 = arith.constant 0 : index
    %55 = vector.load %arg7[%c0_30, %c0_31, %c0_32] : memref<2x1x32xf32, #tpu.memory_space<vmem>>, vector<1x1x32xf32>
    %56 = vector.shape_cast %55 : vector<1x1x32xf32> to vector<1x32xf32>
    %cst_33 = arith.constant dense<0.000000e+00> : vector<32x96xf32>
    %57 = tpu.matmul %48, %50, %cst_33 {dimension_numbers = #tpu.dot_dimension_numbers<[1], [0], [0], [1], [0, 0, 1, 1], [], []>} : vector<32x32xf32>, vector<32x96xf32>, vector<32x96xf32> -> vector<32x96xf32>
    %58 = vector.broadcast %52 : vector<1x96xf32> to vector<32x96xf32>
    %59 = arith.addf %57, %58 : vector<32x96xf32>
    %60 = vector.shape_cast %59 : vector<32x96xf32> to vector<2x16x96xf32>
    %61 = vector.extract_strided_slice %60 {offsets = [0, 0, 0], sizes = [2, 16, 8], strides = [1, 1, 1]} : vector<2x16x96xf32> to vector<2x16x8xf32>
    %62 = vector.extract_strided_slice %60 {offsets = [0, 0, 32], sizes = [2, 16, 8], strides = [1, 1, 1]} : vector<2x16x96xf32> to vector<2x16x8xf32>
    %63 = vector.extract_strided_slice %60 {offsets = [0, 0, 64], sizes = [2, 16, 8], strides = [1, 1, 1]} : vector<2x16x96xf32> to vector<2x16x8xf32>
    %cst_34 = arith.constant dense<0.000000e+00> : vector<2x16x16xf32>
    %64 = tpu.matmul %61, %62, %cst_34 {dimension_numbers = #tpu.dot_dimension_numbers<[2], [2], [1], [1], [0, 0, 0, 1, 1, 1], [0], [0]>} : vector<2x16x8xf32>, vector<2x16x8xf32>, vector<2x16x16xf32> -> vector<2x16x16xf32>
    %cst_35 = arith.constant dense<0xFF800000> : vector<2x16xf32>
    %65 = vector.multi_reduction <maximumf>, %64, %cst_35 [2] : vector<2x16x16xf32> to vector<2x16xf32>
    %66 = vector.shape_cast %65 : vector<2x16xf32> to vector<2x16x1xf32>
    %67 = vector.broadcast %66 : vector<2x16x1xf32> to vector<2x16x16xf32>
    %68 = arith.subf %64, %67 : vector<2x16x16xf32>
    %69 = math.exp %68 : vector<2x16x16xf32>
    %cst_36 = arith.constant dense<0.000000e+00> : vector<2x16xf32>
    %70 = vector.multi_reduction <add>, %69, %cst_36 [2] : vector<2x16x16xf32> to vector<2x16xf32>
    %71 = vector.shape_cast %70 : vector<2x16xf32> to vector<2x16x1xf32>
    %72 = tpu.reciprocal %71 {approx = true} : vector<2x16x1xf32> -> vector<2x16x1xf32>
    %73 = vector.broadcast %72 : vector<2x16x1xf32> to vector<2x16x16xf32>
    %74 = arith.mulf %69, %73 : vector<2x16x16xf32>
    %cst_37 = arith.constant dense<0.000000e+00> : vector<2x16x8xf32>
    %75 = tpu.matmul %74, %63, %cst_37 {dimension_numbers = #tpu.dot_dimension_numbers<[2], [1], [1], [2], [0, 0, 0, 1, 1, 2], [0], [0]>} : vector<2x16x16xf32>, vector<2x16x8xf32>, vector<2x16x8xf32> -> vector<2x16x8xf32>
    %76 = vector.shape_cast %75 : vector<2x16x8xf32> to vector<32x8xf32>
    %77 = vector.extract_strided_slice %54 {offsets = [0, 0], sizes = [8, 32], strides = [1, 1]} : vector<32x32xf32> to vector<8x32xf32>
    %cst_38 = arith.constant dense<0.000000e+00> : vector<32x32xf32>
    %78 = tpu.matmul %76, %77, %cst_38 {dimension_numbers = #tpu.dot_dimension_numbers<[1], [0], [0], [1], [0, 0, 1, 1], [], []>} : vector<32x8xf32>, vector<8x32xf32>, vector<32x32xf32> -> vector<32x32xf32>
    %79 = vector.broadcast %56 : vector<1x32xf32> to vector<32x32xf32>
    %80 = arith.addf %78, %79 : vector<32x32xf32>
    %81 = vector.extract_strided_slice %60 {offsets = [0, 0, 8], sizes = [2, 16, 8], strides = [1, 1, 1]} : vector<2x16x96xf32> to vector<2x16x8xf32>
    %82 = vector.extract_strided_slice %60 {offsets = [0, 0, 40], sizes = [2, 16, 8], strides = [1, 1, 1]} : vector<2x16x96xf32> to vector<2x16x8xf32>
    %83 = vector.extract_strided_slice %60 {offsets = [0, 0, 72], sizes = [2, 16, 8], strides = [1, 1, 1]} : vector<2x16x96xf32> to vector<2x16x8xf32>
    %cst_39 = arith.constant dense<0.000000e+00> : vector<2x16x16xf32>
    %84 = tpu.matmul %81, %82, %cst_39 {dimension_numbers = #tpu.dot_dimension_numbers<[2], [2], [1], [1], [0, 0, 0, 1, 1, 1], [0], [0]>} : vector<2x16x8xf32>, vector<2x16x8xf32>, vector<2x16x16xf32> -> vector<2x16x16xf32>
    %cst_40 = arith.constant dense<0xFF800000> : vector<2x16xf32>
    %85 = vector.multi_reduction <maximumf>, %84, %cst_40 [2] : vector<2x16x16xf32> to vector<2x16xf32>
    %86 = vector.shape_cast %85 : vector<2x16xf32> to vector<2x16x1xf32>
    %87 = vector.broadcast %86 : vector<2x16x1xf32> to vector<2x16x16xf32>
    %88 = arith.subf %84, %87 : vector<2x16x16xf32>
    %89 = math.exp %88 : vector<2x16x16xf32>
    %cst_41 = arith.constant dense<0.000000e+00> : vector<2x16xf32>
    %90 = vector.multi_reduction <add>, %89, %cst_41 [2] : vector<2x16x16xf32> to vector<2x16xf32>
    %91 = vector.shape_cast %90 : vector<2x16xf32> to vector<2x16x1xf32>
    %92 = tpu.reciprocal %91 {approx = true} : vector<2x16x1xf32> -> vector<2x16x1xf32>
    %93 = vector.broadcast %92 : vector<2x16x1xf32> to vector<2x16x16xf32>
    %94 = arith.mulf %89, %93 : vector<2x16x16xf32>
    %cst_42 = arith.constant dense<0.000000e+00> : vector<2x16x8xf32>
    %95 = tpu.matmul %94, %83, %cst_42 {dimension_numbers = #tpu.dot_dimension_numbers<[2], [1], [1], [2], [0, 0, 0, 1, 1, 2], [0], [0]>} : vector<2x16x16xf32>, vector<2x16x8xf32>, vector<2x16x8xf32> -> vector<2x16x8xf32>
    %96 = vector.shape_cast %95 : vector<2x16x8xf32> to vector<32x8xf32>
    %97 = vector.extract_strided_slice %54 {offsets = [8, 0], sizes = [8, 32], strides = [1, 1]} : vector<32x32xf32> to vector<8x32xf32>
    %cst_43 = arith.constant dense<0.000000e+00> : vector<32x32xf32>
    %98 = tpu.matmul %96, %97, %cst_43 {dimension_numbers = #tpu.dot_dimension_numbers<[1], [0], [0], [1], [0, 0, 1, 1], [], []>} : vector<32x8xf32>, vector<8x32xf32>, vector<32x32xf32> -> vector<32x32xf32>
    %99 = arith.addf %80, %98 : vector<32x32xf32>
    %100 = vector.extract_strided_slice %60 {offsets = [0, 0, 16], sizes = [2, 16, 8], strides = [1, 1, 1]} : vector<2x16x96xf32> to vector<2x16x8xf32>
    %101 = vector.extract_strided_slice %60 {offsets = [0, 0, 48], sizes = [2, 16, 8], strides = [1, 1, 1]} : vector<2x16x96xf32> to vector<2x16x8xf32>
    %102 = vector.extract_strided_slice %60 {offsets = [0, 0, 80], sizes = [2, 16, 8], strides = [1, 1, 1]} : vector<2x16x96xf32> to vector<2x16x8xf32>
    %cst_44 = arith.constant dense<0.000000e+00> : vector<2x16x16xf32>
    %103 = tpu.matmul %100, %101, %cst_44 {dimension_numbers = #tpu.dot_dimension_numbers<[2], [2], [1], [1], [0, 0, 0, 1, 1, 1], [0], [0]>} : vector<2x16x8xf32>, vector<2x16x8xf32>, vector<2x16x16xf32> -> vector<2x16x16xf32>
    %cst_45 = arith.constant dense<0xFF800000> : vector<2x16xf32>
    %104 = vector.multi_reduction <maximumf>, %103, %cst_45 [2] : vector<2x16x16xf32> to vector<2x16xf32>
    %105 = vector.shape_cast %104 : vector<2x16xf32> to vector<2x16x1xf32>
    %106 = vector.broadcast %105 : vector<2x16x1xf32> to vector<2x16x16xf32>
    %107 = arith.subf %103, %106 : vector<2x16x16xf32>
    %108 = math.exp %107 : vector<2x16x16xf32>
    %cst_46 = arith.constant dense<0.000000e+00> : vector<2x16xf32>
    %109 = vector.multi_reduction <add>, %108, %cst_46 [2] : vector<2x16x16xf32> to vector<2x16xf32>
    %110 = vector.shape_cast %109 : vector<2x16xf32> to vector<2x16x1xf32>
    %111 = tpu.reciprocal %110 {approx = true} : vector<2x16x1xf32> -> vector<2x16x1xf32>
    %112 = vector.broadcast %111 : vector<2x16x1xf32> to vector<2x16x16xf32>
    %113 = arith.mulf %108, %112 : vector<2x16x16xf32>
    %cst_47 = arith.constant dense<0.000000e+00> : vector<2x16x8xf32>
    %114 = tpu.matmul %113, %102, %cst_47 {dimension_numbers = #tpu.dot_dimension_numbers<[2], [1], [1], [2], [0, 0, 0, 1, 1, 2], [0], [0]>} : vector<2x16x16xf32>, vector<2x16x8xf32>, vector<2x16x8xf32> -> vector<2x16x8xf32>
    %115 = vector.shape_cast %114 : vector<2x16x8xf32> to vector<32x8xf32>
    %116 = vector.extract_strided_slice %54 {offsets = [16, 0], sizes = [8, 32], strides = [1, 1]} : vector<32x32xf32> to vector<8x32xf32>
    %cst_48 = arith.constant dense<0.000000e+00> : vector<32x32xf32>
    %117 = tpu.matmul %115, %116, %cst_48 {dimension_numbers = #tpu.dot_dimension_numbers<[1], [0], [0], [1], [0, 0, 1, 1], [], []>} : vector<32x8xf32>, vector<8x32xf32>, vector<32x32xf32> -> vector<32x32xf32>
    %118 = arith.addf %99, %117 : vector<32x32xf32>
    %119 = vector.extract_strided_slice %60 {offsets = [0, 0, 24], sizes = [2, 16, 8], strides = [1, 1, 1]} : vector<2x16x96xf32> to vector<2x16x8xf32>
    %120 = vector.extract_strided_slice %60 {offsets = [0, 0, 56], sizes = [2, 16, 8], strides = [1, 1, 1]} : vector<2x16x96xf32> to vector<2x16x8xf32>
    %121 = vector.extract_strided_slice %60 {offsets = [0, 0, 88], sizes = [2, 16, 8], strides = [1, 1, 1]} : vector<2x16x96xf32> to vector<2x16x8xf32>
    %cst_49 = arith.constant dense<0.000000e+00> : vector<2x16x16xf32>
    %122 = tpu.matmul %119, %120, %cst_49 {dimension_numbers = #tpu.dot_dimension_numbers<[2], [2], [1], [1], [0, 0, 0, 1, 1, 1], [0], [0]>} : vector<2x16x8xf32>, vector<2x16x8xf32>, vector<2x16x16xf32> -> vector<2x16x16xf32>
    %cst_50 = arith.constant dense<0xFF800000> : vector<2x16xf32>
    %123 = vector.multi_reduction <maximumf>, %122, %cst_50 [2] : vector<2x16x16xf32> to vector<2x16xf32>
    %124 = vector.shape_cast %123 : vector<2x16xf32> to vector<2x16x1xf32>
    %125 = vector.broadcast %124 : vector<2x16x1xf32> to vector<2x16x16xf32>
    %126 = arith.subf %122, %125 : vector<2x16x16xf32>
    %127 = math.exp %126 : vector<2x16x16xf32>
    %cst_51 = arith.constant dense<0.000000e+00> : vector<2x16xf32>
    %128 = vector.multi_reduction <add>, %127, %cst_51 [2] : vector<2x16x16xf32> to vector<2x16xf32>
    %129 = vector.shape_cast %128 : vector<2x16xf32> to vector<2x16x1xf32>
    %130 = tpu.reciprocal %129 {approx = true} : vector<2x16x1xf32> -> vector<2x16x1xf32>
    %131 = vector.broadcast %130 : vector<2x16x1xf32> to vector<2x16x16xf32>
    %132 = arith.mulf %127, %131 : vector<2x16x16xf32>
    %cst_52 = arith.constant dense<0.000000e+00> : vector<2x16x8xf32>
    %133 = tpu.matmul %132, %121, %cst_52 {dimension_numbers = #tpu.dot_dimension_numbers<[2], [1], [1], [2], [0, 0, 0, 1, 1, 2], [0], [0]>} : vector<2x16x16xf32>, vector<2x16x8xf32>, vector<2x16x8xf32> -> vector<2x16x8xf32>
    %134 = vector.shape_cast %133 : vector<2x16x8xf32> to vector<32x8xf32>
    %135 = vector.extract_strided_slice %54 {offsets = [24, 0], sizes = [8, 32], strides = [1, 1]} : vector<32x32xf32> to vector<8x32xf32>
    %cst_53 = arith.constant dense<0.000000e+00> : vector<32x32xf32>
    %136 = tpu.matmul %134, %135, %cst_53 {dimension_numbers = #tpu.dot_dimension_numbers<[1], [0], [0], [1], [0, 0, 1, 1], [], []>} : vector<32x8xf32>, vector<8x32xf32>, vector<32x32xf32> -> vector<32x32xf32>
    %137 = arith.addf %118, %136 : vector<32x32xf32>
    %138 = arith.addf %48, %137 : vector<32x32xf32>
    %c0_54 = arith.constant 0 : index
    %c0_55 = arith.constant 0 : index
    %c0_56 = arith.constant 0 : index
    %139 = vector.load %arg12[%c0_54, %c0_55, %c0_56] : memref<2x1x32xf32, #tpu.memory_space<vmem>>, vector<1x1x32xf32>
    %140 = vector.shape_cast %139 : vector<1x1x32xf32> to vector<1x32xf32>
    %c0_57 = arith.constant 0 : index
    %c0_58 = arith.constant 0 : index
    %c0_59 = arith.constant 0 : index
    %141 = vector.load %arg13[%c0_57, %c0_58, %c0_59] : memref<2x1x32xf32, #tpu.memory_space<vmem>>, vector<1x1x32xf32>
    %142 = vector.shape_cast %141 : vector<1x1x32xf32> to vector<1x32xf32>
    %cst_60 = arith.constant dense<0.000000e+00> : vector<32xf32>
    %143 = vector.multi_reduction <add>, %138, %cst_60 [1] : vector<32x32xf32> to vector<32xf32>
    %144 = vector.shape_cast %143 : vector<32xf32> to vector<32x1xf32>
    %cst_61 = arith.constant 3.200000e+01 : f32
    %145 = vector.broadcast %cst_61 : f32 to vector<32x1xf32>
    %146 = arith.divf %144, %145 : vector<32x1xf32>
    %147 = vector.broadcast %146 : vector<32x1xf32> to vector<32x32xf32>
    %148 = arith.subf %138, %147 : vector<32x32xf32>
    %149 = arith.mulf %148, %148 : vector<32x32xf32>
    %cst_62 = arith.constant dense<0.000000e+00> : vector<32xf32>
    %150 = vector.multi_reduction <add>, %149, %cst_62 [1] : vector<32x32xf32> to vector<32xf32>
    %151 = vector.shape_cast %150 : vector<32xf32> to vector<32x1xf32>
    %cst_63 = arith.constant 3.200000e+01 : f32
    %152 = vector.broadcast %cst_63 : f32 to vector<32x1xf32>
    %153 = arith.divf %151, %152 : vector<32x1xf32>
    %154 = vector.broadcast %146 : vector<32x1xf32> to vector<32x32xf32>
    %155 = arith.subf %138, %154 : vector<32x32xf32>
    %cst_64 = arith.constant 9.99999974E-6 : f32
    %156 = vector.broadcast %cst_64 : f32 to vector<32x1xf32>
    %157 = arith.addf %153, %156 : vector<32x1xf32>
    %158 = math.rsqrt %157 : vector<32x1xf32>
    %159 = vector.broadcast %158 : vector<32x1xf32> to vector<32x32xf32>
    %160 = arith.mulf %155, %159 : vector<32x32xf32>
    %161 = vector.broadcast %140 : vector<1x32xf32> to vector<32x32xf32>
    %162 = arith.mulf %160, %161 : vector<32x32xf32>
    %163 = vector.broadcast %142 : vector<1x32xf32> to vector<32x32xf32>
    %164 = arith.addf %162, %163 : vector<32x32xf32>
    %c0_65 = arith.constant 0 : index
    %c0_66 = arith.constant 0 : index
    %c0_67 = arith.constant 0 : index
    %165 = vector.load %arg8[%c0_65, %c0_66, %c0_67] : memref<2x32x64xf32, #tpu.memory_space<vmem>>, vector<1x32x64xf32>
    %166 = vector.shape_cast %165 : vector<1x32x64xf32> to vector<32x64xf32>
    %cst_68 = arith.constant dense<0.000000e+00> : vector<32x64xf32>
    %167 = tpu.matmul %164, %166, %cst_68 {dimension_numbers = #tpu.dot_dimension_numbers<[1], [0], [0], [1], [0, 0, 1, 1], [], []>} : vector<32x32xf32>, vector<32x64xf32>, vector<32x64xf32> -> vector<32x64xf32>
    %c0_69 = arith.constant 0 : index
    %c0_70 = arith.constant 0 : index
    %c0_71 = arith.constant 0 : index
    %168 = vector.load %arg9[%c0_69, %c0_70, %c0_71] : memref<2x1x64xf32, #tpu.memory_space<vmem>>, vector<1x1x64xf32>
    %169 = vector.shape_cast %168 : vector<1x1x64xf32> to vector<1x64xf32>
    %170 = vector.broadcast %169 : vector<1x64xf32> to vector<32x64xf32>
    %171 = arith.addf %167, %170 : vector<32x64xf32>
    %cst_72 = arith.constant 0.000000e+00 : f32
    %172 = vector.broadcast %cst_72 : f32 to vector<32x64xf32>
    %173 = arith.maximumf %171, %172 : vector<32x64xf32>
    %c0_73 = arith.constant 0 : index
    %c0_74 = arith.constant 0 : index
    %c0_75 = arith.constant 0 : index
    %174 = vector.load %arg10[%c0_73, %c0_74, %c0_75] : memref<2x64x32xf32, #tpu.memory_space<vmem>>, vector<1x64x32xf32>
    %175 = vector.shape_cast %174 : vector<1x64x32xf32> to vector<64x32xf32>
    %cst_76 = arith.constant dense<0.000000e+00> : vector<32x32xf32>
    %176 = tpu.matmul %173, %175, %cst_76 {dimension_numbers = #tpu.dot_dimension_numbers<[1], [0], [0], [1], [0, 0, 1, 1], [], []>} : vector<32x64xf32>, vector<64x32xf32>, vector<32x32xf32> -> vector<32x32xf32>
    %c0_77 = arith.constant 0 : index
    %c0_78 = arith.constant 0 : index
    %c0_79 = arith.constant 0 : index
    %177 = vector.load %arg11[%c0_77, %c0_78, %c0_79] : memref<2x1x32xf32, #tpu.memory_space<vmem>>, vector<1x1x32xf32>
    %178 = vector.shape_cast %177 : vector<1x1x32xf32> to vector<1x32xf32>
    %179 = vector.broadcast %178 : vector<1x32xf32> to vector<32x32xf32>
    %180 = arith.addf %176, %179 : vector<32x32xf32>
    %181 = arith.addf %164, %180 : vector<32x32xf32>
    %c0_80 = arith.constant 0 : index
    %c0_81 = arith.constant 0 : index
    %c0_82 = arith.constant 0 : index
    %182 = vector.load %arg14[%c0_80, %c0_81, %c0_82] : memref<2x1x32xf32, #tpu.memory_space<vmem>>, vector<1x1x32xf32>
    %183 = vector.shape_cast %182 : vector<1x1x32xf32> to vector<1x32xf32>
    %c0_83 = arith.constant 0 : index
    %c0_84 = arith.constant 0 : index
    %c0_85 = arith.constant 0 : index
    %184 = vector.load %arg15[%c0_83, %c0_84, %c0_85] : memref<2x1x32xf32, #tpu.memory_space<vmem>>, vector<1x1x32xf32>
    %185 = vector.shape_cast %184 : vector<1x1x32xf32> to vector<1x32xf32>
    %cst_86 = arith.constant dense<0.000000e+00> : vector<32xf32>
    %186 = vector.multi_reduction <add>, %181, %cst_86 [1] : vector<32x32xf32> to vector<32xf32>
    %187 = vector.shape_cast %186 : vector<32xf32> to vector<32x1xf32>
    %cst_87 = arith.constant 3.200000e+01 : f32
    %188 = vector.broadcast %cst_87 : f32 to vector<32x1xf32>
    %189 = arith.divf %187, %188 : vector<32x1xf32>
    %190 = vector.broadcast %189 : vector<32x1xf32> to vector<32x32xf32>
    %191 = arith.subf %181, %190 : vector<32x32xf32>
    %192 = arith.mulf %191, %191 : vector<32x32xf32>
    %cst_88 = arith.constant dense<0.000000e+00> : vector<32xf32>
    %193 = vector.multi_reduction <add>, %192, %cst_88 [1] : vector<32x32xf32> to vector<32xf32>
    %194 = vector.shape_cast %193 : vector<32xf32> to vector<32x1xf32>
    %cst_89 = arith.constant 3.200000e+01 : f32
    %195 = vector.broadcast %cst_89 : f32 to vector<32x1xf32>
    %196 = arith.divf %194, %195 : vector<32x1xf32>
    %197 = vector.broadcast %189 : vector<32x1xf32> to vector<32x32xf32>
    %198 = arith.subf %181, %197 : vector<32x32xf32>
    %cst_90 = arith.constant 9.99999974E-6 : f32
    %199 = vector.broadcast %cst_90 : f32 to vector<32x1xf32>
    %200 = arith.addf %196, %199 : vector<32x1xf32>
    %201 = math.rsqrt %200 : vector<32x1xf32>
    %202 = vector.broadcast %201 : vector<32x1xf32> to vector<32x32xf32>
    %203 = arith.mulf %198, %202 : vector<32x32xf32>
    %204 = vector.broadcast %183 : vector<1x32xf32> to vector<32x32xf32>
    %205 = arith.mulf %203, %204 : vector<32x32xf32>
    %206 = vector.broadcast %185 : vector<1x32xf32> to vector<32x32xf32>
    %207 = arith.addf %205, %206 : vector<32x32xf32>
    %c1 = arith.constant 1 : index
    %c0_91 = arith.constant 0 : index
    %c0_92 = arith.constant 0 : index
    %208 = vector.load %arg4[%c1, %c0_91, %c0_92] : memref<2x32x96xf32, #tpu.memory_space<vmem>>, vector<1x32x96xf32>
    %209 = vector.shape_cast %208 : vector<1x32x96xf32> to vector<32x96xf32>
    %c1_93 = arith.constant 1 : index
    %c0_94 = arith.constant 0 : index
    %c0_95 = arith.constant 0 : index
    %210 = vector.load %arg5[%c1_93, %c0_94, %c0_95] : memref<2x1x96xf32, #tpu.memory_space<vmem>>, vector<1x1x96xf32>
    %211 = vector.shape_cast %210 : vector<1x1x96xf32> to vector<1x96xf32>
    %c1_96 = arith.constant 1 : index
    %c0_97 = arith.constant 0 : index
    %c0_98 = arith.constant 0 : index
    %212 = vector.load %arg6[%c1_96, %c0_97, %c0_98] : memref<2x32x32xf32, #tpu.memory_space<vmem>>, vector<1x32x32xf32>
    %213 = vector.shape_cast %212 : vector<1x32x32xf32> to vector<32x32xf32>
    %c1_99 = arith.constant 1 : index
    %c0_100 = arith.constant 0 : index
    %c0_101 = arith.constant 0 : index
    %214 = vector.load %arg7[%c1_99, %c0_100, %c0_101] : memref<2x1x32xf32, #tpu.memory_space<vmem>>, vector<1x1x32xf32>
    %215 = vector.shape_cast %214 : vector<1x1x32xf32> to vector<1x32xf32>
    %cst_102 = arith.constant dense<0.000000e+00> : vector<32x96xf32>
    %216 = tpu.matmul %207, %209, %cst_102 {dimension_numbers = #tpu.dot_dimension_numbers<[1], [0], [0], [1], [0, 0, 1, 1], [], []>} : vector<32x32xf32>, vector<32x96xf32>, vector<32x96xf32> -> vector<32x96xf32>
    %217 = vector.broadcast %211 : vector<1x96xf32> to vector<32x96xf32>
    %218 = arith.addf %216, %217 : vector<32x96xf32>
    %219 = vector.shape_cast %218 : vector<32x96xf32> to vector<2x16x96xf32>
    %220 = vector.extract_strided_slice %219 {offsets = [0, 0, 0], sizes = [2, 16, 8], strides = [1, 1, 1]} : vector<2x16x96xf32> to vector<2x16x8xf32>
    %221 = vector.extract_strided_slice %219 {offsets = [0, 0, 32], sizes = [2, 16, 8], strides = [1, 1, 1]} : vector<2x16x96xf32> to vector<2x16x8xf32>
    %222 = vector.extract_strided_slice %219 {offsets = [0, 0, 64], sizes = [2, 16, 8], strides = [1, 1, 1]} : vector<2x16x96xf32> to vector<2x16x8xf32>
    %cst_103 = arith.constant dense<0.000000e+00> : vector<2x16x16xf32>
    %223 = tpu.matmul %220, %221, %cst_103 {dimension_numbers = #tpu.dot_dimension_numbers<[2], [2], [1], [1], [0, 0, 0, 1, 1, 1], [0], [0]>} : vector<2x16x8xf32>, vector<2x16x8xf32>, vector<2x16x16xf32> -> vector<2x16x16xf32>
    %cst_104 = arith.constant dense<0xFF800000> : vector<2x16xf32>
    %224 = vector.multi_reduction <maximumf>, %223, %cst_104 [2] : vector<2x16x16xf32> to vector<2x16xf32>
    %225 = vector.shape_cast %224 : vector<2x16xf32> to vector<2x16x1xf32>
    %226 = vector.broadcast %225 : vector<2x16x1xf32> to vector<2x16x16xf32>
    %227 = arith.subf %223, %226 : vector<2x16x16xf32>
    %228 = math.exp %227 : vector<2x16x16xf32>
    %cst_105 = arith.constant dense<0.000000e+00> : vector<2x16xf32>
    %229 = vector.multi_reduction <add>, %228, %cst_105 [2] : vector<2x16x16xf32> to vector<2x16xf32>
    %230 = vector.shape_cast %229 : vector<2x16xf32> to vector<2x16x1xf32>
    %231 = tpu.reciprocal %230 {approx = true} : vector<2x16x1xf32> -> vector<2x16x1xf32>
    %232 = vector.broadcast %231 : vector<2x16x1xf32> to vector<2x16x16xf32>
    %233 = arith.mulf %228, %232 : vector<2x16x16xf32>
    %cst_106 = arith.constant dense<0.000000e+00> : vector<2x16x8xf32>
    %234 = tpu.matmul %233, %222, %cst_106 {dimension_numbers = #tpu.dot_dimension_numbers<[2], [1], [1], [2], [0, 0, 0, 1, 1, 2], [0], [0]>} : vector<2x16x16xf32>, vector<2x16x8xf32>, vector<2x16x8xf32> -> vector<2x16x8xf32>
    %235 = vector.shape_cast %234 : vector<2x16x8xf32> to vector<32x8xf32>
    %236 = vector.extract_strided_slice %213 {offsets = [0, 0], sizes = [8, 32], strides = [1, 1]} : vector<32x32xf32> to vector<8x32xf32>
    %cst_107 = arith.constant dense<0.000000e+00> : vector<32x32xf32>
    %237 = tpu.matmul %235, %236, %cst_107 {dimension_numbers = #tpu.dot_dimension_numbers<[1], [0], [0], [1], [0, 0, 1, 1], [], []>} : vector<32x8xf32>, vector<8x32xf32>, vector<32x32xf32> -> vector<32x32xf32>
    %238 = vector.broadcast %215 : vector<1x32xf32> to vector<32x32xf32>
    %239 = arith.addf %237, %238 : vector<32x32xf32>
    %240 = vector.extract_strided_slice %219 {offsets = [0, 0, 8], sizes = [2, 16, 8], strides = [1, 1, 1]} : vector<2x16x96xf32> to vector<2x16x8xf32>
    %241 = vector.extract_strided_slice %219 {offsets = [0, 0, 40], sizes = [2, 16, 8], strides = [1, 1, 1]} : vector<2x16x96xf32> to vector<2x16x8xf32>
    %242 = vector.extract_strided_slice %219 {offsets = [0, 0, 72], sizes = [2, 16, 8], strides = [1, 1, 1]} : vector<2x16x96xf32> to vector<2x16x8xf32>
    %cst_108 = arith.constant dense<0.000000e+00> : vector<2x16x16xf32>
    %243 = tpu.matmul %240, %241, %cst_108 {dimension_numbers = #tpu.dot_dimension_numbers<[2], [2], [1], [1], [0, 0, 0, 1, 1, 1], [0], [0]>} : vector<2x16x8xf32>, vector<2x16x8xf32>, vector<2x16x16xf32> -> vector<2x16x16xf32>
    %cst_109 = arith.constant dense<0xFF800000> : vector<2x16xf32>
    %244 = vector.multi_reduction <maximumf>, %243, %cst_109 [2] : vector<2x16x16xf32> to vector<2x16xf32>
    %245 = vector.shape_cast %244 : vector<2x16xf32> to vector<2x16x1xf32>
    %246 = vector.broadcast %245 : vector<2x16x1xf32> to vector<2x16x16xf32>
    %247 = arith.subf %243, %246 : vector<2x16x16xf32>
    %248 = math.exp %247 : vector<2x16x16xf32>
    %cst_110 = arith.constant dense<0.000000e+00> : vector<2x16xf32>
    %249 = vector.multi_reduction <add>, %248, %cst_110 [2] : vector<2x16x16xf32> to vector<2x16xf32>
    %250 = vector.shape_cast %249 : vector<2x16xf32> to vector<2x16x1xf32>
    %251 = tpu.reciprocal %250 {approx = true} : vector<2x16x1xf32> -> vector<2x16x1xf32>
    %252 = vector.broadcast %251 : vector<2x16x1xf32> to vector<2x16x16xf32>
    %253 = arith.mulf %248, %252 : vector<2x16x16xf32>
    %cst_111 = arith.constant dense<0.000000e+00> : vector<2x16x8xf32>
    %254 = tpu.matmul %253, %242, %cst_111 {dimension_numbers = #tpu.dot_dimension_numbers<[2], [1], [1], [2], [0, 0, 0, 1, 1, 2], [0], [0]>} : vector<2x16x16xf32>, vector<2x16x8xf32>, vector<2x16x8xf32> -> vector<2x16x8xf32>
    %255 = vector.shape_cast %254 : vector<2x16x8xf32> to vector<32x8xf32>
    %256 = vector.extract_strided_slice %213 {offsets = [8, 0], sizes = [8, 32], strides = [1, 1]} : vector<32x32xf32> to vector<8x32xf32>
    %cst_112 = arith.constant dense<0.000000e+00> : vector<32x32xf32>
    %257 = tpu.matmul %255, %256, %cst_112 {dimension_numbers = #tpu.dot_dimension_numbers<[1], [0], [0], [1], [0, 0, 1, 1], [], []>} : vector<32x8xf32>, vector<8x32xf32>, vector<32x32xf32> -> vector<32x32xf32>
    %258 = arith.addf %239, %257 : vector<32x32xf32>
    %259 = vector.extract_strided_slice %219 {offsets = [0, 0, 16], sizes = [2, 16, 8], strides = [1, 1, 1]} : vector<2x16x96xf32> to vector<2x16x8xf32>
    %260 = vector.extract_strided_slice %219 {offsets = [0, 0, 48], sizes = [2, 16, 8], strides = [1, 1, 1]} : vector<2x16x96xf32> to vector<2x16x8xf32>
    %261 = vector.extract_strided_slice %219 {offsets = [0, 0, 80], sizes = [2, 16, 8], strides = [1, 1, 1]} : vector<2x16x96xf32> to vector<2x16x8xf32>
    %cst_113 = arith.constant dense<0.000000e+00> : vector<2x16x16xf32>
    %262 = tpu.matmul %259, %260, %cst_113 {dimension_numbers = #tpu.dot_dimension_numbers<[2], [2], [1], [1], [0, 0, 0, 1, 1, 1], [0], [0]>} : vector<2x16x8xf32>, vector<2x16x8xf32>, vector<2x16x16xf32> -> vector<2x16x16xf32>
    %cst_114 = arith.constant dense<0xFF800000> : vector<2x16xf32>
    %263 = vector.multi_reduction <maximumf>, %262, %cst_114 [2] : vector<2x16x16xf32> to vector<2x16xf32>
    %264 = vector.shape_cast %263 : vector<2x16xf32> to vector<2x16x1xf32>
    %265 = vector.broadcast %264 : vector<2x16x1xf32> to vector<2x16x16xf32>
    %266 = arith.subf %262, %265 : vector<2x16x16xf32>
    %267 = math.exp %266 : vector<2x16x16xf32>
    %cst_115 = arith.constant dense<0.000000e+00> : vector<2x16xf32>
    %268 = vector.multi_reduction <add>, %267, %cst_115 [2] : vector<2x16x16xf32> to vector<2x16xf32>
    %269 = vector.shape_cast %268 : vector<2x16xf32> to vector<2x16x1xf32>
    %270 = tpu.reciprocal %269 {approx = true} : vector<2x16x1xf32> -> vector<2x16x1xf32>
    %271 = vector.broadcast %270 : vector<2x16x1xf32> to vector<2x16x16xf32>
    %272 = arith.mulf %267, %271 : vector<2x16x16xf32>
    %cst_116 = arith.constant dense<0.000000e+00> : vector<2x16x8xf32>
    %273 = tpu.matmul %272, %261, %cst_116 {dimension_numbers = #tpu.dot_dimension_numbers<[2], [1], [1], [2], [0, 0, 0, 1, 1, 2], [0], [0]>} : vector<2x16x16xf32>, vector<2x16x8xf32>, vector<2x16x8xf32> -> vector<2x16x8xf32>
    %274 = vector.shape_cast %273 : vector<2x16x8xf32> to vector<32x8xf32>
    %275 = vector.extract_strided_slice %213 {offsets = [16, 0], sizes = [8, 32], strides = [1, 1]} : vector<32x32xf32> to vector<8x32xf32>
    %cst_117 = arith.constant dense<0.000000e+00> : vector<32x32xf32>
    %276 = tpu.matmul %274, %275, %cst_117 {dimension_numbers = #tpu.dot_dimension_numbers<[1], [0], [0], [1], [0, 0, 1, 1], [], []>} : vector<32x8xf32>, vector<8x32xf32>, vector<32x32xf32> -> vector<32x32xf32>
    %277 = arith.addf %258, %276 : vector<32x32xf32>
    %278 = vector.extract_strided_slice %219 {offsets = [0, 0, 24], sizes = [2, 16, 8], strides = [1, 1, 1]} : vector<2x16x96xf32> to vector<2x16x8xf32>
    %279 = vector.extract_strided_slice %219 {offsets = [0, 0, 56], sizes = [2, 16, 8], strides = [1, 1, 1]} : vector<2x16x96xf32> to vector<2x16x8xf32>
    %280 = vector.extract_strided_slice %219 {offsets = [0, 0, 88], sizes = [2, 16, 8], strides = [1, 1, 1]} : vector<2x16x96xf32> to vector<2x16x8xf32>
    %cst_118 = arith.constant dense<0.000000e+00> : vector<2x16x16xf32>
    %281 = tpu.matmul %278, %279, %cst_118 {dimension_numbers = #tpu.dot_dimension_numbers<[2], [2], [1], [1], [0, 0, 0, 1, 1, 1], [0], [0]>} : vector<2x16x8xf32>, vector<2x16x8xf32>, vector<2x16x16xf32> -> vector<2x16x16xf32>
    %cst_119 = arith.constant dense<0xFF800000> : vector<2x16xf32>
    %282 = vector.multi_reduction <maximumf>, %281, %cst_119 [2] : vector<2x16x16xf32> to vector<2x16xf32>
    %283 = vector.shape_cast %282 : vector<2x16xf32> to vector<2x16x1xf32>
    %284 = vector.broadcast %283 : vector<2x16x1xf32> to vector<2x16x16xf32>
    %285 = arith.subf %281, %284 : vector<2x16x16xf32>
    %286 = math.exp %285 : vector<2x16x16xf32>
    %cst_120 = arith.constant dense<0.000000e+00> : vector<2x16xf32>
    %287 = vector.multi_reduction <add>, %286, %cst_120 [2] : vector<2x16x16xf32> to vector<2x16xf32>
    %288 = vector.shape_cast %287 : vector<2x16xf32> to vector<2x16x1xf32>
    %289 = tpu.reciprocal %288 {approx = true} : vector<2x16x1xf32> -> vector<2x16x1xf32>
    %290 = vector.broadcast %289 : vector<2x16x1xf32> to vector<2x16x16xf32>
    %291 = arith.mulf %286, %290 : vector<2x16x16xf32>
    %cst_121 = arith.constant dense<0.000000e+00> : vector<2x16x8xf32>
    %292 = tpu.matmul %291, %280, %cst_121 {dimension_numbers = #tpu.dot_dimension_numbers<[2], [1], [1], [2], [0, 0, 0, 1, 1, 2], [0], [0]>} : vector<2x16x16xf32>, vector<2x16x8xf32>, vector<2x16x8xf32> -> vector<2x16x8xf32>
    %293 = vector.shape_cast %292 : vector<2x16x8xf32> to vector<32x8xf32>
    %294 = vector.extract_strided_slice %213 {offsets = [24, 0], sizes = [8, 32], strides = [1, 1]} : vector<32x32xf32> to vector<8x32xf32>
    %cst_122 = arith.constant dense<0.000000e+00> : vector<32x32xf32>
    %295 = tpu.matmul %293, %294, %cst_122 {dimension_numbers = #tpu.dot_dimension_numbers<[1], [0], [0], [1], [0, 0, 1, 1], [], []>} : vector<32x8xf32>, vector<8x32xf32>, vector<32x32xf32> -> vector<32x32xf32>
    %296 = arith.addf %277, %295 : vector<32x32xf32>
    %297 = arith.addf %207, %296 : vector<32x32xf32>
    %c1_123 = arith.constant 1 : index
    %c0_124 = arith.constant 0 : index
    %c0_125 = arith.constant 0 : index
    %298 = vector.load %arg12[%c1_123, %c0_124, %c0_125] : memref<2x1x32xf32, #tpu.memory_space<vmem>>, vector<1x1x32xf32>
    %299 = vector.shape_cast %298 : vector<1x1x32xf32> to vector<1x32xf32>
    %c1_126 = arith.constant 1 : index
    %c0_127 = arith.constant 0 : index
    %c0_128 = arith.constant 0 : index
    %300 = vector.load %arg13[%c1_126, %c0_127, %c0_128] : memref<2x1x32xf32, #tpu.memory_space<vmem>>, vector<1x1x32xf32>
    %301 = vector.shape_cast %300 : vector<1x1x32xf32> to vector<1x32xf32>
    %cst_129 = arith.constant dense<0.000000e+00> : vector<32xf32>
    %302 = vector.multi_reduction <add>, %297, %cst_129 [1] : vector<32x32xf32> to vector<32xf32>
    %303 = vector.shape_cast %302 : vector<32xf32> to vector<32x1xf32>
    %cst_130 = arith.constant 3.200000e+01 : f32
    %304 = vector.broadcast %cst_130 : f32 to vector<32x1xf32>
    %305 = arith.divf %303, %304 : vector<32x1xf32>
    %306 = vector.broadcast %305 : vector<32x1xf32> to vector<32x32xf32>
    %307 = arith.subf %297, %306 : vector<32x32xf32>
    %308 = arith.mulf %307, %307 : vector<32x32xf32>
    %cst_131 = arith.constant dense<0.000000e+00> : vector<32xf32>
    %309 = vector.multi_reduction <add>, %308, %cst_131 [1] : vector<32x32xf32> to vector<32xf32>
    %310 = vector.shape_cast %309 : vector<32xf32> to vector<32x1xf32>
    %cst_132 = arith.constant 3.200000e+01 : f32
    %311 = vector.broadcast %cst_132 : f32 to vector<32x1xf32>
    %312 = arith.divf %310, %311 : vector<32x1xf32>
    %313 = vector.broadcast %305 : vector<32x1xf32> to vector<32x32xf32>
    %314 = arith.subf %297, %313 : vector<32x32xf32>
    %cst_133 = arith.constant 9.99999974E-6 : f32
    %315 = vector.broadcast %cst_133 : f32 to vector<32x1xf32>
    %316 = arith.addf %312, %315 : vector<32x1xf32>
    %317 = math.rsqrt %316 : vector<32x1xf32>
    %318 = vector.broadcast %317 : vector<32x1xf32> to vector<32x32xf32>
    %319 = arith.mulf %314, %318 : vector<32x32xf32>
    %320 = vector.broadcast %299 : vector<1x32xf32> to vector<32x32xf32>
    %321 = arith.mulf %319, %320 : vector<32x32xf32>
    %322 = vector.broadcast %301 : vector<1x32xf32> to vector<32x32xf32>
    %323 = arith.addf %321, %322 : vector<32x32xf32>
    %c1_134 = arith.constant 1 : index
    %c0_135 = arith.constant 0 : index
    %c0_136 = arith.constant 0 : index
    %324 = vector.load %arg8[%c1_134, %c0_135, %c0_136] : memref<2x32x64xf32, #tpu.memory_space<vmem>>, vector<1x32x64xf32>
    %325 = vector.shape_cast %324 : vector<1x32x64xf32> to vector<32x64xf32>
    %cst_137 = arith.constant dense<0.000000e+00> : vector<32x64xf32>
    %326 = tpu.matmul %323, %325, %cst_137 {dimension_numbers = #tpu.dot_dimension_numbers<[1], [0], [0], [1], [0, 0, 1, 1], [], []>} : vector<32x32xf32>, vector<32x64xf32>, vector<32x64xf32> -> vector<32x64xf32>
    %c1_138 = arith.constant 1 : index
    %c0_139 = arith.constant 0 : index
    %c0_140 = arith.constant 0 : index
    %327 = vector.load %arg9[%c1_138, %c0_139, %c0_140] : memref<2x1x64xf32, #tpu.memory_space<vmem>>, vector<1x1x64xf32>
    %328 = vector.shape_cast %327 : vector<1x1x64xf32> to vector<1x64xf32>
    %329 = vector.broadcast %328 : vector<1x64xf32> to vector<32x64xf32>
    %330 = arith.addf %326, %329 : vector<32x64xf32>
    %cst_141 = arith.constant 0.000000e+00 : f32
    %331 = vector.broadcast %cst_141 : f32 to vector<32x64xf32>
    %332 = arith.maximumf %330, %331 : vector<32x64xf32>
    %c1_142 = arith.constant 1 : index
    %c0_143 = arith.constant 0 : index
    %c0_144 = arith.constant 0 : index
    %333 = vector.load %arg10[%c1_142, %c0_143, %c0_144] : memref<2x64x32xf32, #tpu.memory_space<vmem>>, vector<1x64x32xf32>
    %334 = vector.shape_cast %333 : vector<1x64x32xf32> to vector<64x32xf32>
    %cst_145 = arith.constant dense<0.000000e+00> : vector<32x32xf32>
    %335 = tpu.matmul %332, %334, %cst_145 {dimension_numbers = #tpu.dot_dimension_numbers<[1], [0], [0], [1], [0, 0, 1, 1], [], []>} : vector<32x64xf32>, vector<64x32xf32>, vector<32x32xf32> -> vector<32x32xf32>
    %c1_146 = arith.constant 1 : index
    %c0_147 = arith.constant 0 : index
    %c0_148 = arith.constant 0 : index
    %336 = vector.load %arg11[%c1_146, %c0_147, %c0_148] : memref<2x1x32xf32, #tpu.memory_space<vmem>>, vector<1x1x32xf32>
    %337 = vector.shape_cast %336 : vector<1x1x32xf32> to vector<1x32xf32>
    %338 = vector.broadcast %337 : vector<1x32xf32> to vector<32x32xf32>
    %339 = arith.addf %335, %338 : vector<32x32xf32>
    %340 = arith.addf %323, %339 : vector<32x32xf32>
    %c1_149 = arith.constant 1 : index
    %c0_150 = arith.constant 0 : index
    %c0_151 = arith.constant 0 : index
    %341 = vector.load %arg14[%c1_149, %c0_150, %c0_151] : memref<2x1x32xf32, #tpu.memory_space<vmem>>, vector<1x1x32xf32>
    %342 = vector.shape_cast %341 : vector<1x1x32xf32> to vector<1x32xf32>
    %c1_152 = arith.constant 1 : index
    %c0_153 = arith.constant 0 : index
    %c0_154 = arith.constant 0 : index
    %343 = vector.load %arg15[%c1_152, %c0_153, %c0_154] : memref<2x1x32xf32, #tpu.memory_space<vmem>>, vector<1x1x32xf32>
    %344 = vector.shape_cast %343 : vector<1x1x32xf32> to vector<1x32xf32>
    %cst_155 = arith.constant dense<0.000000e+00> : vector<32xf32>
    %345 = vector.multi_reduction <add>, %340, %cst_155 [1] : vector<32x32xf32> to vector<32xf32>
    %346 = vector.shape_cast %345 : vector<32xf32> to vector<32x1xf32>
    %cst_156 = arith.constant 3.200000e+01 : f32
    %347 = vector.broadcast %cst_156 : f32 to vector<32x1xf32>
    %348 = arith.divf %346, %347 : vector<32x1xf32>
    %349 = vector.broadcast %348 : vector<32x1xf32> to vector<32x32xf32>
    %350 = arith.subf %340, %349 : vector<32x32xf32>
    %351 = arith.mulf %350, %350 : vector<32x32xf32>
    %cst_157 = arith.constant dense<0.000000e+00> : vector<32xf32>
    %352 = vector.multi_reduction <add>, %351, %cst_157 [1] : vector<32x32xf32> to vector<32xf32>
    %353 = vector.shape_cast %352 : vector<32xf32> to vector<32x1xf32>
    %cst_158 = arith.constant 3.200000e+01 : f32
    %354 = vector.broadcast %cst_158 : f32 to vector<32x1xf32>
    %355 = arith.divf %353, %354 : vector<32x1xf32>
    %356 = vector.broadcast %348 : vector<32x1xf32> to vector<32x32xf32>
    %357 = arith.subf %340, %356 : vector<32x32xf32>
    %cst_159 = arith.constant 9.99999974E-6 : f32
    %358 = vector.broadcast %cst_159 : f32 to vector<32x1xf32>
    %359 = arith.addf %355, %358 : vector<32x1xf32>
    %360 = math.rsqrt %359 : vector<32x1xf32>
    %361 = vector.broadcast %360 : vector<32x1xf32> to vector<32x32xf32>
    %362 = arith.mulf %357, %361 : vector<32x32xf32>
    %363 = vector.broadcast %342 : vector<1x32xf32> to vector<32x32xf32>
    %364 = arith.mulf %362, %363 : vector<32x32xf32>
    %365 = vector.broadcast %344 : vector<1x32xf32> to vector<32x32xf32>
    %366 = arith.addf %364, %365 : vector<32x32xf32>
    %367 = vector.extract_strided_slice %366 {offsets = [0, 0], sizes = [1, 32], strides = [1, 1]} : vector<32x32xf32> to vector<1x32xf32>
    %368 = vector.extract_strided_slice %366 {offsets = [1, 0], sizes = [1, 32], strides = [1, 1]} : vector<32x32xf32> to vector<1x32xf32>
    %369 = vector.extract_strided_slice %366 {offsets = [2, 0], sizes = [1, 32], strides = [1, 1]} : vector<32x32xf32> to vector<1x32xf32>
    %370 = vector.extract_strided_slice %366 {offsets = [3, 0], sizes = [1, 32], strides = [1, 1]} : vector<32x32xf32> to vector<1x32xf32>
    %371 = tpu.concatenate %367, %368, %369, %370 in 1 : vector<1x32xf32>, vector<1x32xf32>, vector<1x32xf32>, vector<1x32xf32> -> vector<1x128xf32>
    %372 = vector.extract_strided_slice %366 {offsets = [4, 0], sizes = [1, 32], strides = [1, 1]} : vector<32x32xf32> to vector<1x32xf32>
    %373 = vector.extract_strided_slice %366 {offsets = [5, 0], sizes = [1, 32], strides = [1, 1]} : vector<32x32xf32> to vector<1x32xf32>
    %374 = vector.extract_strided_slice %366 {offsets = [6, 0], sizes = [1, 32], strides = [1, 1]} : vector<32x32xf32> to vector<1x32xf32>
    %375 = vector.extract_strided_slice %366 {offsets = [7, 0], sizes = [1, 32], strides = [1, 1]} : vector<32x32xf32> to vector<1x32xf32>
    %376 = tpu.concatenate %372, %373, %374, %375 in 1 : vector<1x32xf32>, vector<1x32xf32>, vector<1x32xf32>, vector<1x32xf32> -> vector<1x128xf32>
    %377 = vector.extract_strided_slice %366 {offsets = [8, 0], sizes = [1, 32], strides = [1, 1]} : vector<32x32xf32> to vector<1x32xf32>
    %378 = vector.extract_strided_slice %366 {offsets = [9, 0], sizes = [1, 32], strides = [1, 1]} : vector<32x32xf32> to vector<1x32xf32>
    %379 = vector.extract_strided_slice %366 {offsets = [10, 0], sizes = [1, 32], strides = [1, 1]} : vector<32x32xf32> to vector<1x32xf32>
    %380 = vector.extract_strided_slice %366 {offsets = [11, 0], sizes = [1, 32], strides = [1, 1]} : vector<32x32xf32> to vector<1x32xf32>
    %381 = tpu.concatenate %377, %378, %379, %380 in 1 : vector<1x32xf32>, vector<1x32xf32>, vector<1x32xf32>, vector<1x32xf32> -> vector<1x128xf32>
    %382 = vector.extract_strided_slice %366 {offsets = [12, 0], sizes = [1, 32], strides = [1, 1]} : vector<32x32xf32> to vector<1x32xf32>
    %383 = vector.extract_strided_slice %366 {offsets = [13, 0], sizes = [1, 32], strides = [1, 1]} : vector<32x32xf32> to vector<1x32xf32>
    %384 = vector.extract_strided_slice %366 {offsets = [14, 0], sizes = [1, 32], strides = [1, 1]} : vector<32x32xf32> to vector<1x32xf32>
    %385 = vector.extract_strided_slice %366 {offsets = [15, 0], sizes = [1, 32], strides = [1, 1]} : vector<32x32xf32> to vector<1x32xf32>
    %386 = tpu.concatenate %382, %383, %384, %385 in 1 : vector<1x32xf32>, vector<1x32xf32>, vector<1x32xf32>, vector<1x32xf32> -> vector<1x128xf32>
    %387 = vector.extract_strided_slice %366 {offsets = [16, 0], sizes = [1, 32], strides = [1, 1]} : vector<32x32xf32> to vector<1x32xf32>
    %388 = vector.extract_strided_slice %366 {offsets = [17, 0], sizes = [1, 32], strides = [1, 1]} : vector<32x32xf32> to vector<1x32xf32>
    %389 = vector.extract_strided_slice %366 {offsets = [18, 0], sizes = [1, 32], strides = [1, 1]} : vector<32x32xf32> to vector<1x32xf32>
    %390 = vector.extract_strided_slice %366 {offsets = [19, 0], sizes = [1, 32], strides = [1, 1]} : vector<32x32xf32> to vector<1x32xf32>
    %391 = tpu.concatenate %387, %388, %389, %390 in 1 : vector<1x32xf32>, vector<1x32xf32>, vector<1x32xf32>, vector<1x32xf32> -> vector<1x128xf32>
    %392 = vector.extract_strided_slice %366 {offsets = [20, 0], sizes = [1, 32], strides = [1, 1]} : vector<32x32xf32> to vector<1x32xf32>
    %393 = vector.extract_strided_slice %366 {offsets = [21, 0], sizes = [1, 32], strides = [1, 1]} : vector<32x32xf32> to vector<1x32xf32>
    %394 = vector.extract_strided_slice %366 {offsets = [22, 0], sizes = [1, 32], strides = [1, 1]} : vector<32x32xf32> to vector<1x32xf32>
    %395 = vector.extract_strided_slice %366 {offsets = [23, 0], sizes = [1, 32], strides = [1, 1]} : vector<32x32xf32> to vector<1x32xf32>
    %396 = tpu.concatenate %392, %393, %394, %395 in 1 : vector<1x32xf32>, vector<1x32xf32>, vector<1x32xf32>, vector<1x32xf32> -> vector<1x128xf32>
    %397 = vector.extract_strided_slice %366 {offsets = [24, 0], sizes = [1, 32], strides = [1, 1]} : vector<32x32xf32> to vector<1x32xf32>
    %398 = vector.extract_strided_slice %366 {offsets = [25, 0], sizes = [1, 32], strides = [1, 1]} : vector<32x32xf32> to vector<1x32xf32>
    %399 = vector.extract_strided_slice %366 {offsets = [26, 0], sizes = [1, 32], strides = [1, 1]} : vector<32x32xf32> to vector<1x32xf32>
    %400 = vector.extract_strided_slice %366 {offsets = [27, 0], sizes = [1, 32], strides = [1, 1]} : vector<32x32xf32> to vector<1x32xf32>
    %401 = tpu.concatenate %397, %398, %399, %400 in 1 : vector<1x32xf32>, vector<1x32xf32>, vector<1x32xf32>, vector<1x32xf32> -> vector<1x128xf32>
    %402 = vector.extract_strided_slice %366 {offsets = [28, 0], sizes = [1, 32], strides = [1, 1]} : vector<32x32xf32> to vector<1x32xf32>
    %403 = vector.extract_strided_slice %366 {offsets = [29, 0], sizes = [1, 32], strides = [1, 1]} : vector<32x32xf32> to vector<1x32xf32>
    %404 = vector.extract_strided_slice %366 {offsets = [30, 0], sizes = [1, 32], strides = [1, 1]} : vector<32x32xf32> to vector<1x32xf32>
    %405 = vector.extract_strided_slice %366 {offsets = [31, 0], sizes = [1, 32], strides = [1, 1]} : vector<32x32xf32> to vector<1x32xf32>
    %406 = tpu.concatenate %402, %403, %404, %405 in 1 : vector<1x32xf32>, vector<1x32xf32>, vector<1x32xf32>, vector<1x32xf32> -> vector<1x128xf32>
    %407 = tpu.concatenate %371, %376, %381, %386, %391, %396, %401, %406 in 0 : vector<1x128xf32>, vector<1x128xf32>, vector<1x128xf32>, vector<1x128xf32>, vector<1x128xf32>, vector<1x128xf32>, vector<1x128xf32>, vector<1x128xf32> -> vector<8x128xf32>
    %c0_160 = arith.constant 0 : index
    %c0_161 = arith.constant 0 : index
    %408 = vector.load %arg16[%c0_160, %c0_161] : memref<8x128xf32, #tpu.memory_space<vmem>>, vector<8x128xf32>
    tpu.vector_store %arg16[%c0_160, %c0_161], %407 {strides = array<i32>} : memref<8x128xf32, #tpu.memory_space<vmem>>, vector<8x128xf32>,
    return
  }
  func.func @transform_0(%arg0: i32) -> (i32, i32) {
    %c0_i32 = arith.constant 0 : i32
    %c0_i32_0 = arith.constant 0 : i32
    %c0_i32_1 = arith.constant 0 : i32
    return %c0_i32, %c0_i32_0 : i32, i32
  }
  func.func @transform_1(%arg0: i32) -> (i32, i32) {
    %c0_i32 = arith.constant 0 : i32
    %c0_i32_0 = arith.constant 0 : i32
    %c0_i32_1 = arith.constant 0 : i32
    return %c0_i32, %c0_i32_0 : i32, i32
  }
  func.func @transform_2(%arg0: i32) -> (i32, i32) {
    %c0_i32 = arith.constant 0 : i32
    %c0_i32_0 = arith.constant 0 : i32
    %c0_i32_1 = arith.constant 0 : i32
    return %c0_i32, %c0_i32_0 : i32, i32
  }
  func.func @transform_3(%arg0: i32) -> (i32, i32, i32) {
    %c0_i32 = arith.constant 0 : i32
    %c0_i32_0 = arith.constant 0 : i32
    %c0_i32_1 = arith.constant 0 : i32
    %c0_i32_2 = arith.constant 0 : i32
    return %c0_i32, %c0_i32_0, %c0_i32_1 : i32, i32, i32
  }
  func.func @transform_4(%arg0: i32) -> (i32, i32, i32) {
    %c0_i32 = arith.constant 0 : i32
    %c0_i32_0 = arith.constant 0 : i32
    %c0_i32_1 = arith.constant 0 : i32
    %c0_i32_2 = arith.constant 0 : i32
    return %c0_i32, %c0_i32_0, %c0_i32_1 : i32, i32, i32
  }
  func.func @transform_5(%arg0: i32) -> (i32, i32, i32) {
    %c0_i32 = arith.constant 0 : i32
    %c0_i32_0 = arith.constant 0 : i32
    %c0_i32_1 = arith.constant 0 : i32
    %c0_i32_2 = arith.constant 0 : i32
    return %c0_i32, %c0_i32_0, %c0_i32_1 : i32, i32, i32
  }
  func.func @transform_6(%arg0: i32) -> (i32, i32, i32) {
    %c0_i32 = arith.constant 0 : i32
    %c0_i32_0 = arith.constant 0 : i32
    %c0_i32_1 = arith.constant 0 : i32
    %c0_i32_2 = arith.constant 0 : i32
    return %c0_i32, %c0_i32_0, %c0_i32_1 : i32, i32, i32
  }
  func.func @transform_7(%arg0: i32) -> (i32, i32, i32) {
    %c0_i32 = arith.constant 0 : i32
    %c0_i32_0 = arith.constant 0 : i32
    %c0_i32_1 = arith.constant 0 : i32
    %c0_i32_2 = arith.constant 0 : i32
    return %c0_i32, %c0_i32_0, %c0_i32_1 : i32, i32, i32
  }
  func.func @transform_8(%arg0: i32) -> (i32, i32, i32) {
    %c0_i32 = arith.constant 0 : i32
    %c0_i32_0 = arith.constant 0 : i32
    %c0_i32_1 = arith.constant 0 : i32
    %c0_i32_2 = arith.constant 0 : i32
    return %c0_i32, %c0_i32_0, %c0_i32_1 : i32, i32, i32
  }
  func.func @transform_9(%arg0: i32) -> (i32, i32, i32) {
    %c0_i32 = arith.constant 0 : i32
    %c0_i32_0 = arith.constant 0 : i32
    %c0_i32_1 = arith.constant 0 : i32
    %c0_i32_2 = arith.constant 0 : i32
    return %c0_i32, %c0_i32_0, %c0_i32_1 : i32, i32, i32
  }
  func.func @transform_10(%arg0: i32) -> (i32, i32, i32) {
    %c0_i32 = arith.constant 0 : i32
    %c0_i32_0 = arith.constant 0 : i32
    %c0_i32_1 = arith.constant 0 : i32
    %c0_i32_2 = arith.constant 0 : i32
    return %c0_i32, %c0_i32_0, %c0_i32_1 : i32, i32, i32
  }
  func.func @transform_11(%arg0: i32) -> (i32, i32, i32) {
    %c0_i32 = arith.constant 0 : i32
    %c0_i32_0 = arith.constant 0 : i32
    %c0_i32_1 = arith.constant 0 : i32
    %c0_i32_2 = arith.constant 0 : i32
    return %c0_i32, %c0_i32_0, %c0_i32_1 : i32, i32, i32
  }
  func.func @transform_12(%arg0: i32) -> (i32, i32, i32) {
    %c0_i32 = arith.constant 0 : i32
    %c0_i32_0 = arith.constant 0 : i32
    %c0_i32_1 = arith.constant 0 : i32
    %c0_i32_2 = arith.constant 0 : i32
    return %c0_i32, %c0_i32_0, %c0_i32_1 : i32, i32, i32
  }
  func.func @transform_13(%arg0: i32) -> (i32, i32, i32) {
    %c0_i32 = arith.constant 0 : i32
    %c0_i32_0 = arith.constant 0 : i32
    %c0_i32_1 = arith.constant 0 : i32
    %c0_i32_2 = arith.constant 0 : i32
    return %c0_i32, %c0_i32_0, %c0_i32_1 : i32, i32, i32
  }
  func.func @transform_14(%arg0: i32) -> (i32, i32, i32) {
    %c0_i32 = arith.constant 0 : i32
    %c0_i32_0 = arith.constant 0 : i32
    %c0_i32_1 = arith.constant 0 : i32
    %c0_i32_2 = arith.constant 0 : i32
    return %c0_i32, %c0_i32_0, %c0_i32_1 : i32, i32, i32
  }
  func.func @transform_15(%arg0: i32) -> (i32, i32) {
    %c0_i32 = arith.constant 0 : i32
    %c0_i32_0 = arith.constant 0 : i32
    %c0_i32_1 = arith.constant 0 : i32
    return %c0_i32, %c0_i32_0 : i32, i32
  }
}

</mosaic_0001>

<bundles_post_ra>
// kernel: tpu_custom_call.1
= control target key start
LH: loop header
LB: loop body
LE: loop exit
PB: predicated region body
PF: predicated region fallthrough
CT: control target
= control target key end

     0   :  { %s7828_s0 = inlined_call_operand.vmem [shape: f32[32,128], index: 0, kind: input, shape index: {}]   ;;  %s7829_s1 = inlined_call_operand.vmem [shape: f32[128,32], index: 1, kind: input, shape index: {}]   ;;  %s7830_s2 = inlined_call_operand.vmem [shape: f32[1,32], index: 2, kind: input, shape index: {}]   ;;  %s7831_s3 = inlined_call_operand.vmem [shape: f32[2,32,96], index: 3, kind: input, shape index: {}]   ;;  %s7832_s4 = inlined_call_operand.vmem [shape: f32[2,1,96], index: 4, kind: input, shape index: {}]   ;;  %s7833_s5 = inlined_call_operand.vmem [shape: f32[2,32,32], index: 5, kind: input, shape index: {}]   ;;  %s7834_s6 = inlined_call_operand.vmem [shape: f32[2,1,32], index: 6, kind: input, shape index: {}]   ;;  %s7835_s7 = inlined_call_operand.vmem [shape: f32[2,32,64], index: 7, kind: input, shape index: {}]   ;;  %s7836_s8 = inlined_call_operand.vmem [shape: f32[2,1,64], index: 8, kind: input, shape index: {}]   ;;  %s7837_s9 = inlined_call_operand.vmem [shape: f32[2,64,32], index: 9, kind: input, shape index: {}]   ;;  %s7838_s10 = inlined_call_operand.vmem [shape: f32[2,1,32], index: 10, kind: input, shape index: {}]   ;;  %s7839_s11 = inlined_call_operand.vmem [shape: f32[2,1,32], index: 11, kind: input, shape index: {}]   ;;  %s7840_s12 = inlined_call_operand.vmem [shape: f32[2,1,32], index: 12, kind: input, shape index: {}]   ;;  %s7841_s13 = inlined_call_operand.vmem [shape: f32[2,1,32], index: 13, kind: input, shape index: {}]   ;;  %s7842_s14 = inlined_call_operand.vmem [shape: f32[2,1,32], index: 14, kind: input, shape index: {}]   ;;  %s7843_s15 = inlined_call_operand.hbm [shape: f32[8,128], index: 15, kind: output, shape index: {}]  }
   0x1   :  { %v55_v0 = vld [vmem:[%s7829_s1] sm:$0xff]  ;;  %v56_v1 = vld [vmem:[%s7829_s1 + $0x8] sm:$0xff]  ;;  %v57_v2 = vld [vmem:[%s7829_s1 + $0x10] sm:$0xff] }
   0x2   :  { %v6261_v3 = vpack.c.bf16 %v56_v1, %v55_v0  ;;  %v58_v4 = vld [vmem:[%s7829_s1 + $0x18] sm:$0xff]  ;;  %v59_v6 = vld [vmem:[%s7829_s1 + $0x20] sm:$0xff]  ;;  %v60_v7 = vld [vmem:[%s7829_s1 + $0x28] sm:$0xff] }
   0x3   :  { %v6265_v5 = vpack.c.bf16 %v58_v4, %v57_v2  ;;  %v6269_v8 = vpack.c.bf16 %v60_v7, %v59_v6  ;;  %v7038_v9 = vld [vmem:[%s7828_s0] sm:$0xff]  ;;  %v61_v10 = vld [vmem:[%s7829_s1 + $0x30] sm:$0xff]  ;;  %v62_v11 = vld [vmem:[%s7829_s1 + $0x38] sm:$0xff] }
   0x4   :  { %6262 = vmatprep.subr.bf16.mxu0 %v6261_v3  ;;  %5867 = vmatprep.mubr.f32.mxu0 %v7038_v9 }
   0x5   :  { %6264 = vmatpush3.bf16.msra.mxu0 %v6261_v3 }
   0x6   :  { %6266 = vmatprep.subr.bf16.mxu0 %v6265_v5 }
   0x7   :  { %20 = vsyncpa [#allocation3], 0  ;;  %v6273_v12 = vpack.c.bf16 %v62_v11, %v61_v10  ;;  %v63_v13 = vld [vmem:[%s7829_s1 + $0x40] sm:$0xff]  ;;  %v64_v14 = vld [vmem:[%s7829_s1 + $0x48] sm:$0xff]  ;;  %vm291_vm4 = vcmask 261120   ;;  %vm395_vm5 = vcmask 64512  }
   0x8   :  { %v6277_v15 = vpack.c.bf16 %v64_v14, %v63_v13  ;;  %v65_v16 = vld [vmem:[%s7829_s1 + $0x50] sm:$0xff]  ;;  %v66_v17 = vld [vmem:[%s7829_s1 + $0x58] sm:$0xff]  ;;  %v67_v19 = vld [vmem:[%s7829_s1 + $0x60] sm:$0xff]  ;;  %s6924_s22 = smov 96   ;;  %vm568_vm7 = vcmask 130048   ;;  %s6925_s23 = smov 64  }
   0x9   :  { %6268 = vmatpush3.bf16.msra.mxu0 %v6265_v5  ;;  %v6281_v18 = vpack.c.bf16 %v66_v17, %v65_v16  ;;  %v68_v20 = vld [vmem:[%s7829_s1 + $0x68] sm:$0xff]  ;;  %v69_v22 = vld [vmem:[%s7829_s1 + $0x70] sm:$0xff]  ;;  %v70_v23 = vld [vmem:[%s7829_s1 + $0x78] sm:$0xff]  ;;  %s6926_s24 = smov 120   ;;  %s6927_s25 = smov 88   ;;  %vm2599_vm8 = vcmask 523264  }
   0xa   :  { %6270 = vmatprep.subr.bf16.mxu0 %v6269_v8  ;;  %v6285_v21 = vpack.c.bf16 %v68_v20, %v67_v19  ;;  %v6289_v24 = vpack.c.bf16 %v70_v23, %v69_v22  ;;  %v7074_v25 = vld [vmem:[%s7828_s0 + $0x8] sm:$0xff]  ;;  %v7079_v26 = vld [vmem:[%s7828_s0 + $0x10] sm:$0xff]  ;;  %v7086_v27 = vld [vmem:[%s7828_s0 + $0x18] sm:$0xff]  ;;  %s6928_s27 = smov 56   ;;  %s6929_s28 = smov 80   ;;  %vm5297_vm9 = vcmask 785408  }
   0xb   :  { %v275_v28 = vld [vmem:[%s7831_s3] sm:$0xff]  ;;  %v276_v29 = vld [vmem:[%s7831_s3 + $0x8] sm:$0xff]  ;;  %v277_v31 = vld [vmem:[%s7831_s3 + $0x10] sm:$0xff]  ;;  %s6930_s16 = smov 112   ;;  %s6931_s17 = smov 48   ;;  %vm5365_vm10 = vcmask 1040384  }
   0xc   :  { %v6293_v30 = vpack.c.bf16 %v276_v29, %v275_v28  ;;  %v278_v32 = vld [vmem:[%s7831_s3 + $0x18] sm:$0xff]  ;;  %v5394_v34 = vld [vmem:[%s7830_s2] ss:$0 sm:$0xff]  ;;  %vm7183_vm6 = vmpackc.low %vm395_vm5, %vm395_vm5  ;;  %s7848_s18 = smov 72   ;;  %s7846_s0 = smov 104   ;;  %vm5367_vm11 = vcmask 1041408  }
   0xd   :  { %6272 = vmatpush3.bf16.msra.mxu0 %v6269_v8  ;;  %v6297_v33 = vpack.c.bf16 %v278_v32, %v277_v31  ;;  %s7844_s2 = smov 40   ;;  %vm5369_vm12 = vcmask 1042432   ;;  %vm5371_vm13 = vcmask 1043456   ;;  %vm5373_vm14 = vcmask 1044480  }
   0xe   :  { %6274 = vmatprep.subr.bf16.mxu0 %v6273_v12  ;;  %6294 = vmatprep.subr.bf16.mxu1 %v6293_v30  ;;  %vm5375_vm15 = vcmask 1045504  }
   0xf   :  { %6296 = vmatpush3.bf16.msra.mxu1 %v6293_v30 }
  0x10   :  { %6298 = vmatprep.subr.bf16.mxu1 %v6297_v33 }
  0x11   :  { %6276 = vmatpush3.bf16.msra.mxu0 %v6273_v12 }
  0x12   :  { %6278 = vmatprep.subr.bf16.mxu0 %v6277_v15 }
  0x13   :  { %6300 = vmatpush3.bf16.msra.mxu1 %v6297_v33 }
  0x15   :  { %6280 = vmatpush3.bf16.msra.mxu0 %v6277_v15 }
  0x16   :  { %6282 = vmatprep.subr.bf16.mxu0 %v6281_v18 }
  0x19   :  { %6284 = vmatpush3.bf16.msra.mxu0 %v6281_v18 }
  0x1a   :  { %6286 = vmatprep.subr.bf16.mxu0 %v6285_v21 }
  0x1d   :  { %6288 = vmatpush3.bf16.msra.mxu0 %v6285_v21 }
  0x1e   :  { %6290 = vmatprep.subr.bf16.mxu0 %v6289_v24 }
  0x21   :  { %6292 = vmatpush3.bf16.msra.mxu0 %v6289_v24 }
  0x24   :  { %5868 = vmatmul.mubr.f32.vlgmr.msra.gmra.mrb[0].mxu0 %v7074_v25 }
  0x25   :  { %5870 = vmatprep.mubr.f32.mxu0 %v7079_v26 }
  0x28   :  { %5871 = vmatmul.mubr.f32.gmra.mrb[2].mxu0 %v7086_v27 }
  0xf7   :  { %v5869_v35 = vpop.f32.mrb[0].mxu0 }
  0xf8   :  { %v7104_v36 = vadd.f32 %v5869_v35, %v5394_v34  ;;  %v144_v37 = vpop.f32.mrb[1].mxu0 }
  0xf9   :  { %v7106_v38 = vadd.f32 %v5394_v34, %v144_v37 }
  0xfa   :  { %v7109_v39 = vmul.f32 0.70710677, %v7104_v36 }
  0xfb   :  { %v7112_v40 = vmul.f32 0.70710677, %v7106_v38  ;;  %v5872_v41 = vpop.f32.mrb[2].mxu0 }
  0xfc   :  { %v180_v42 = vand.u32 2147483647, %v7109_v39  ;;  %v7115_v43 = vadd.f32 %v5872_v41, %v5394_v34  ;;  %v154_v44 = vpop.f32.mrb[3].mxu0  ;;  %vm172_vm0 = vcmp.ge.f32.partialorder %v7109_v39, 0.0 }
  0xfd   :  { %v179_v45 = vand.u32 2147483647, %v7112_v40  ;;  %v7118_v46 = vadd.f32 %v5394_v34, %v154_v44  ;;  %vm171_vm1 = vcmp.ge.f32.partialorder %v7112_v40, 0.0 }
  0xfe   :  { %v184_v47 = vmul.f32 0.3275911, %v180_v42  ;;  %v7121_v49 = vmul.f32 0.70710677, %v7115_v43  ;;  %v236_v58 = vsub.f32 0.0, %v180_v42 }
  0xff   :  { %v183_v48 = vmul.f32 0.3275911, %v179_v45  ;;  %v7124_v51 = vmul.f32 0.70710677, %v7118_v46  ;;  %v235_v60 = vsub.f32 0.0, %v179_v45 }
 0x100   :  { %v188_v50 = vadd.f32 1.0, %v184_v47  ;;  %v182_v53 = vand.u32 2147483647, %v7121_v49  ;;  %v240_v62 = vmul.f32 %v236_v58, %v180_v42  ;;  %vm174_vm2 = vcmp.ge.f32.partialorder %v7121_v49, 0.0 }
 0x101   :  { %v187_v52 = vadd.f32 1.0, %v183_v48  ;;  %v181_v55 = vand.u32 2147483647, %v7124_v51  ;;  %v239_v1 = vmul.f32 %v235_v60, %v179_v45  ;;  %vm173_vm3 = vcmp.ge.f32.partialorder %v7124_v51, 0.0 }
 0x102   :  { %6723 = vrcp.f32 %v188_v50  ;;  %v186_v54 = vmul.f32 0.3275911, %v182_v53  ;;  %v238_v2 = vsub.f32 0.0, %v182_v53  ;;  %v245_v5 = vmul.f32 1.442695, %v240_v62 }
 0x103   :  { %6725 = vrcp.f32 %v187_v52  ;;  %v185_v57 = vmul.f32 0.3275911, %v181_v55  ;;  %v237_v6 = vsub.f32 0.0, %v181_v55  ;;  %v243_v11 = vmul.f32 1.442695, %v239_v1 }
 0x104   :  { %v190_v56 = vadd.f32 1.0, %v186_v54  ;;  %v242_v12 = vmul.f32 %v238_v2, %v182_v53  ;;  %v6923_v62 = vmov -1.0   ;;  %v165_v51 = vmul.f32 0.5, %v7118_v46 }
 0x105   :  { %v189_v59 = vadd.f32 1.0, %v185_v57  ;;  %v241_v18 = vmul.f32 %v237_v6, %v181_v55  ;;  %v164_v6 = vmul.f32 0.5, %v7104_v36 }
 0x106   :  { %6727 = vrcp.f32 %v190_v56  ;;  %v249_v21 = vmul.f32 1.442695, %v242_v12 }
 0x107   :  { %6729 = vrcp.f32 %v189_v59  ;;  %v247_v31 = vmul.f32 1.442695, %v241_v18 }
 0x108   :  { %6731 = vpow2.f32 %v245_v5 }
 0x109   :  { %6733 = vpow2.f32 %v243_v11  ;;  %v163_v11 = vmul.f32 0.5, %v7106_v38 }
 0x10a   :  { %6735 = vpow2.f32 %v249_v21  ;;  %v166_v21 = vmul.f32 0.5, %v7115_v43  ;;  %v5395_v43 = vld [vmem:[%s7832_s4] ss:$0 sm:$0xff] }
 0x10b   :  { %6737 = vpow2.f32 %v247_v31 }
 0x10c   :  { %v6724_v61 = vpop.eup %6723 }
 0x10d   :  { %v6726_v63 = vpop.eup %6725  ;;  %v200_v0 = vmul.f32 1.0614054, %v6724_v61 }
 0x10e   :  { %v199_v3 = vmul.f32 1.0614054, %v6726_v63 }
 0x10f   :  { %v204_v4 = vadd.f32 -1.4531521, %v200_v0  ;;  %v176_v0 = vsel %vm172_vm0, 1.0, %v6923_v62  ;;  %vm5377_vm0 = vcmask 1046528  }
 0x110   :  { %v203_v7 = vadd.f32 -1.4531521, %v199_v3  ;;  %v6728_v8 = vpop.eup %6727 }
 0x111   :  { %v208_v10 = vmul.f32 %v6724_v61, %v204_v4  ;;  %v202_v13 = vmul.f32 1.0614054, %v6728_v8  ;;  %v6730_v16 = vpop.eup %6729  ;;  %v175_v4 = vsel %vm171_vm1, 1.0, %v6923_v62 }
 0x112   :  { %v207_v14 = vmul.f32 %v6726_v63, %v203_v7  ;;  %v201_v22 = vmul.f32 1.0614054, %v6730_v16  ;;  %v6732_v50 = vpop.eup %6731 }
 0x113   :  { %v212_v15 = vadd.f32 1.4214138, %v208_v10  ;;  %v206_v17 = vadd.f32 -1.4531521, %v202_v13  ;;  %v6734_v54 = vpop.eup %6733 }
 0x114   :  { %v211_v19 = vadd.f32 1.4214138, %v207_v14  ;;  %v205_v29 = vadd.f32 -1.4531521, %v201_v22 }
 0x115   :  { %v216_v20 = vmul.f32 %v6724_v61, %v212_v15  ;;  %v210_v23 = vmul.f32 %v6728_v8, %v206_v17 }
 0x116   :  { %v215_v24 = vmul.f32 %v6726_v63, %v211_v19  ;;  %v209_v34 = vmul.f32 %v6730_v16, %v205_v29 }
 0x117   :  { %v220_v28 = vadd.f32 -0.28449672, %v216_v20  ;;  %v214_v30 = vadd.f32 1.4214138, %v210_v23  ;;  %v177_v20 = vsel %vm173_vm3, 1.0, %v6923_v62 }
 0x118   :  { %v219_v32 = vadd.f32 -0.28449672, %v215_v24  ;;  %v213_v42 = vadd.f32 1.4214138, %v209_v34 }
 0x119   :  { %v224_v33 = vmul.f32 %v6724_v61, %v220_v28  ;;  %v218_v35 = vmul.f32 %v6728_v8, %v214_v30 }
 0x11a   :  { %v223_v37 = vmul.f32 %v6726_v63, %v219_v32  ;;  %v217_v48 = vmul.f32 %v6730_v16, %v213_v42 }
 0x11b   :  { %v228_v41 = vadd.f32 0.2548296, %v224_v33  ;;  %v222_v44 = vadd.f32 -0.28449672, %v218_v35 }
 0x11c   :  { %v227_v45 = vadd.f32 0.2548296, %v223_v37  ;;  %v221_v56 = vadd.f32 -0.28449672, %v217_v48 }
 0x11d   :  { %v232_v47 = vmul.f32 %v6724_v61, %v228_v41  ;;  %v226_v52 = vmul.f32 %v6728_v8, %v222_v44  ;;  %v6736_v61 = vpop.eup %6735 }
 0x11e   :  { %v231_v53 = vmul.f32 %v6726_v63, %v227_v45  ;;  %v225_v60 = vmul.f32 %v6730_v16, %v221_v56  ;;  %v6738_v10 = vpop.eup %6737 }
 0x11f   :  { %v252_v55 = vmul.f32 %v6732_v50, %v232_v47  ;;  %v230_v57 = vadd.f32 0.2548296, %v226_v52 }
 0x120   :  { %v251_v58 = vmul.f32 %v6734_v54, %v231_v53  ;;  %v229_v5 = vadd.f32 0.2548296, %v225_v60 }
 0x121   :  { %v256_v59 = vsub.f32 1.0, %v252_v55  ;;  %v234_v1 = vmul.f32 %v6728_v8, %v230_v57  ;;  %v178_v8 = vsel %vm174_vm2, 1.0, %v6923_v62 }
 0x122   :  { %v255_v2 = vsub.f32 1.0, %v251_v58  ;;  %v233_v40 = vmul.f32 %v6730_v16, %v229_v5 }
 0x123   :  { %v260_v3 = vmul.f32 %v256_v59, %v176_v0  ;;  %v254_v63 = vmul.f32 %v6736_v61, %v234_v1 }
 0x124   :  { %v259_v39 = vmul.f32 %v255_v2, %v175_v4  ;;  %v253_v15 = vmul.f32 %v6738_v10, %v233_v40 }
 0x125   :  { %v264_v7 = vadd.f32 1.0, %v260_v3  ;;  %v258_v12 = vsub.f32 1.0, %v254_v63 }
 0x126   :  { %v263_v13 = vadd.f32 1.0, %v259_v39  ;;  %v257_v19 = vsub.f32 1.0, %v253_v15 }
 0x127   :  { %v268_v14 = vmul.f32 %v264_v7, %v164_v6  ;;  %v262_v17 = vmul.f32 %v258_v12, %v178_v8 }
 0x128   :  { %v267_v18 = vmul.f32 %v263_v13, %v163_v11  ;;  %v261_v38 = vmul.f32 %v257_v19, %v177_v20 }
 0x129   :  { %v266_v49 = vadd.f32 1.0, %v262_v17  ;;  %v7138_v16 = vadd.f32 %v268_v14, %v7074_v25 }
 0x12a   :  { %v7135_v36 = vadd.f32 %v267_v18, %v7038_v9  ;;  %v265_v22 = vadd.f32 1.0, %v261_v38 }
 0x12b   :  { %v270_v23 = vmul.f32 %v266_v49, %v166_v21 }
 0x12c   :  { %5881 = vmatprep.mubr.msk.f32.mxu1 %vm291_vm4, %v7135_v36  ;;  %v269_v24 = vmul.f32 %v265_v22, %v165_v51 }
 0x12d   :  { %5882 = vmatmul.mubr.msk.f32.vlgmr.msra.gmra.mrb[0].mxu1 %vm291_vm4, %v7138_v16  ;;  %v7150_v25 = vadd.f32 %v270_v23, %v7086_v27 }
 0x12e   :  { %v7147_v9 = vadd.f32 %v269_v24, %v7079_v26 }
 0x130   :  { %5884 = vmatprep.mubr.msk.f32.mxu1 %vm291_vm4, %v7147_v9 }
 0x131   :  { %5885 = vmatmul.mubr.msk.f32.gmra.mrb[2].mxu1 %vm291_vm4, %v7150_v25 }
 0x200   :  { %v5883_v46 = vpop.f32.mrb[0].mxu1 }
 0x201   :  { %v7159_v28 = vadd.f32 %v5883_v46, %v5395_v43  ;;  %v370_v29 = vpop.f32.mrb[1].mxu1 }
 0x202   :  { %v7161_v26 = vadd.f32 %v5395_v43, %v370_v29 }
 0x204   :  { %5891 = vmatprep.mubr.msk.f32.mxu1 %vm395_vm5, %v7161_v26  ;;  %v7167_v27 = vpack.i.bf16 %v7159_v28, %v7161_v26  ;;  %v5886_v30 = vpop.f32.mrb[2].mxu1 }
 0x205   :  { %v7171_v31 = vadd.f32 %v5886_v30, %v5395_v43  ;;  %v380_v32 = vpop.f32.mrb[3].mxu1 }
 0x206   :  { %6564 = vrot.lane.b32.xlu0 %v7167_v27, %s6924_s22  ;;  %v7173_v33 = vadd.f32 %v5395_v43, %v380_v32 }
 0x208   :  { %v7177_v34 = vpack.i.bf16 %v7171_v31, %v7173_v33 }
 0x20a   :  { %6569 = vrot.lane.b32.xlu0 %v7177_v34, %s6924_s22 }
 0x278   :  { %v6565_v35 = vpop.permute.xlu0 %6564 }
 0x279   :  { %v6567_v37 = vunpack.i.h.bf16 %v6565_v35  ;;  %v6566_v41 = vunpack.i.l.bf16 %v6565_v35 }
 0x27b   :  { %v6301_v44 = vpack.c.bf16 %v6567_v37, %v6566_v41 }
 0x27c   :  { %v6570_v45 = vpop.permute.xlu0 %6569 }
 0x27d   :  { %6303 = vmatprep.subr.msk.bf16.mxu1 %vm7183_vm6, %v6301_v44  ;;  %v6572_v47 = vunpack.i.h.bf16 %v6570_v45  ;;  %v6571_v48 = vunpack.i.l.bf16 %v6570_v45 }
 0x27e   :  { %6306 = vmatpush3.bf16.xpose.msk.msra.mxu1 %vm7183_vm6, %v6301_v44 }
 0x27f   :  { %v6307_v50 = vpack.c.bf16 %v6572_v47, %v6571_v48 }
 0x281   :  { %6309 = vmatprep.subr.msk.bf16.mxu1 %vm7183_vm6, %v6307_v50 }
 0x285   :  { %5892 = vmatmul.mubr.msk.f32.vlgmr.msra.gmra.mrb[4].mxu1 %vm395_vm5, %v7159_v28 }
 0x286   :  { %6312 = vmatpush3.bf16.xpose.msk.msra.mxu1 %vm7183_vm6, %v6307_v50  ;;  %5898 = vmatprep.mubr.msk.f32.mxu1 %vm395_vm5, %v7173_v33  ;;  %v280_v50 = vld [vmem:[%s7833_s5] sm:$0xff] }
 0x28d   :  { %5899 = vmatmul.mubr.msk.f32.vlgmr.msra.gmra.mrb[6].mxu1 %vm395_vm5, %v7171_v31 }
 0x358   :  { %v5893_v52 = vpop.f32.mrb[4].mxu1 }
 0x359   :  { %v470_v53 = vpop.f32.mrb[5].mxu1  ;;  %v572_v55 = vsel %vm568_vm7, %v5893_v52, -inf }
 0x35a   :  { %v569_v54 = vsel %vm568_vm7, %v470_v53, -inf }
 0x35b   :  { %570 = vmax.xlane.f32.xlu1 %v569_v54 }
 0x35f   :  { %573 = vmax.xlane.f32.xlu1 %v572_v55 }
 0x360   :  { %v5900_v56 = vpop.f32.mrb[6].mxu1 }
 0x361   :  { %v559_v57 = vpop.f32.mrb[7].mxu1  ;;  %v578_v58 = vsel %vm568_vm7, %v5900_v56, -inf }
 0x362   :  { %v575_v59 = vsel %vm568_vm7, %v559_v57, -inf }
 0x363   :  { %579 = vmax.xlane.f32.xlu1 %v578_v58  ;;  %576 = vmax.xlane.f32.xlu0 %v575_v59 }
 0x379   :  { %6579 = vrot.lane.b32.xlu0 %v7177_v34, %s6925_s23 }
 0x37d   :  { %981 = vrot.lane.b32.xlu0 %v7173_v33, %s6926_s24 }
 0x3e8   :  { %v571_v60 = vpop.xlane.xlu1 %570 }
 0x3e9   :  { %v581_v62 = vsub.f32 %v470_v53, %v571_v60 }
 0x3eb   :  { %v585_v2 = vmul.f32 1.442695, %v581_v62 }
 0x3ec   :  { %v574_v0 = vpop.xlane.xlu1 %573 }
 0x3ed   :  { %v582_v1 = vsub.f32 %v5893_v52, %v574_v0 }
 0x3ef   :  { %v587_v61 = vmul.f32 1.442695, %v582_v1 }
 0x3f0   :  { %v580_v3 = vpop.xlane.xlu1 %579  ;;  %v577_v4 = vpop.xlane.xlu0 %576 }
 0x3f1   :  { %6739 = vpow2.f32 %v587_v61  ;;  %v584_v5 = vsub.f32 %v5900_v56, %v580_v3  ;;  %v583_v39 = vsub.f32 %v559_v57, %v577_v4 }
 0x3f2   :  { %6741 = vpow2.f32 %v585_v2 }
 0x3f3   :  { %v591_v63 = vmul.f32 1.442695, %v584_v5  ;;  %v589_v6 = vmul.f32 1.442695, %v583_v39 }
 0x3f4   :  { %v6580_v49 = vpop.permute.xlu0 %6579 }
 0x3f5   :  { %6743 = vpow2.f32 %v591_v63  ;;  %v6582_v51 = vunpack.i.h.bf16 %v6580_v49  ;;  %v6581_v22 = vunpack.i.l.bf16 %v6580_v49 }
 0x3f6   :  { %6745 = vpow2.f32 %v589_v6 }
 0x3f7   :  { %v6317_v35 = vpack.c.bf16 %v6582_v51, %v6581_v22 }
 0x3f8   :  { %v982_v0 = vpop.permute.xlu0 %981 }
 0x3fb   :  { %v6740_v7 = vpop.eup %6739 }
 0x3fc   :  { %v596_v40 = vsel %vm568_vm7, %v6740_v7, 0.0  ;;  %v6742_v10 = vpop.eup %6741 }
 0x3fd   :  { %597 = vadd.xlane.f32.xlu1 %v596_v40  ;;  %v593_v11 = vsel %vm568_vm7, %v6742_v10, 0.0 }
 0x3ff   :  { %v6744_v12 = vpop.eup %6743 }
 0x400   :  { %v602_v13 = vsel %vm568_vm7, %v6744_v12, 0.0  ;;  %v6746_v14 = vpop.eup %6745 }
 0x401   :  { %594 = vadd.xlane.f32.xlu1 %v593_v11  ;;  %v599_v8 = vsel %vm568_vm7, %v6746_v14, 0.0 }
 0x405   :  { %603 = vadd.xlane.f32.xlu1 %v602_v13 }
 0x409   :  { %600 = vadd.xlane.f32.xlu1 %v599_v8 }
 0x41a   :  { %6574 = vrot.lane.b32.xlu1 %v7167_v27, %s6925_s23 }
 0x41e   :  { %6584 = vrot.lane.b32.xlu1 %v7167_v27, %s6927_s25 }
 0x422   :  { %6589 = vrot.lane.b32.xlu1 %v7177_v34, %s6927_s25 }
 0x426   :  { %890 = vrot.lane.b32.xlu1 %v7161_v26, %s6926_s24 }
 0x42a   :  { %892 = vrot.lane.b32.xlu1 %v7159_v28, %s6926_s24 }
 0x42e   :  { %983 = vrot.lane.b32.xlu1 %v7171_v31, %s6926_s24 }
 0x48a   :  { %v598_v15 = vpop.xlane.xlu1 %597 }
 0x48e   :  { %v595_v17 = vpop.xlane.xlu1 %594 }
 0x48f   :  { %6747 = vrcp.f32 %v595_v17 }
 0x490   :  { %6749 = vrcp.f32 %v598_v15 }
 0x492   :  { %v604_v18 = vpop.xlane.xlu1 %603 }
 0x496   :  { %v601_v19 = vpop.xlane.xlu1 %600 }
 0x497   :  { %6751 = vrcp.f32 %v601_v19 }
 0x498   :  { %6753 = vrcp.f32 %v604_v18 }
 0x499   :  { %v6748_v20 = vpop.eup %6747 }
 0x49a   :  { %v6575_v38 = vpop.permute.xlu1 %6574  ;;  %v609_v21 = vmul.f32 %v6748_v20, %v6742_v10  ;;  %v6750_v46 = vpop.eup %6749 }
 0x49b   :  { %v6577_v23 = vunpack.i.h.bf16 %v6575_v38  ;;  %v6576_v24 = vunpack.i.l.bf16 %v6575_v38  ;;  %v610_v44 = vmul.f32 %v6750_v46, %v6740_v7 }
 0x49c   :  { %5905 = vmatprep.mubr.msk.f32.mxu1 %vm568_vm7, %v609_v21 }
 0x49d   :  { %v6313_v43 = vpack.c.bf16 %v6577_v23, %v6576_v24 }
 0x49e   :  { %v6585_v29 = vpop.permute.xlu1 %6584 }
 0x49f   :  { %v6587_v30 = vunpack.i.h.bf16 %v6585_v29  ;;  %v6586_v32 = vunpack.i.l.bf16 %v6585_v29  ;;  %6314 = vmatprep.subr.bf16.mxu1 %v6313_v43 }
 0x4a0   :  { %6316 = vmatpush3.bf16.msra.mxu1 %v6313_v43 }
 0x4a1   :  { %v6752_v37 = vpop.eup %6751  ;;  %v6321_v41 = vpack.c.bf16 %v6587_v30, %v6586_v32  ;;  %6318 = vmatprep.subr.bf16.mxu1 %v6317_v35  ;;  %v281_v30 = vld [vmem:[%s7833_s5 + $0x8] sm:$0xff] }
 0x4a2   :  { %v6754_v45 = vpop.eup %6753  ;;  %v6590_v47 = vpop.permute.xlu1 %6589  ;;  %v611_v48 = vmul.f32 %v6752_v37, %v6746_v14 }
 0x4a3   :  { %v6592_v52 = vunpack.i.h.bf16 %v6590_v47  ;;  %v6591_v53 = vunpack.i.l.bf16 %v6590_v47  ;;  %5906 = vmatmul.mubr.msk.f32.vlgmr.msra.gmra.mrb[8].mxu1 %vm568_vm7, %v610_v44  ;;  %6323 = vmatprep.subr.msk.bf16.mxu0 %vm7183_vm6, %v6321_v41  ;;  %v612_v54 = vmul.f32 %v6754_v45, %v6744_v12 }
 0x4a4   :  { %6320 = vmatpush3.bf16.msra.mxu1 %v6317_v35  ;;  %5912 = vmatprep.mubr.msk.f32.mxu1 %vm568_vm7, %v611_v48 }
 0x4a5   :  { %6326 = vmatpush3.bf16.xpose.msk.msra.mxu0 %vm7183_vm6, %v6321_v41  ;;  %5915 = vmatprep.subr.mxu1 %v280_v50  ;;  %v6327_v56 = vpack.c.bf16 %v6592_v52, %v6591_v53 }
 0x4a6   :  { %v891_v55 = vpop.permute.xlu1 %890 }
 0x4a7   :  { %5913 = vmatmul.mubr.msk.f32.vlgmr.msra.gmra.mrb[10].mxu1 %vm568_vm7, %v612_v54  ;;  %5927 = vmatprep.mubr.msk.f32.mxu0 %vm395_vm5, %v891_v55 }
 0x4a8   :  { %5916 = vmatpush3.msra.mxu1 %v280_v50 }
 0x4a9   :  { %6329 = vmatprep.subr.msk.bf16.mxu1 %vm7183_vm6, %v6327_v56 }
 0x4aa   :  { %v893_v57 = vpop.permute.xlu1 %892 }
 0x4ac   :  { %5928 = vmatmul.mubr.msk.f32.vlgmr.msra.gmra.mrb[4].mxu0 %vm395_vm5, %v893_v57 }
 0x4ae   :  { %v984_v2 = vpop.permute.xlu1 %983 }
 0x576   :  { %v5907_v58 = vpop.f32.mrb[8].mxu1 }
 0x577   :  { %v691_v59 = vpop.f32.mrb[9].mxu1 }
 0x578   :  { %5917 = vmatprep.mubr.msk.f32.mxu1 %vm395_vm5, %v691_v59 }
 0x579   :  { %5918 = vmatmul.mubr.msk.f32.vlgmr.msra.gmra.mrb[12].mxu1 %vm395_vm5, %v5907_v58 }
 0x57a   :  { %6332 = vmatpush3.bf16.xpose.msk.msra.mxu1 %vm7183_vm6, %v6327_v56  ;;  %v5914_v60 = vpop.f32.mrb[10].mxu1 }
 0x57b   :  { %v778_v62 = vpop.f32.mrb[11].mxu1  ;;  %5951 = vmatprep.subr.mxu1 %v281_v30 }
 0x57c   :  { %5920 = vmatprep.mubr.msk.f32.mxu1 %vm395_vm5, %v778_v62 }
 0x57d   :  { %5921 = vmatmul.mubr.msk.f32.gmra.mrb[14].mxu1 %vm395_vm5, %v5914_v60 }
 0x57e   :  { %5934 = vmatprep.mubr.msk.f32.mxu1 %vm395_vm5, %v982_v0 }
 0x57f   :  { %v5929_v1 = vpop.f32.mrb[4].mxu0 }
 0x580   :  { %v972_v61 = vpop.f32.mrb[5].mxu0  ;;  %v1075_v3 = vsel %vm568_vm7, %v5929_v1, -inf }
 0x581   :  { %1076 = vmax.xlane.f32.xlu1 %v1075_v3  ;;  %v1072_v4 = vsel %vm568_vm7, %v972_v61, -inf  ;;  %5935 = vmatmul.mubr.msk.f32.vlgmr.msra.gmra.mrb[16].mxu1 %vm395_vm5, %v984_v2 }
 0x582   :  { %1073 = vmax.xlane.f32.xlu0 %v1072_v4  ;;  %5952 = vmatpush3.msra.mxu1 %v281_v30 }
 0x60e   :  { %v1077_v40 = vpop.xlane.xlu1 %1076 }
 0x60f   :  { %v1074_v5 = vpop.xlane.xlu0 %1073  ;;  %v1085_v10 = vsub.f32 %v5929_v1, %v1077_v40 }
 0x610   :  { %v1084_v63 = vsub.f32 %v972_v61, %v1074_v5 }
 0x611   :  { %v1090_v11 = vmul.f32 1.442695, %v1085_v10 }
 0x612   :  { %v1088_v39 = vmul.f32 1.442695, %v1084_v63 }
 0x614   :  { %6755 = vpow2.f32 %v1088_v39 }
 0x615   :  { %6757 = vpow2.f32 %v1090_v11 }
 0x61e   :  { %v6756_v6 = vpop.eup %6755 }
 0x61f   :  { %v1096_v7 = vsel %vm568_vm7, %v6756_v6, 0.0  ;;  %v6758_v15 = vpop.eup %6757 }
 0x620   :  { %1097 = vadd.xlane.f32.xlu1 %v1096_v7  ;;  %v1099_v17 = vsel %vm568_vm7, %v6758_v15, 0.0 }
 0x654   :  { %v5936_v12 = vpop.f32.mrb[16].mxu1 }
 0x655   :  { %v1063_v13 = vpop.f32.mrb[17].mxu1  ;;  %v1081_v8 = vsel %vm568_vm7, %v5936_v12, -inf }
 0x656   :  { %v1078_v14 = vsel %vm568_vm7, %v1063_v13, -inf }
 0x657   :  { %1079 = vmax.xlane.f32.xlu0 %v1078_v14 }
 0x65b   :  { %1082 = vmax.xlane.f32.xlu0 %v1081_v8 }
 0x65f   :  { %1100 = vadd.xlane.f32.xlu0 %v1099_v17 }
 0x6ad   :  { %v1098_v18 = vpop.xlane.xlu1 %1097 }
 0x6ae   :  { %6759 = vrcp.f32 %v1098_v18 }
 0x6b8   :  { %v6760_v19 = vpop.eup %6759 }
 0x6b9   :  { %v1112_v49 = vmul.f32 %v6760_v19, %v6756_v6 }
 0x6bb   :  { %5941 = vmatprep.mubr.msk.f32.mxu0 %vm568_vm7, %v1112_v49 }
 0x6e4   :  { %v1080_v20 = vpop.xlane.xlu0 %1079 }
 0x6e5   :  { %v1086_v38 = vsub.f32 %v1063_v13, %v1080_v20 }
 0x6e7   :  { %v1092_v21 = vmul.f32 1.442695, %v1086_v38 }
 0x6e8   :  { %v1083_v51 = vpop.xlane.xlu0 %1082 }
 0x6e9   :  { %6761 = vpow2.f32 %v1092_v21  ;;  %v1087_v22 = vsub.f32 %v5936_v12, %v1083_v51 }
 0x6eb   :  { %v1094_v23 = vmul.f32 1.442695, %v1087_v22 }
 0x6ec   :  { %v1101_v32 = vpop.xlane.xlu0 %1100 }
 0x6ed   :  { %6763 = vpow2.f32 %v1094_v23 }
 0x6ee   :  { %6765 = vrcp.f32 %v1101_v32 }
 0x6f3   :  { %v6762_v24 = vpop.eup %6761 }
 0x6f4   :  { %v1102_v43 = vsel %vm568_vm7, %v6762_v24, 0.0 }
 0x6f5   :  { %1103 = vadd.xlane.f32.xlu1 %v1102_v43 }
 0x6f7   :  { %v6764_v46 = vpop.eup %6763 }
 0x6f8   :  { %v1105_v29 = vsel %vm568_vm7, %v6764_v46, 0.0  ;;  %v6766_v48 = vpop.eup %6765 }
 0x6f9   :  { %1106 = vadd.xlane.f32.xlu0 %v1105_v29  ;;  %v1113_v59 = vmul.f32 %v6766_v48, %v6758_v15 }
 0x706   :  { %6594 = vrot.lane.b32.xlu1 %v7167_v27, %s6928_s27 }
 0x70a   :  { %6604 = vrot.lane.b32.xlu1 %v7167_v27, %s6929_s28 }
 0x70e   :  { %6609 = vrot.lane.b32.xlu1 %v7177_v34, %s6929_s28 }
 0x70f   :  { %6599 = vrot.lane.b32.xlu0 %v7177_v34, %s6928_s27 }
 0x712   :  { %1393 = vrot.lane.b32.xlu1 %v7159_v28, %s6930_s16 }
 0x713   :  { %1391 = vrot.lane.b32.xlu0 %v7161_v26, %s6930_s16 }
 0x716   :  { %1484 = vrot.lane.b32.xlu1 %v7171_v31, %s6930_s16 }
 0x717   :  { %1482 = vrot.lane.b32.xlu0 %v7173_v33, %s6930_s16 }
 0x782   :  { %v1104_v35 = vpop.xlane.xlu1 %1103 }
 0x783   :  { %6767 = vrcp.f32 %v1104_v35 }
 0x786   :  { %v6595_v37 = vpop.permute.xlu1 %6594  ;;  %v1107_v41 = vpop.xlane.xlu0 %1106 }
 0x787   :  { %v6597_v44 = vunpack.i.h.bf16 %v6595_v37  ;;  %v6596_v45 = vunpack.i.l.bf16 %v6595_v37  ;;  %6769 = vrcp.f32 %v1107_v41 }
 0x789   :  { %v6333_v47 = vpack.c.bf16 %v6597_v44, %v6596_v45 }
 0x78a   :  { %v6605_v50 = vpop.permute.xlu1 %6604  ;;  %v6600_v52 = vpop.permute.xlu0 %6599 }
 0x78b   :  { %v6607_v53 = vunpack.i.h.bf16 %v6605_v50  ;;  %v6606_v54 = vunpack.i.l.bf16 %v6605_v50  ;;  %v6602_v55 = vunpack.i.h.bf16 %v6600_v52  ;;  %v6601_v56 = vunpack.i.l.bf16 %v6600_v52  ;;  %6334 = vmatprep.subr.bf16.mxu0 %v6333_v47 }
 0x78c   :  { %6336 = vmatpush3.bf16.msra.mxu0 %v6333_v47 }
 0x78d   :  { %v6768_v57 = vpop.eup %6767  ;;  %v6341_v58 = vpack.c.bf16 %v6607_v53, %v6606_v54  ;;  %v6337_v60 = vpack.c.bf16 %v6602_v55, %v6601_v56 }
 0x78e   :  { %v1114_v62 = vmul.f32 %v6768_v57, %v6762_v24  ;;  %v6610_v2 = vpop.permute.xlu1 %6609  ;;  %v1392_v6 = vpop.permute.xlu0 %1391 }
 0x78f   :  { %5942 = vmatmul.mubr.msk.f32.vlgmr.msra.gmra.mrb[6].mxu0 %vm568_vm7, %v1113_v59  ;;  %6338 = vmatprep.subr.bf16.mxu0 %v6337_v60  ;;  %v6612_v61 = vunpack.i.h.bf16 %v6610_v2  ;;  %v6611_v3 = vunpack.i.l.bf16 %v6610_v2 }
 0x790   :  { %6343 = vmatprep.subr.msk.bf16.mxu1 %vm7183_vm6, %v6341_v58  ;;  %6340 = vmatpush3.bf16.msra.mxu0 %v6337_v60 }
 0x791   :  { %v6770_v0 = vpop.eup %6769  ;;  %5948 = vmatprep.mubr.msk.f32.mxu0 %vm568_vm7, %v1114_v62  ;;  %v6347_v63 = vpack.c.bf16 %v6612_v61, %v6611_v3 }
 0x792   :  { %v1115_v1 = vmul.f32 %v6770_v0, %v6764_v46  ;;  %v1394_v40 = vpop.permute.xlu1 %1393  ;;  %v1483_v10 = vpop.permute.xlu0 %1482 }
 0x794   :  { %5949 = vmatmul.mubr.msk.f32.vlgmr.msra.gmra.mrb[8].mxu0 %vm568_vm7, %v1115_v1 }
 0x796   :  { %v1485_v11 = vpop.permute.xlu1 %1484 }
 0x862   :  { %v5943_v4 = vpop.f32.mrb[6].mxu0 }
 0x863   :  { %v1194_v5 = vpop.f32.mrb[7].mxu0 }
 0x864   :  { %5953 = vmatprep.mubr.msk.f32.mxu1 %vm395_vm5, %v1194_v5 }
 0x865   :  { %5954 = vmatmul.mubr.msk.f32.vlgmr.msra.gmra.mrb[12].mxu1 %vm395_vm5, %v5943_v4 }
 0x866   :  { %6346 = vmatpush3.bf16.xpose.msk.msra.mxu1 %vm7183_vm6, %v6341_v58 }
 0x867   :  { %6349 = vmatprep.subr.msk.bf16.mxu1 %vm7183_vm6, %v6347_v63  ;;  %v5950_v39 = vpop.f32.mrb[8].mxu0 }
 0x868   :  { %v1281_v7 = vpop.f32.mrb[9].mxu0 }
 0x869   :  { %5956 = vmatprep.mubr.msk.f32.mxu1 %vm395_vm5, %v1281_v7 }
 0x86a   :  { %5957 = vmatmul.mubr.msk.f32.gmra.mrb[14].mxu1 %vm395_vm5, %v5950_v39 }
 0x86b   :  { %5963 = vmatprep.mubr.msk.f32.mxu1 %vm395_vm5, %v1392_v6  ;;  %v282_v6 = vld [vmem:[%s7833_s5 + $0x10] sm:$0xff] }
 0x86e   :  { %5964 = vmatmul.mubr.msk.f32.vlgmr.msra.gmra.mrb[18].mxu1 %vm395_vm5, %v1394_v40 }
 0x86f   :  { %6352 = vmatpush3.bf16.xpose.msk.msra.mxu1 %vm7183_vm6, %v6347_v63  ;;  %5970 = vmatprep.mubr.msk.f32.mxu1 %vm395_vm5, %v1483_v10 }
 0x876   :  { %5971 = vmatmul.mubr.msk.f32.vlgmr.msra.gmra.mrb[20].mxu1 %vm395_vm5, %v1485_v11 }
 0x941   :  { %v5965_v12 = vpop.f32.mrb[18].mxu1 }
 0x942   :  { %v1473_v13 = vpop.f32.mrb[19].mxu1  ;;  %v1576_v14 = vsel %vm568_vm7, %v5965_v12, -inf }
 0x943   :  { %1577 = vmax.xlane.f32.xlu1 %v1576_v14  ;;  %v1573_v8 = vsel %vm568_vm7, %v1473_v13, -inf }
 0x944   :  { %1574 = vmax.xlane.f32.xlu0 %v1573_v8 }
 0x949   :  { %v5972_v15 = vpop.f32.mrb[20].mxu1 }
 0x94a   :  { %v1564_v17 = vpop.f32.mrb[21].mxu1  ;;  %v1582_v19 = vsel %vm568_vm7, %v5972_v15, -inf }
 0x94b   :  { %v1579_v18 = vsel %vm568_vm7, %v1564_v17, -inf }
 0x94c   :  { %1580 = vmax.xlane.f32.xlu0 %v1579_v18 }
 0x950   :  { %1583 = vmax.xlane.f32.xlu0 %v1582_v19 }
 0x9d0   :  { %v1578_v49 = vpop.xlane.xlu1 %1577 }
 0x9d1   :  { %v1586_v20 = vsub.f32 %v5965_v12, %v1578_v49  ;;  %v1575_v38 = vpop.xlane.xlu0 %1574 }
 0x9d2   :  { %v1585_v21 = vsub.f32 %v1473_v13, %v1575_v38 }
 0x9d3   :  { %v1591_v51 = vmul.f32 1.442695, %v1586_v20 }
 0x9d4   :  { %v1589_v22 = vmul.f32 1.442695, %v1585_v21 }
 0x9d5   :  { %6771 = vpow2.f32 %v1591_v51 }
 0x9d6   :  { %6773 = vpow2.f32 %v1589_v22 }
 0x9d9   :  { %v1581_v23 = vpop.xlane.xlu0 %1580 }
 0x9da   :  { %v1587_v24 = vsub.f32 %v1564_v17, %v1581_v23 }
 0x9dc   :  { %v1593_v43 = vmul.f32 1.442695, %v1587_v24 }
 0x9dd   :  { %v1584_v46 = vpop.xlane.xlu0 %1583 }
 0x9de   :  { %6775 = vpow2.f32 %v1593_v43  ;;  %v1588_v29 = vsub.f32 %v5972_v15, %v1584_v46 }
 0x9df   :  { %v6772_v30 = vpop.eup %6771 }
 0x9e0   :  { %v6774_v32 = vpop.eup %6773  ;;  %v1595_v35 = vmul.f32 1.442695, %v1588_v29  ;;  %v1600_v37 = vsel %vm568_vm7, %v6772_v30, 0.0 }
 0x9e1   :  { %1601 = vadd.xlane.f32.xlu0 %v1600_v37  ;;  %v1597_v41 = vsel %vm568_vm7, %v6774_v32, 0.0 }
 0x9e2   :  { %6777 = vpow2.f32 %v1595_v35  ;;  %1598 = vadd.xlane.f32.xlu1 %v1597_v41 }
 0x9e8   :  { %v6776_v44 = vpop.eup %6775 }
 0x9e9   :  { %v1603_v45 = vsel %vm568_vm7, %v6776_v44, 0.0 }
 0x9ea   :  { %1604 = vadd.xlane.f32.xlu1 %v1603_v45 }
 0x9ec   :  { %v6778_v47 = vpop.eup %6777 }
 0x9ed   :  { %v1606_v48 = vsel %vm568_vm7, %v6778_v47, 0.0 }
 0x9ee   :  { %1607 = vadd.xlane.f32.xlu0 %v1606_v48 }
 0x9fb   :  { %6614 = vrot.lane.b32.xlu1 %v7167_v27, %s6931_s17 }
 0x9ff   :  { %6624 = vrot.lane.b32.xlu1 %v7167_v27, %s7848_s18 }
 0xa03   :  { %6629 = vrot.lane.b32.xlu1 %v7177_v34, %s7848_s18 }
 0xa04   :  { %6619 = vrot.lane.b32.xlu0 %v7177_v34, %s6931_s17 }
 0xa07   :  { %1894 = vrot.lane.b32.xlu1 %v7159_v28, %s7846_s0 }
 0xa08   :  { %1892 = vrot.lane.b32.xlu0 %v7161_v26, %s7846_s0 }
 0xa0b   :  { %1985 = vrot.lane.b32.xlu1 %v7171_v31, %s7846_s0 }
 0xa0c   :  { %1983 = vrot.lane.b32.xlu0 %v7173_v33, %s7846_s0 }
 0xa6e   :  { %v1602_v52 = vpop.xlane.xlu0 %1601 }
 0xa6f   :  { %v1599_v50 = vpop.xlane.xlu1 %1598 }
 0xa70   :  { %6779 = vrcp.f32 %v1599_v50 }
 0xa71   :  { %6781 = vrcp.f32 %v1602_v52 }
 0xa77   :  { %v1605_v53 = vpop.xlane.xlu1 %1604 }
 0xa78   :  { %6783 = vrcp.f32 %v1605_v53 }
 0xa7a   :  { %v6780_v54 = vpop.eup %6779 }
 0xa7b   :  { %v6615_v55 = vpop.permute.xlu1 %6614  ;;  %v1608_v56 = vpop.xlane.xlu0 %1607  ;;  %v1613_v57 = vmul.f32 %v6780_v54, %v6774_v32 }
 0xa7c   :  { %v6617_v28 = vunpack.i.h.bf16 %v6615_v55  ;;  %v6616_v58 = vunpack.i.l.bf16 %v6615_v55  ;;  %6785 = vrcp.f32 %v1608_v56  ;;  %v6782_v31 = vpop.eup %6781 }
 0xa7d   :  { %5977 = vmatprep.mubr.msk.f32.mxu0 %vm568_vm7, %v1613_v57  ;;  %v1614_v3 = vmul.f32 %v6782_v31, %v6772_v30 }
 0xa7e   :  { %v6353_v26 = vpack.c.bf16 %v6617_v28, %v6616_v58 }
 0xa7f   :  { %v6625_v59 = vpop.permute.xlu1 %6624  ;;  %v6620_v60 = vpop.permute.xlu0 %6619 }
 0xa80   :  { %v6627_v33 = vunpack.i.h.bf16 %v6625_v59  ;;  %v6626_v62 = vunpack.i.l.bf16 %v6625_v59  ;;  %v6622_v0 = vunpack.i.h.bf16 %v6620_v60  ;;  %v6621_v1 = vunpack.i.l.bf16 %v6620_v60  ;;  %6354 = vmatprep.subr.bf16.mxu0 %v6353_v26 }
 0xa81   :  { %6356 = vmatpush3.bf16.msra.mxu0 %v6353_v26 }
 0xa82   :  { %v6784_v2 = vpop.eup %6783  ;;  %v6361_v61 = vpack.c.bf16 %v6627_v33, %v6626_v62  ;;  %v6357_v4 = vpack.c.bf16 %v6622_v0, %v6621_v1 }
 0xa83   :  { %v6630_v5 = vpop.permute.xlu1 %6629  ;;  %v1893_v63 = vpop.permute.xlu0 %1892  ;;  %v1615_v39 = vmul.f32 %v6784_v2, %v6776_v44 }
 0xa84   :  { %5978 = vmatmul.mubr.msk.f32.vlgmr.msra.gmra.mrb[10].mxu0 %vm568_vm7, %v1614_v3  ;;  %6358 = vmatprep.subr.bf16.mxu1 %v6357_v4  ;;  %v6632_v7 = vunpack.i.h.bf16 %v6630_v5  ;;  %v6631_v40 = vunpack.i.l.bf16 %v6630_v5 }
 0xa85   :  { %6363 = vmatprep.subr.msk.bf16.mxu0 %vm7183_vm6, %v6361_v61  ;;  %6360 = vmatpush3.bf16.msra.mxu1 %v6357_v4 }
 0xa86   :  { %v6786_v10 = vpop.eup %6785  ;;  %5984 = vmatprep.mubr.msk.f32.mxu1 %vm568_vm7, %v1615_v39  ;;  %5999 = vmatprep.mubr.msk.f32.mxu0 %vm395_vm5, %v1893_v63  ;;  %v6367_v12 = vpack.c.bf16 %v6632_v7, %v6631_v40  ;;  %v283_v40 = vld [vmem:[%s7833_s5 + $0x18] sm:$0xff] }
 0xa87   :  { %5987 = vmatprep.subr.mxu1 %v282_v6  ;;  %v1616_v11 = vmul.f32 %v6786_v10, %v6778_v47  ;;  %v1895_v13 = vpop.permute.xlu1 %1894  ;;  %v1984_v18 = vpop.permute.xlu0 %1983 }
 0xa89   :  { %5985 = vmatmul.mubr.msk.f32.vlgmr.msra.gmra.mrb[22].mxu1 %vm568_vm7, %v1616_v11 }
 0xa8a   :  { %5988 = vmatpush3.msra.mxu1 %v282_v6  ;;  %6366 = vmatpush3.bf16.xpose.msk.msra.mxu0 %vm7183_vm6, %v6361_v61 }
 0xa8b   :  { %6369 = vmatprep.subr.msk.bf16.mxu1 %vm7183_vm6, %v6367_v12  ;;  %v1986_v19 = vpop.permute.xlu1 %1985 }
 0xa91   :  { %6000 = vmatmul.mubr.msk.f32.vlgmr.msra.gmra.mrb[12].mxu0 %vm395_vm5, %v1895_v13 }
 0xb57   :  { %v5979_v14 = vpop.f32.mrb[10].mxu0 }
 0xb58   :  { %v1695_v8 = vpop.f32.mrb[11].mxu0 }
 0xb59   :  { %5989 = vmatprep.mubr.msk.f32.mxu1 %vm395_vm5, %v1695_v8 }
 0xb5a   :  { %5990 = vmatmul.mubr.msk.f32.vlgmr.msra.gmra.mrb[12].mxu1 %vm395_vm5, %v5979_v14  ;;  %v5412_v14 = vld [vmem:[%s7834_s6] ss:$0 sm:$0xff] }
 0xb5b   :  { %6372 = vmatpush3.bf16.xpose.msk.msra.mxu1 %vm7183_vm6, %v6367_v12 }
 0xb5c   :  { %v5986_v15 = vpop.f32.mrb[22].mxu1  ;;  %6023 = vmatprep.subr.mxu1 %v283_v40 }
 0xb5d   :  { %v1782_v17 = vpop.f32.mrb[23].mxu1 }
 0xb5e   :  { %5992 = vmatprep.mubr.msk.f32.mxu1 %vm395_vm5, %v1782_v17 }
 0xb5f   :  { %5993 = vmatmul.mubr.msk.f32.gmra.mrb[14].mxu1 %vm395_vm5, %v5986_v15 }
 0xb60   :  { %6006 = vmatprep.mubr.msk.f32.mxu1 %vm395_vm5, %v1984_v18 }
 0xb63   :  { %6007 = vmatmul.mubr.msk.f32.vlgmr.msra.gmra.mrb[24].mxu1 %vm395_vm5, %v1986_v19 }
 0xb64   :  { %v6001_v49 = vpop.f32.mrb[12].mxu0  ;;  %6024 = vmatpush3.msra.mxu1 %v283_v40 }
 0xb65   :  { %v1974_v20 = vpop.f32.mrb[13].mxu0  ;;  %v2077_v38 = vsel %vm568_vm7, %v6001_v49, -inf }
 0xb66   :  { %2078 = vmax.xlane.f32.xlu1 %v2077_v38  ;;  %v2074_v21 = vsel %vm568_vm7, %v1974_v20, -inf }
 0xb67   :  { %2075 = vmax.xlane.f32.xlu0 %v2074_v21 }
 0xbf3   :  { %v2079_v46 = vpop.xlane.xlu1 %2078 }
 0xbf4   :  { %v2076_v51 = vpop.xlane.xlu0 %2075  ;;  %v2087_v29 = vsub.f32 %v6001_v49, %v2079_v46 }
 0xbf5   :  { %v2086_v22 = vsub.f32 %v1974_v20, %v2076_v51 }
 0xbf6   :  { %v2092_v30 = vmul.f32 1.442695, %v2087_v29 }
 0xbf7   :  { %v2090_v23 = vmul.f32 1.442695, %v2086_v22 }
 0xbf9   :  { %6787 = vpow2.f32 %v2090_v23 }
 0xbfa   :  { %6789 = vpow2.f32 %v2092_v30 }
 0xc03   :  { %v6788_v24 = vpop.eup %6787 }
 0xc04   :  { %v2098_v43 = vsel %vm568_vm7, %v6788_v24, 0.0  ;;  %v6790_v44 = vpop.eup %6789 }
 0xc05   :  { %2099 = vadd.xlane.f32.xlu1 %v2098_v43  ;;  %v2101_v45 = vsel %vm568_vm7, %v6790_v44, 0.0 }
 0xc36   :  { %v6008_v32 = vpop.f32.mrb[24].mxu1 }
 0xc37   :  { %v2065_v35 = vpop.f32.mrb[25].mxu1  ;;  %v2083_v41 = vsel %vm568_vm7, %v6008_v32, -inf }
 0xc38   :  { %v2080_v37 = vsel %vm568_vm7, %v2065_v35, -inf }
 0xc39   :  { %2081 = vmax.xlane.f32.xlu0 %v2080_v37 }
 0xc3d   :  { %2084 = vmax.xlane.f32.xlu0 %v2083_v41 }
 0xc41   :  { %2102 = vadd.xlane.f32.xlu0 %v2101_v45 }
 0xc92   :  { %v2100_v47 = vpop.xlane.xlu1 %2099 }
 0xc93   :  { %6791 = vrcp.f32 %v2100_v47 }
 0xc9d   :  { %v6792_v48 = vpop.eup %6791 }
 0xc9e   :  { %v2114_v50 = vmul.f32 %v6792_v48, %v6788_v24 }
 0xca0   :  { %6013 = vmatprep.mubr.msk.f32.mxu0 %vm568_vm7, %v2114_v50 }
 0xcc6   :  { %v2082_v52 = vpop.xlane.xlu0 %2081 }
 0xcc7   :  { %v2088_v53 = vsub.f32 %v2065_v35, %v2082_v52 }
 0xcc9   :  { %v2094_v54 = vmul.f32 1.442695, %v2088_v53 }
 0xcca   :  { %v2085_v55 = vpop.xlane.xlu0 %2084 }
 0xccb   :  { %6793 = vpow2.f32 %v2094_v54  ;;  %v2089_v56 = vsub.f32 %v6008_v32, %v2085_v55 }
 0xccd   :  { %v2096_v57 = vmul.f32 1.442695, %v2089_v56 }
 0xcce   :  { %v2103_v59 = vpop.xlane.xlu0 %2102 }
 0xccf   :  { %6795 = vpow2.f32 %v2096_v57 }
 0xcd0   :  { %6797 = vrcp.f32 %v2103_v59  ;;  %v2475_v59 = vld [vmem:[%s7835_s7 + $0x18] sm:$0xff] }
 0xcd5   :  { %v6794_v28 = vpop.eup %6793 }
 0xcd6   :  { %v2104_v58 = vsel %vm568_vm7, %v6794_v28, 0.0 }
 0xcd7   :  { %2105 = vadd.xlane.f32.xlu1 %v2104_v58  ;;  %v2473_v58 = vld [vmem:[%s7835_s7 + $0x8] sm:$0xff] }
 0xcd9   :  { %v6796_v26 = vpop.eup %6795 }
 0xcda   :  { %v2107_v31 = vsel %vm568_vm7, %v6796_v26, 0.0  ;;  %v6798_v61 = vpop.eup %6797 }
 0xcdb   :  { %2108 = vadd.xlane.f32.xlu0 %v2107_v31  ;;  %v2115_v63 = vmul.f32 %v6798_v61, %v6790_v44 }
 0xce8   :  { %6634 = vrot.lane.b32.xlu1 %v7167_v27, %s7844_s2 }
 0xcf1   :  { %6639 = vrot.lane.b32.xlu0 %v7177_v34, %s7844_s2 }
 0xd64   :  { %v2106_v60 = vpop.xlane.xlu1 %2105 }
 0xd65   :  { %6799 = vrcp.f32 %v2106_v60 }
 0xd68   :  { %v6635_v33 = vpop.permute.xlu1 %6634  ;;  %v2109_v62 = vpop.xlane.xlu0 %2108 }
 0xd69   :  { %v6637_v0 = vunpack.i.h.bf16 %v6635_v33  ;;  %v6636_v1 = vunpack.i.l.bf16 %v6635_v33  ;;  %6801 = vrcp.f32 %v2109_v62  ;;  %v2584_v33 = vld [vmem:[%s7837_s9] sm:$0xff]  ;;  %v2585_v62 = vld [vmem:[%s7837_s9 + $0x8] sm:$0xff] }
 0xd6b   :  { %v6373_v2 = vpack.c.bf16 %v6637_v0, %v6636_v1  ;;  %v2586_v0 = vld [vmem:[%s7837_s9 + $0x10] sm:$0xff]  ;;  %v6389_v1 = vpack.c.bf16 %v2585_v62, %v2584_v33 }
 0xd6c   :  { %v6640_v3 = vpop.permute.xlu0 %6639 }
 0xd6d   :  { %v6642_v4 = vunpack.i.h.bf16 %v6640_v3  ;;  %v6641_v5 = vunpack.i.l.bf16 %v6640_v3  ;;  %6374 = vmatprep.subr.bf16.mxu0 %v6373_v2  ;;  %v2588_v3 = vld [vmem:[%s7837_s9 + $0x20] sm:$0xff]  ;;  %6390 = vmatprep.subr.bf16.mxu1 %v6389_v1 }
 0xd6e   :  { %6376 = vmatpush3.bf16.msra.mxu0 %v6373_v2  ;;  %v2587_v2 = vld [vmem:[%s7837_s9 + $0x18] sm:$0xff] }
 0xd6f   :  { %v6800_v27 = vpop.eup %6799  ;;  %v6377_v39 = vpack.c.bf16 %v6642_v4, %v6641_v5  ;;  %v6393_v61 = vpack.c.bf16 %v2587_v2, %v2586_v0  ;;  %v2589_v4 = vld [vmem:[%s7837_s9 + $0x28] sm:$0xff] }
 0xd70   :  { %v2116_v34 = vmul.f32 %v6800_v27, %v6794_v28  ;;  %v2472_v28 = vld [vmem:[%s7835_s7] sm:$0xff]  ;;  %v6397_v5 = vpack.c.bf16 %v2589_v4, %v2588_v3 }
 0xd71   :  { %6014 = vmatmul.mubr.msk.f32.vlgmr.msra.gmra.mrb[14].mxu0 %vm568_vm7, %v2115_v63  ;;  %6378 = vmatprep.subr.bf16.mxu0 %v6377_v39  ;;  %v6381_v31 = vpack.c.bf16 %v2473_v58, %v2472_v28 }
 0xd72   :  { %6380 = vmatpush3.bf16.msra.mxu0 %v6377_v39  ;;  %6020 = vmatprep.mubr.msk.f32.mxu0 %vm568_vm7, %v2116_v34 }
 0xd73   :  { %v6802_v6 = vpop.eup %6801  ;;  %6382 = vmatprep.subr.bf16.mxu0 %v6381_v31 }
 0xd74   :  { %v2117_v7 = vmul.f32 %v6802_v6, %v6796_v26  ;;  %v2474_v26 = vld [vmem:[%s7835_s7 + $0x10] sm:$0xff] }
 0xd75   :  { %v6385_v60 = vpack.c.bf16 %v2475_v59, %v2474_v26 }
 0xd76   :  { %6021 = vmatmul.mubr.msk.f32.vlgmr.msra.gmra.mrb[16].mxu0 %vm568_vm7, %v2117_v7 }
 0xd77   :  { %6384 = vmatpush3.bf16.msra.mxu0 %v6381_v31 }
 0xd78   :  { %6386 = vmatprep.subr.bf16.mxu0 %v6385_v60 }
 0xd7b   :  { %6388 = vmatpush3.bf16.msra.mxu0 %v6385_v60 }
 0xe44   :  { %v6015_v10 = vpop.f32.mrb[14].mxu0 }
 0xe45   :  { %v2196_v11 = vpop.f32.mrb[15].mxu0 }
 0xe46   :  { %6025 = vmatprep.mubr.msk.f32.mxu1 %vm395_vm5, %v2196_v11 }
 0xe47   :  { %6026 = vmatmul.mubr.msk.f32.vlgmr.msra.gmra.mrb[12].mxu1 %vm395_vm5, %v6015_v10 }
 0xe48   :  { %6392 = vmatpush3.bf16.msra.mxu1 %v6389_v1 }
 0xe49   :  { %v6022_v12 = vpop.f32.mrb[16].mxu0  ;;  %6394 = vmatprep.subr.bf16.mxu1 %v6393_v61 }
 0xe4a   :  { %v2283_v13 = vpop.f32.mrb[17].mxu0 }
 0xe4b   :  { %6028 = vmatprep.mubr.msk.f32.mxu1 %vm395_vm5, %v2283_v13 }
 0xe4c   :  { %6029 = vmatmul.mubr.msk.f32.gmra.mrb[14].mxu1 %vm395_vm5, %v6022_v12 }
 0xe4d   :  { %6396 = vmatpush3.bf16.msra.mxu1 %v6393_v61 }
 0xe4e   :  { %6398 = vmatprep.subr.bf16.mxu1 %v6397_v5 }
 0xe51   :  { %6400 = vmatpush3.bf16.msra.mxu1 %v6397_v5 }
 0xf1a   :  { %v6027_v8 = vpop.f32.mrb[12].mxu1 }
 0xf1b   :  { %v6517_v15 = vadd.f32 %v6027_v8, %v5412_v14  ;;  %v2370_v17 = vpop.f32.mrb[13].mxu1 }
 0xf1c   :  { %v6518_v18 = vadd.f32 %v5412_v14, %v2370_v17 }
 0xf1d   :  { %v2394_v19 = vadd.f32 %v6517_v15, %v7138_v16  ;;  %v5465_v15 = vld [vmem:[%s7839_s11] ss:$0 sm:$0xff] }
 0xf1e   :  { %v2393_v49 = vadd.f32 %v6518_v18, %v7135_v36 }
 0xf1f   :  { %v6030_v20 = vpop.f32.mrb[14].mxu1  ;;  %v2402_v38 = vsel %vm291_vm4, %v2394_v19, 0.0 }
 0xf20   :  { %v6519_v21 = vadd.f32 %v6030_v20, %v5412_v14  ;;  %2403 = vadd.xlane.f32.xlu0 %v2402_v38  ;;  %v2380_v51 = vpop.f32.mrb[15].mxu1  ;;  %v2399_v22 = vsel %vm291_vm4, %v2393_v49, 0.0 }
 0xf21   :  { %v6520_v23 = vadd.f32 %v5412_v14, %v2380_v51  ;;  %2400 = vadd.xlane.f32.xlu1 %v2399_v22 }
 0xf22   :  { %v2396_v24 = vadd.f32 %v6519_v21, %v7150_v25 }
 0xf23   :  { %v2395_v43 = vadd.f32 %v6520_v23, %v7147_v9 }
 0xf24   :  { %v2408_v46 = vsel %vm291_vm4, %v2396_v24, 0.0 }
 0xf25   :  { %2409 = vadd.xlane.f32.xlu0 %v2408_v46  ;;  %v2405_v16 = vsel %vm291_vm4, %v2395_v43, 0.0 }
 0xf26   :  { %2406 = vadd.xlane.f32.xlu1 %v2405_v16 }
 0xfad   :  { %v2404_v36 = vpop.xlane.xlu0 %2403 }
 0xfae   :  { %v2413_v29 = vmul.f32 0.03125, %v2404_v36  ;;  %v2401_v30 = vpop.xlane.xlu1 %2400 }
 0xfaf   :  { %v2412_v32 = vmul.f32 0.03125, %v2401_v30  ;;  %v2590_v30 = vld [vmem:[%s7837_s9 + $0x30] sm:$0xff] }
 0xfb0   :  { %v7376_v35 = vsub.f32 %v2394_v19, %v2413_v29 }
 0xfb1   :  { %v7378_v37 = vsub.f32 %v2393_v49, %v2412_v32  ;;  %v5466_v49 = vld [vmem:[%s7840_s12] ss:$0 sm:$0xff]  ;;  %v2591_v32 = vld [vmem:[%s7837_s9 + $0x38] sm:$0xff] }
 0xfb2   :  { %v2410_v41 = vpop.xlane.xlu0 %2409  ;;  %v2421_v25 = vmul.f32 %v7376_v35, %v7376_v35 }
 0xfb3   :  { %v2415_v44 = vmul.f32 0.03125, %v2410_v41  ;;  %v2407_v9 = vpop.xlane.xlu1 %2406  ;;  %v2420_v45 = vmul.f32 %v7378_v37, %v7378_v37 }
 0xfb4   :  { %v2414_v47 = vmul.f32 0.03125, %v2407_v9  ;;  %v2427_v48 = vsel %vm291_vm4, %v2421_v25, 0.0 }
 0xfb5   :  { %v7385_v50 = vsub.f32 %v2396_v24, %v2415_v44  ;;  %2428 = vadd.xlane.f32.xlu0 %v2427_v48  ;;  %v2424_v52 = vsel %vm291_vm4, %v2420_v45, 0.0 }
 0xfb6   :  { %v2418_v53 = vsub.f32 %v2395_v43, %v2414_v47  ;;  %2425 = vadd.xlane.f32.xlu1 %v2424_v52 }
 0xfb7   :  { %v2423_v54 = vmul.f32 %v7385_v50, %v7385_v50 }
 0xfb8   :  { %v2422_v55 = vmul.f32 %v2418_v53, %v2418_v53 }
 0xfb9   :  { %v2433_v56 = vsel %vm291_vm4, %v2423_v54, 0.0 }
 0xfba   :  { %2434 = vadd.xlane.f32.xlu0 %v2433_v56  ;;  %v2430_v57 = vsel %vm291_vm4, %v2422_v55, 0.0  ;;  %v5472_v56 = vld [vmem:[%s7838_s10] ss:$0 sm:$0xff] }
 0xfbb   :  { %2431 = vadd.xlane.f32.xlu1 %v2430_v57 }
0x1042   :  { %v2429_v27 = vpop.xlane.xlu0 %2428 }
0x1043   :  { %v2437_v63 = vmul.f32 0.03125, %v2429_v27  ;;  %v2426_v39 = vpop.xlane.xlu1 %2425 }
0x1044   :  { %v2436_v34 = vmul.f32 0.03125, %v2426_v39 }
0x1045   :  { %v2441_v6 = vadd.f32 1e-05, %v2437_v63 }
0x1046   :  { %v2440_v7 = vadd.f32 1e-05, %v2436_v34 }
0x1047   :  { %6803 = vrsqrt.f32 %v2441_v6  ;;  %v2435_v40 = vpop.xlane.xlu0 %2434 }
0x1048   :  { %6805 = vrsqrt.f32 %v2440_v7  ;;  %v2439_v10 = vmul.f32 0.03125, %v2435_v40  ;;  %v2432_v11 = vpop.xlane.xlu1 %2431 }
0x1049   :  { %v2438_v12 = vmul.f32 0.03125, %v2432_v11 }
0x104a   :  { %v2443_v13 = vadd.f32 1e-05, %v2439_v10 }
0x104b   :  { %v2442_v14 = vadd.f32 1e-05, %v2438_v12 }
0x104c   :  { %6807 = vrsqrt.f32 %v2443_v13 }
0x104d   :  { %6809 = vrsqrt.f32 %v2442_v14 }
0x1051   :  { %v6804_v8 = vpop.eup %6803 }
0x1052   :  { %v6806_v17 = vpop.eup %6805  ;;  %v2449_v18 = vmul.f32 %v6804_v8, %v7376_v35  ;;  %v6401_v35 = vpack.c.bf16 %v2591_v32, %v2590_v30 }
0x1053   :  { %v2448_v19 = vmul.f32 %v6806_v17, %v7378_v37  ;;  %v5467_v37 = vld [vmem:[%s7836_s8] ss:$0 sm:$0xff] }
0x1054   :  { %v2459_v20 = vmul.f32 %v5465_v15, %v2449_v18  ;;  %6402 = vmatprep.subr.bf16.mxu1 %v6401_v35 }
0x1055   :  { %v2458_v38 = vmul.f32 %v5465_v15, %v2448_v19  ;;  %6404 = vmatpush3.bf16.msra.mxu1 %v6401_v35 }
0x1056   :  { %v6808_v21 = vpop.eup %6807  ;;  %v2469_v24 = vadd.f32 %v5466_v49, %v2459_v20 }
0x1057   :  { %v6810_v51 = vpop.eup %6809  ;;  %v2468_v22 = vadd.f32 %v5466_v49, %v2458_v38  ;;  %v2451_v23 = vmul.f32 %v6808_v21, %v7385_v50  ;;  %v5479_v21 = vld [vmem:[%s7831_s3 + $0x20] sm:$0xff] }
0x1058   :  { %v2450_v43 = vmul.f32 %v6810_v51, %v2418_v53  ;;  %v5480_v51 = vld [vmem:[%s7831_s3 + $0x28] sm:$0xff] }
0x1059   :  { %6039 = vmatprep.mubr.msk.f32.mxu0 %vm291_vm4, %v2468_v22  ;;  %v2461_v46 = vmul.f32 %v5465_v15, %v2451_v23  ;;  %v6405_v23 = vpack.c.bf16 %v5480_v51, %v5479_v21 }
0x105a   :  { %6040 = vmatmul.mubr.msk.f32.vlgmr.msra.gmra.mrb[18].mxu0 %vm291_vm4, %v2469_v24  ;;  %v2460_v16 = vmul.f32 %v5465_v15, %v2450_v43 }
0x105b   :  { %v2471_v29 = vadd.f32 %v5466_v49, %v2461_v46  ;;  %6406 = vmatprep.subr.bf16.mxu0 %v6405_v23 }
0x105c   :  { %v2470_v36 = vadd.f32 %v5466_v49, %v2460_v16  ;;  %6408 = vmatpush3.bf16.msra.mxu0 %v6405_v23 }
0x105e   :  { %6042 = vmatprep.mubr.msk.f32.mxu0 %vm291_vm4, %v2470_v36 }
0x105f   :  { %6043 = vmatmul.mubr.msk.f32.gmra.mrb[20].mxu0 %vm291_vm4, %v2471_v29 }
0x112d   :  { %v6041_v41 = vpop.f32.mrb[18].mxu0 }
0x112e   :  { %v2567_v25 = vadd.f32 %v6041_v41, %v5467_v37  ;;  %v2561_v44 = vpop.f32.mrb[19].mxu0 }
0x112f   :  { %v2562_v9 = vadd.f32 %v5467_v37, %v2561_v44 }
0x1130   :  { %v2581_v47 = vmax.f32 %v2567_v25, 0.0 }
0x1131   :  { %v2580_v45 = vmax.f32 %v2562_v9, 0.0 }
0x1132   :  { %v6044_v48 = vpop.f32.mrb[20].mxu0 }
0x1133   :  { %v2577_v50 = vadd.f32 %v6044_v48, %v5467_v37  ;;  %v2571_v52 = vpop.f32.mrb[21].mxu0  ;;  %6061 = vmatprep.mubr.msk.f32.mxu1 %vm2599_vm8, %v2580_v45 }
0x1134   :  { %v2572_v53 = vadd.f32 %v5467_v37, %v2571_v52  ;;  %6062 = vmatmul.mubr.msk.f32.vlgmr.msra.gmra.mrb[26].mxu1 %vm2599_vm8, %v2581_v47  ;;  %v5477_v47 = vld [vmem:[%s7841_s13] ss:$0 sm:$0xff] }
0x1135   :  { %v2583_v55 = vmax.f32 %v2577_v50, 0.0 }
0x1136   :  { %v2582_v54 = vmax.f32 %v2572_v53, 0.0  ;;  %v5478_v53 = vld [vmem:[%s7842_s14] ss:$0 sm:$0xff] }
0x1138   :  { %6064 = vmatprep.mubr.msk.f32.mxu1 %vm2599_vm8, %v2582_v54 }
0x1139   :  { %6065 = vmatmul.mubr.msk.f32.gmra.mrb[28].mxu1 %vm2599_vm8, %v2583_v55 }
0x1207   :  { %v6063_v57 = vpop.f32.mrb[26].mxu1 }
0x1208   :  { %v2684_v28 = vadd.f32 %v6063_v57, %v5472_v56  ;;  %v2678_v58 = vpop.f32.mrb[27].mxu1 }
0x1209   :  { %v2679_v26 = vadd.f32 %v5472_v56, %v2678_v58 }
0x120a   :  { %v2698_v31 = vadd.f32 %v2684_v28, %v2469_v24  ;;  %v5482_v24 = vld [vmem:[%s7831_s3 + $0x38] sm:$0xff] }
0x120b   :  { %v2697_v59 = vadd.f32 %v2679_v26, %v2468_v22  ;;  %v5481_v22 = vld [vmem:[%s7831_s3 + $0x30] sm:$0xff] }
0x120c   :  { %v6066_v60 = vpop.f32.mrb[28].mxu1  ;;  %v2706_v33 = vsel %vm291_vm4, %v2698_v31, 0.0  ;;  %v6409_v43 = vpack.c.bf16 %v5482_v24, %v5481_v22 }
0x120d   :  { %v2694_v62 = vadd.f32 %v6066_v60, %v5472_v56  ;;  %2707 = vadd.xlane.f32.xlu0 %v2706_v33  ;;  %v2688_v0 = vpop.f32.mrb[29].mxu1  ;;  %v2703_v1 = vsel %vm291_vm4, %v2697_v59, 0.0 }
0x120e   :  { %v2689_v2 = vadd.f32 %v5472_v56, %v2688_v0  ;;  %2704 = vadd.xlane.f32.xlu1 %v2703_v1  ;;  %6410 = vmatprep.subr.bf16.mxu0 %v6409_v43  ;;  %v5489_v0 = vld [vmem:[%s7832_s4 + $0x1] ss:$0 sm:$0xff] }
0x120f   :  { %v2700_v61 = vadd.f32 %v2694_v62, %v2471_v29  ;;  %6412 = vmatpush3.bf16.msra.mxu0 %v6409_v43 }
0x1210   :  { %v2699_v3 = vadd.f32 %v2689_v2, %v2470_v36 }
0x1211   :  { %v2712_v4 = vsel %vm291_vm4, %v2700_v61, 0.0 }
0x1212   :  { %2713 = vadd.xlane.f32.xlu0 %v2712_v4  ;;  %v2709_v5 = vsel %vm291_vm4, %v2699_v3, 0.0 }
0x1213   :  { %2710 = vadd.xlane.f32.xlu1 %v2709_v5 }
0x129a   :  { %v2708_v27 = vpop.xlane.xlu0 %2707 }
0x129b   :  { %v2716_v63 = vmul.f32 0.03125, %v2708_v27  ;;  %v2705_v39 = vpop.xlane.xlu1 %2704 }
0x129c   :  { %v2715_v34 = vmul.f32 0.03125, %v2705_v39 }
0x129d   :  { %v2720_v6 = vsub.f32 %v2698_v31, %v2716_v63 }
0x129e   :  { %v2719_v7 = vsub.f32 %v2697_v59, %v2715_v34 }
0x129f   :  { %v2714_v40 = vpop.xlane.xlu0 %2713  ;;  %v2724_v10 = vmul.f32 %v2720_v6, %v2720_v6 }
0x12a0   :  { %v2718_v11 = vmul.f32 0.03125, %v2714_v40  ;;  %v2711_v12 = vpop.xlane.xlu1 %2710  ;;  %v2723_v13 = vmul.f32 %v2719_v7, %v2719_v7 }
0x12a1   :  { %v2717_v14 = vmul.f32 0.03125, %v2711_v12  ;;  %v2730_v8 = vsel %vm291_vm4, %v2724_v10, 0.0 }
0x12a2   :  { %v2722_v15 = vsub.f32 %v2700_v61, %v2718_v11  ;;  %2731 = vadd.xlane.f32.xlu0 %v2730_v8  ;;  %v2727_v17 = vsel %vm291_vm4, %v2723_v13, 0.0 }
0x12a3   :  { %v2721_v18 = vsub.f32 %v2699_v3, %v2717_v14  ;;  %2728 = vadd.xlane.f32.xlu1 %v2727_v17 }
0x12a4   :  { %v2726_v19 = vmul.f32 %v2722_v15, %v2722_v15 }
0x12a5   :  { %v2725_v49 = vmul.f32 %v2721_v18, %v2721_v18 }
0x12a6   :  { %v2736_v20 = vsel %vm291_vm4, %v2726_v19, 0.0 }
0x12a7   :  { %2737 = vadd.xlane.f32.xlu0 %v2736_v20  ;;  %v2733_v38 = vsel %vm291_vm4, %v2725_v49, 0.0 }
0x12a8   :  { %2734 = vadd.xlane.f32.xlu1 %v2733_v38 }
0x132f   :  { %v2732_v46 = vpop.xlane.xlu0 %2731 }
0x1330   :  { %v2740_v16 = vmul.f32 0.03125, %v2732_v46  ;;  %v2729_v36 = vpop.xlane.xlu1 %2728 }
0x1331   :  { %v2739_v29 = vmul.f32 0.03125, %v2729_v36 }
0x1332   :  { %v2744_v30 = vadd.f32 1e-05, %v2740_v16 }
0x1333   :  { %v2743_v32 = vadd.f32 1e-05, %v2739_v29 }
0x1334   :  { %6811 = vrsqrt.f32 %v2744_v30  ;;  %v2738_v35 = vpop.xlane.xlu0 %2737 }
0x1335   :  { %6813 = vrsqrt.f32 %v2743_v32  ;;  %v2742_v37 = vmul.f32 0.03125, %v2738_v35  ;;  %v2735_v41 = vpop.xlane.xlu1 %2734 }
0x1336   :  { %v2741_v25 = vmul.f32 0.03125, %v2735_v41 }
0x1337   :  { %v2746_v44 = vadd.f32 1e-05, %v2742_v37 }
0x1338   :  { %v2745_v9 = vadd.f32 1e-05, %v2741_v25 }
0x1339   :  { %6815 = vrsqrt.f32 %v2746_v44 }
0x133a   :  { %6817 = vrsqrt.f32 %v2745_v9 }
0x133e   :  { %v6812_v45 = vpop.eup %6811 }
0x133f   :  { %v6814_v48 = vpop.eup %6813  ;;  %v2752_v50 = vmul.f32 %v6812_v45, %v2720_v6 }
0x1340   :  { %v2751_v52 = vmul.f32 %v6814_v48, %v2719_v7 }
0x1341   :  { %v2762_v54 = vmul.f32 %v5477_v47, %v2752_v50 }
0x1342   :  { %v2761_v55 = vmul.f32 %v5477_v47, %v2751_v52 }
0x1343   :  { %v6816_v56 = vpop.eup %6815  ;;  %v7479_v26 = vadd.f32 %v5478_v53, %v2762_v54 }
0x1344   :  { %v6818_v57 = vpop.eup %6817  ;;  %v7477_v28 = vadd.f32 %v5478_v53, %v2761_v55  ;;  %v2754_v58 = vmul.f32 %v6816_v56, %v2722_v15 }
0x1345   :  { %v2753_v31 = vmul.f32 %v6818_v57, %v2721_v18 }
0x1346   :  { %6075 = vmatprep.mubr.msk.f32.mxu0 %vm291_vm4, %v7477_v28  ;;  %v2764_v59 = vmul.f32 %v5477_v47, %v2754_v58 }
0x1347   :  { %6076 = vmatmul.mubr.msk.f32.vlgmr.msra.gmra.mrb[22].mxu0 %vm291_vm4, %v7479_v26  ;;  %v2763_v60 = vmul.f32 %v5477_v47, %v2753_v31 }
0x1348   :  { %v7487_v62 = vadd.f32 %v5478_v53, %v2764_v59 }
0x1349   :  { %v7485_v33 = vadd.f32 %v5478_v53, %v2763_v60 }
0x134b   :  { %6078 = vmatprep.mubr.msk.f32.mxu0 %vm291_vm4, %v7485_v33 }
0x134c   :  { %6079 = vmatmul.mubr.msk.f32.gmra.mrb[24].mxu0 %vm291_vm4, %v7487_v62 }
0x141a   :  { %v6077_v1 = vpop.f32.mrb[22].mxu0 }
0x141b   :  { %v7496_v2 = vadd.f32 %v6077_v1, %v5489_v0  ;;  %v2873_v61 = vpop.f32.mrb[23].mxu0 }
0x141c   :  { %v7498_v3 = vadd.f32 %v5489_v0, %v2873_v61 }
0x141e   :  { %6085 = vmatprep.mubr.msk.f32.mxu0 %vm395_vm5, %v7498_v3  ;;  %v7504_v4 = vpack.i.bf16 %v7496_v2, %v7498_v3 }
0x141f   :  { %v6080_v5 = vpop.f32.mrb[24].mxu0 }
0x1420   :  { %v7506_v27 = vadd.f32 %v6080_v5, %v5489_v0  ;;  %6644 = vrot.lane.b32.xlu1 %v7504_v4, %s6924_s22  ;;  %v2883_v63 = vpop.f32.mrb[25].mxu0 }
0x1421   :  { %v7510_v39 = vadd.f32 %v5489_v0, %v2883_v63  ;;  %v5484_v63 = vld [vmem:[%s7833_s5 + $0x20] sm:$0xff] }
0x1423   :  { %6092 = vmatprep.mubr.msk.f32.mxu1 %vm395_vm5, %v7510_v39  ;;  %v7516_v34 = vpack.i.bf16 %v7506_v27, %v7510_v39 }
0x1425   :  { %6649 = vrot.lane.b32.xlu0 %v7516_v34, %s6924_s22 }
0x1492   :  { %v6645_v6 = vpop.permute.xlu1 %6644 }
0x1493   :  { %v6647_v7 = vunpack.i.h.bf16 %v6645_v6  ;;  %v6646_v40 = vunpack.i.l.bf16 %v6645_v6 }
0x1495   :  { %v6413_v10 = vpack.c.bf16 %v6647_v7, %v6646_v40 }
0x1497   :  { %v6650_v11 = vpop.permute.xlu0 %6649  ;;  %6415 = vmatprep.subr.msk.bf16.mxu0 %vm7183_vm6, %v6413_v10 }
0x1498   :  { %v6652_v12 = vunpack.i.h.bf16 %v6650_v11  ;;  %v6651_v13 = vunpack.i.l.bf16 %v6650_v11  ;;  %6418 = vmatpush3.bf16.xpose.msk.msra.mxu0 %vm7183_vm6, %v6413_v10 }
0x149a   :  { %v6419_v14 = vpack.c.bf16 %v6652_v12, %v6651_v13 }
0x149c   :  { %6421 = vmatprep.subr.msk.bf16.mxu1 %vm7183_vm6, %v6419_v14 }
0x149d   :  { %6424 = vmatpush3.bf16.xpose.msk.msra.mxu1 %vm7183_vm6, %v6419_v14 }
0x149f   :  { %6086 = vmatmul.mubr.msk.f32.vlgmr.msra.gmra.mrb[26].mxu0 %vm395_vm5, %v7496_v2 }
0x14a4   :  { %6093 = vmatmul.mubr.msk.f32.vlgmr.msra.gmra.mrb[30].mxu1 %vm395_vm5, %v7506_v27 }
0x1572   :  { %v6087_v8 = vpop.f32.mrb[26].mxu0 }
0x1573   :  { %v2972_v15 = vpop.f32.mrb[27].mxu0  ;;  %v3073_v17 = vsel %vm568_vm7, %v6087_v8, -inf }
0x1574   :  { %3074 = vmax.xlane.f32.xlu0 %v3073_v17  ;;  %v3070_v18 = vsel %vm568_vm7, %v2972_v15, -inf }
0x1575   :  { %3071 = vmax.xlane.f32.xlu1 %v3070_v18 }
0x1577   :  { %v6094_v19 = vpop.f32.mrb[30].mxu1 }
0x1578   :  { %v3061_v49 = vpop.f32.mrb[31].mxu1  ;;  %v3079_v20 = vsel %vm568_vm7, %v6094_v19, -inf }
0x1579   :  { %3080 = vmax.xlane.f32.xlu0 %v3079_v20  ;;  %v3076_v38 = vsel %vm568_vm7, %v3061_v49, -inf }
0x157a   :  { %3077 = vmax.xlane.f32.xlu1 %v3076_v38 }
0x1601   :  { %v3075_v21 = vpop.xlane.xlu0 %3074 }
0x1602   :  { %v3083_v51 = vsub.f32 %v6087_v8, %v3075_v21  ;;  %v3072_v22 = vpop.xlane.xlu1 %3071 }
0x1603   :  { %v3082_v23 = vsub.f32 %v2972_v15, %v3072_v22 }
0x1604   :  { %v3088_v24 = vmul.f32 1.442695, %v3083_v51 }
0x1605   :  { %v3086_v43 = vmul.f32 1.442695, %v3082_v23 }
0x1606   :  { %6819 = vpow2.f32 %v3088_v24  ;;  %v3081_v46 = vpop.xlane.xlu0 %3080 }
0x1607   :  { %6821 = vpow2.f32 %v3086_v43  ;;  %v3085_v16 = vsub.f32 %v6094_v19, %v3081_v46  ;;  %v3078_v36 = vpop.xlane.xlu1 %3077 }
0x1608   :  { %v3084_v29 = vsub.f32 %v3061_v49, %v3078_v36 }
0x1609   :  { %v3092_v30 = vmul.f32 1.442695, %v3085_v16 }
0x160a   :  { %v3090_v32 = vmul.f32 1.442695, %v3084_v29 }
0x160b   :  { %6823 = vpow2.f32 %v3092_v30 }
0x160c   :  { %6825 = vpow2.f32 %v3090_v32 }
0x1610   :  { %v6820_v35 = vpop.eup %6819 }
0x1611   :  { %v6822_v37 = vpop.eup %6821  ;;  %v3097_v41 = vsel %vm568_vm7, %v6820_v35, 0.0 }
0x1612   :  { %3098 = vadd.xlane.f32.xlu0 %v3097_v41  ;;  %v3094_v25 = vsel %vm568_vm7, %v6822_v37, 0.0 }
0x1613   :  { %3095 = vadd.xlane.f32.xlu1 %v3094_v25 }
0x1615   :  { %v6824_v44 = vpop.eup %6823 }
0x1616   :  { %v6826_v9 = vpop.eup %6825  ;;  %v3103_v45 = vsel %vm568_vm7, %v6824_v44, 0.0 }
0x1617   :  { %3104 = vadd.xlane.f32.xlu0 %v3103_v45  ;;  %v3100_v47 = vsel %vm568_vm7, %v6826_v9, 0.0 }
0x1618   :  { %3101 = vadd.xlane.f32.xlu1 %v3100_v47 }
0x1629   :  { %6654 = vrot.lane.b32.xlu1 %v7504_v4, %s6925_s23 }
0x162d   :  { %6659 = vrot.lane.b32.xlu0 %v7516_v34, %s6925_s23  ;;  %6664 = vrot.lane.b32.xlu1 %v7504_v4, %s6927_s25 }
0x1631   :  { %3391 = vrot.lane.b32.xlu0 %v7498_v3, %s6926_s24  ;;  %6669 = vrot.lane.b32.xlu1 %v7516_v34, %s6927_s25 }
0x1635   :  { %3482 = vrot.lane.b32.xlu0 %v7510_v39, %s6926_s24  ;;  %3393 = vrot.lane.b32.xlu1 %v7496_v2, %s6926_s24 }
0x1639   :  { %3484 = vrot.lane.b32.xlu1 %v7506_v27, %s6926_s24 }
0x169f   :  { %v3099_v48 = vpop.xlane.xlu0 %3098 }
0x16a0   :  { %v3096_v50 = vpop.xlane.xlu1 %3095 }
0x16a1   :  { %6827 = vrcp.f32 %v3096_v50 }
0x16a2   :  { %6829 = vrcp.f32 %v3099_v48 }
0x16a4   :  { %v3105_v52 = vpop.xlane.xlu0 %3104 }
0x16a5   :  { %6831 = vrcp.f32 %v3105_v52  ;;  %v3102_v53 = vpop.xlane.xlu1 %3101 }
0x16a6   :  { %6833 = vrcp.f32 %v3102_v53 }
0x16a8   :  { %v6660_v54 = vpop.permute.xlu0 %6659 }
0x16a9   :  { %v6662_v55 = vunpack.i.h.bf16 %v6660_v54  ;;  %v6661_v56 = vunpack.i.l.bf16 %v6660_v54  ;;  %v6655_v57 = vpop.permute.xlu1 %6654 }
0x16aa   :  { %v6657_v58 = vunpack.i.h.bf16 %v6655_v57  ;;  %v6656_v31 = vunpack.i.l.bf16 %v6655_v57 }
0x16ab   :  { %v6828_v59 = vpop.eup %6827  ;;  %v6429_v60 = vpack.c.bf16 %v6662_v55, %v6661_v56 }
0x16ac   :  { %v6425_v0 = vpack.c.bf16 %v6657_v58, %v6656_v31  ;;  %v3110_v1 = vmul.f32 %v6828_v59, %v6822_v37  ;;  %v6830_v61 = vpop.eup %6829  ;;  %v3392_v18 = vpop.permute.xlu0 %3391 }
0x16ad   :  { %6430 = vmatprep.subr.bf16.mxu1 %v6429_v60  ;;  %v6665_v5 = vpop.permute.xlu1 %6664  ;;  %v3111_v11 = vmul.f32 %v6830_v61, %v6820_v35 }
0x16ae   :  { %v6667_v6 = vunpack.i.h.bf16 %v6665_v5  ;;  %v6666_v7 = vunpack.i.l.bf16 %v6665_v5  ;;  %6426 = vmatprep.subr.bf16.mxu0 %v6425_v0  ;;  %6099 = vmatprep.mubr.msk.f32.mxu0 %vm568_vm7, %v3110_v1 }
0x16af   :  { %v6832_v40 = vpop.eup %6831  ;;  %6432 = vmatpush3.bf16.msra.mxu1 %v6429_v60  ;;  %6428 = vmatpush3.bf16.msra.mxu0 %v6425_v0 }
0x16b0   :  { %v6834_v10 = vpop.eup %6833  ;;  %v6433_v12 = vpack.c.bf16 %v6667_v6, %v6666_v7  ;;  %6109 = vmatprep.subr.mxu0 %v5484_v63  ;;  %v3113_v8 = vmul.f32 %v6832_v40, %v6824_v44  ;;  %v3483_v22 = vpop.permute.xlu0 %3482 }
0x16b1   :  { %v6670_v13 = vpop.permute.xlu1 %6669  ;;  %v3112_v14 = vmul.f32 %v6834_v10, %v6826_v9 }
0x16b2   :  { %v6672_v15 = vunpack.i.h.bf16 %v6670_v13  ;;  %v6671_v17 = vunpack.i.l.bf16 %v6670_v13  ;;  %6100 = vmatmul.mubr.msk.f32.vlgmr.msra.gmra.mrb[28].mxu0 %vm568_vm7, %v3111_v11  ;;  %6435 = vmatprep.subr.msk.bf16.mxu1 %vm7183_vm6, %v6433_v12 }
0x16b3   :  { %6106 = vmatprep.mubr.msk.f32.mxu1 %vm568_vm7, %v3112_v14  ;;  %6110 = vmatpush3.msra.mxu0 %v5484_v63 }
0x16b4   :  { %v6439_v19 = vpack.c.bf16 %v6672_v15, %v6671_v17  ;;  %6107 = vmatmul.mubr.msk.f32.vlgmr.msra.gmra.mrb[32].mxu1 %vm568_vm7, %v3113_v8 }
0x16b5   :  { %6121 = vmatprep.mubr.msk.f32.mxu1 %vm395_vm5, %v3392_v18  ;;  %v3394_v49 = vpop.permute.xlu1 %3393 }
0x16b6   :  { %6441 = vmatprep.subr.msk.bf16.mxu0 %vm7183_vm6, %v6439_v19 }
0x16b8   :  { %6438 = vmatpush3.bf16.xpose.msk.msra.mxu1 %vm7183_vm6, %v6433_v12 }
0x16b9   :  { %v3485_v23 = vpop.permute.xlu1 %3484 }
0x16bf   :  { %6122 = vmatmul.mubr.msk.f32.vlgmr.msra.gmra.mrb[34].mxu1 %vm395_vm5, %v3394_v49 }
0x1785   :  { %v6101_v20 = vpop.f32.mrb[28].mxu0 }
0x1786   :  { %v3192_v38 = vpop.f32.mrb[29].mxu0 }
0x1787   :  { %v6108_v21 = vpop.f32.mrb[32].mxu1  ;;  %6111 = vmatprep.mubr.msk.f32.mxu0 %vm395_vm5, %v3192_v38 }
0x1788   :  { %v3279_v51 = vpop.f32.mrb[33].mxu1  ;;  %6112 = vmatmul.mubr.msk.f32.vlgmr.msra.gmra.mrb[30].mxu0 %vm395_vm5, %v6101_v20 }
0x1789   :  { %6444 = vmatpush3.bf16.xpose.msk.msra.mxu0 %vm7183_vm6, %v6439_v19  ;;  %6114 = vmatprep.mubr.msk.f32.mxu0 %vm395_vm5, %v3279_v51 }
0x178c   :  { %6115 = vmatmul.mubr.msk.f32.gmra.mrb[32].mxu0 %vm395_vm5, %v6108_v21 }
0x178d   :  { %6128 = vmatprep.mubr.msk.f32.mxu0 %vm395_vm5, %v3483_v22 }
0x1790   :  { %6129 = vmatmul.mubr.msk.f32.vlgmr.msra.gmra.mrb[34].mxu0 %vm395_vm5, %v3485_v23  ;;  %v5485_v23 = vld [vmem:[%s7833_s5 + $0x28] sm:$0xff] }
0x1792   :  { %v6123_v24 = vpop.f32.mrb[34].mxu1 }
0x1793   :  { %v3473_v43 = vpop.f32.mrb[35].mxu1  ;;  %v3576_v46 = vsel %vm568_vm7, %v6123_v24, -inf }
0x1794   :  { %3577 = vmax.xlane.f32.xlu1 %v3576_v46  ;;  %v3573_v16 = vsel %vm568_vm7, %v3473_v43, -inf }
0x1795   :  { %3574 = vmax.xlane.f32.xlu0 %v3573_v16 }
0x1821   :  { %v3578_v37 = vpop.xlane.xlu1 %3577 }
0x1822   :  { %v3575_v36 = vpop.xlane.xlu0 %3574  ;;  %v3586_v41 = vsub.f32 %v6123_v24, %v3578_v37 }
0x1823   :  { %v3585_v29 = vsub.f32 %v3473_v43, %v3575_v36 }
0x1824   :  { %v3591_v25 = vmul.f32 1.442695, %v3586_v41 }
0x1825   :  { %v3589_v30 = vmul.f32 1.442695, %v3585_v29 }
0x1827   :  { %6835 = vpow2.f32 %v3589_v30 }
0x1828   :  { %6837 = vpow2.f32 %v3591_v25 }
0x1831   :  { %v6836_v32 = vpop.eup %6835 }
0x1832   :  { %v3597_v35 = vsel %vm568_vm7, %v6836_v32, 0.0  ;;  %v6838_v48 = vpop.eup %6837 }
0x1833   :  { %3598 = vadd.xlane.f32.xlu1 %v3597_v35  ;;  %v3600_v50 = vsel %vm568_vm7, %v6838_v48, 0.0 }
0x1863   :  { %v6130_v44 = vpop.f32.mrb[34].mxu0 }
0x1864   :  { %v3564_v9 = vpop.f32.mrb[35].mxu0  ;;  %v3582_v47 = vsel %vm568_vm7, %v6130_v44, -inf }
0x1865   :  { %v3579_v45 = vsel %vm568_vm7, %v3564_v9, -inf }
0x1866   :  { %3580 = vmax.xlane.f32.xlu0 %v3579_v45 }
0x186a   :  { %3583 = vmax.xlane.f32.xlu0 %v3582_v47 }
0x186e   :  { %3601 = vadd.xlane.f32.xlu0 %v3600_v50 }
0x18c0   :  { %v3599_v52 = vpop.xlane.xlu1 %3598 }
0x18c1   :  { %6839 = vrcp.f32 %v3599_v52 }
0x18cb   :  { %v6840_v53 = vpop.eup %6839 }
0x18cc   :  { %v3613_v54 = vmul.f32 %v6840_v53, %v6836_v32 }
0x18ce   :  { %6135 = vmatprep.mubr.msk.f32.mxu1 %vm568_vm7, %v3613_v54 }
0x18f3   :  { %v3581_v55 = vpop.xlane.xlu0 %3580 }
0x18f4   :  { %v3587_v56 = vsub.f32 %v3564_v9, %v3581_v55 }
0x18f6   :  { %v3593_v57 = vmul.f32 1.442695, %v3587_v56 }
0x18f7   :  { %v3584_v58 = vpop.xlane.xlu0 %3583 }
0x18f8   :  { %6841 = vpow2.f32 %v3593_v57  ;;  %v3588_v31 = vsub.f32 %v6130_v44, %v3584_v58 }
0x18fa   :  { %v3595_v59 = vmul.f32 1.442695, %v3588_v31 }
0x18fb   :  { %v3602_v5 = vpop.xlane.xlu0 %3601 }
0x18fc   :  { %6843 = vpow2.f32 %v3595_v59 }
0x18fd   :  { %6845 = vrcp.f32 %v3602_v5 }
0x1902   :  { %v6842_v60 = vpop.eup %6841 }
0x1903   :  { %v3603_v0 = vsel %vm568_vm7, %v6842_v60, 0.0 }
0x1904   :  { %3604 = vadd.xlane.f32.xlu1 %v3603_v0 }
0x1906   :  { %v6844_v1 = vpop.eup %6843 }
0x1907   :  { %v3606_v61 = vsel %vm568_vm7, %v6844_v1, 0.0  ;;  %v6846_v12 = vpop.eup %6845 }
0x1908   :  { %3607 = vadd.xlane.f32.xlu0 %v3606_v61  ;;  %v3614_v49 = vmul.f32 %v6846_v12, %v6838_v48 }
0x1915   :  { %6674 = vrot.lane.b32.xlu1 %v7504_v4, %s6928_s27 }
0x1919   :  { %6684 = vrot.lane.b32.xlu1 %v7504_v4, %s6929_s28 }
0x191d   :  { %6689 = vrot.lane.b32.xlu1 %v7516_v34, %s6929_s28  ;;  %s7852_s28 = smov 72  }
0x191e   :  { %6679 = vrot.lane.b32.xlu0 %v7516_v34, %s6928_s27  ;;  %s6935_s27 = smov 32  }
0x1921   :  { %3894 = vrot.lane.b32.xlu1 %v7496_v2, %s6930_s16 }
0x1922   :  { %3892 = vrot.lane.b32.xlu0 %v7498_v3, %s6930_s16 }
0x1925   :  { %3985 = vrot.lane.b32.xlu1 %v7506_v27, %s6930_s16 }
0x1926   :  { %3983 = vrot.lane.b32.xlu0 %v7510_v39, %s6930_s16  ;;  %s7853_s16 = smov 104  }
0x1991   :  { %v3605_v63 = vpop.xlane.xlu1 %3604 }
0x1992   :  { %6847 = vrcp.f32 %v3605_v63 }
0x1995   :  { %v6675_v6 = vpop.permute.xlu1 %6674  ;;  %v3608_v7 = vpop.xlane.xlu0 %3607 }
0x1996   :  { %v6677_v40 = vunpack.i.h.bf16 %v6675_v6  ;;  %v6676_v10 = vunpack.i.l.bf16 %v6675_v6  ;;  %6849 = vrcp.f32 %v3608_v7 }
0x1998   :  { %v6445_v11 = vpack.c.bf16 %v6677_v40, %v6676_v10 }
0x1999   :  { %v6685_v13 = vpop.permute.xlu1 %6684  ;;  %v6680_v14 = vpop.permute.xlu0 %6679 }
0x199a   :  { %v6687_v8 = vunpack.i.h.bf16 %v6685_v13  ;;  %v6686_v15 = vunpack.i.l.bf16 %v6685_v13  ;;  %v6682_v17 = vunpack.i.h.bf16 %v6680_v14  ;;  %v6681_v18 = vunpack.i.l.bf16 %v6680_v14  ;;  %6446 = vmatprep.subr.bf16.mxu1 %v6445_v11 }
0x199b   :  { %6448 = vmatpush3.bf16.msra.mxu1 %v6445_v11 }
0x199c   :  { %v6848_v19 = vpop.eup %6847  ;;  %v6453_v20 = vpack.c.bf16 %v6687_v8, %v6686_v15  ;;  %v6449_v38 = vpack.c.bf16 %v6682_v17, %v6681_v18  ;;  %v5486_v17 = vld [vmem:[%s7833_s5 + $0x30] sm:$0xff] }
0x199d   :  { %v6690_v21 = vpop.permute.xlu1 %6689  ;;  %v3893_v51 = vpop.permute.xlu0 %3892  ;;  %v3615_v22 = vmul.f32 %v6848_v19, %v6842_v60 }
0x199e   :  { %6136 = vmatmul.mubr.msk.f32.vlgmr.msra.gmra.mrb[36].mxu1 %vm568_vm7, %v3614_v49  ;;  %6450 = vmatprep.subr.bf16.mxu0 %v6449_v38  ;;  %v6692_v24 = vunpack.i.h.bf16 %v6690_v21  ;;  %v6691_v43 = vunpack.i.l.bf16 %v6690_v21 }
0x199f   :  { %6455 = vmatprep.subr.msk.bf16.mxu1 %vm7183_vm6, %v6453_v20  ;;  %6452 = vmatpush3.bf16.msra.mxu0 %v6449_v38 }
0x19a0   :  { %v6850_v46 = vpop.eup %6849  ;;  %6142 = vmatprep.mubr.msk.f32.mxu0 %vm568_vm7, %v3615_v22  ;;  %6157 = vmatprep.mubr.msk.f32.mxu1 %vm395_vm5, %v3893_v51  ;;  %v6459_v36 = vpack.c.bf16 %v6692_v24, %v6691_v43 }
0x19a1   :  { %v3616_v16 = vmul.f32 %v6850_v46, %v6844_v1  ;;  %6145 = vmatprep.subr.mxu0 %v5485_v23  ;;  %v3895_v29 = vpop.permute.xlu1 %3894  ;;  %v3984_v41 = vpop.permute.xlu0 %3983 }
0x19a3   :  { %6143 = vmatmul.mubr.msk.f32.vlgmr.msra.gmra.mrb[36].mxu0 %vm568_vm7, %v3616_v16 }
0x19a4   :  { %6146 = vmatpush3.msra.mxu0 %v5485_v23  ;;  %6458 = vmatpush3.bf16.xpose.msk.msra.mxu1 %vm7183_vm6, %v6453_v20 }
0x19a5   :  { %6461 = vmatprep.subr.msk.bf16.mxu0 %vm7183_vm6, %v6459_v36  ;;  %v3986_v25 = vpop.permute.xlu1 %3985 }
0x19ab   :  { %6158 = vmatmul.mubr.msk.f32.vlgmr.msra.gmra.mrb[38].mxu1 %vm395_vm5, %v3895_v29 }
0x1a71   :  { %v6137_v30 = vpop.f32.mrb[36].mxu1 }
0x1a72   :  { %v3695_v32 = vpop.f32.mrb[37].mxu1 }
0x1a73   :  { %6147 = vmatprep.mubr.msk.f32.mxu0 %vm395_vm5, %v3695_v32 }
0x1a74   :  { %6148 = vmatmul.mubr.msk.f32.vlgmr.msra.gmra.mrb[30].mxu0 %vm395_vm5, %v6137_v30 }
0x1a75   :  { %6464 = vmatpush3.bf16.xpose.msk.msra.mxu0 %vm7183_vm6, %v6459_v36 }
0x1a76   :  { %v6144_v35 = vpop.f32.mrb[36].mxu0  ;;  %6181 = vmatprep.subr.mxu0 %v5486_v17 }
0x1a77   :  { %v3782_v37 = vpop.f32.mrb[37].mxu0 }
0x1a78   :  { %6150 = vmatprep.mubr.msk.f32.mxu0 %vm395_vm5, %v3782_v37 }
0x1a79   :  { %6151 = vmatmul.mubr.msk.f32.gmra.mrb[32].mxu0 %vm395_vm5, %v6144_v35 }
0x1a7a   :  { %6164 = vmatprep.mubr.msk.f32.mxu0 %vm395_vm5, %v3984_v41 }
0x1a7d   :  { %6165 = vmatmul.mubr.msk.f32.vlgmr.msra.gmra.mrb[38].mxu0 %vm395_vm5, %v3986_v25 }
0x1a7e   :  { %v6159_v44 = vpop.f32.mrb[38].mxu1  ;;  %6182 = vmatpush3.msra.mxu0 %v5486_v17 }
0x1a7f   :  { %v3974_v9 = vpop.f32.mrb[39].mxu1  ;;  %v4077_v45 = vsel %vm568_vm7, %v6159_v44, -inf }
0x1a80   :  { %4078 = vmax.xlane.f32.xlu1 %v4077_v45  ;;  %v4074_v47 = vsel %vm568_vm7, %v3974_v9, -inf }
0x1a81   :  { %4075 = vmax.xlane.f32.xlu0 %v4074_v47 }
0x1b0d   :  { %v4079_v55 = vpop.xlane.xlu1 %4078 }
0x1b0e   :  { %v4076_v48 = vpop.xlane.xlu0 %4075  ;;  %v4087_v56 = vsub.f32 %v6159_v44, %v4079_v55 }
0x1b0f   :  { %v4086_v50 = vsub.f32 %v3974_v9, %v4076_v48 }
0x1b10   :  { %v4092_v57 = vmul.f32 1.442695, %v4087_v56 }
0x1b11   :  { %v4090_v52 = vmul.f32 1.442695, %v4086_v50 }
0x1b13   :  { %6851 = vpow2.f32 %v4090_v52 }
0x1b14   :  { %6853 = vpow2.f32 %v4092_v57 }
0x1b1d   :  { %v6852_v53 = vpop.eup %6851 }
0x1b1e   :  { %v4098_v54 = vsel %vm568_vm7, %v6852_v53, 0.0  ;;  %v6854_v0 = vpop.eup %6853 }
0x1b1f   :  { %4099 = vadd.xlane.f32.xlu1 %v4098_v54  ;;  %v4101_v1 = vsel %vm568_vm7, %v6854_v0, 0.0 }
0x1b50   :  { %v6166_v58 = vpop.f32.mrb[38].mxu0 }
0x1b51   :  { %v4065_v31 = vpop.f32.mrb[39].mxu0  ;;  %v4083_v60 = vsel %vm568_vm7, %v6166_v58, -inf }
0x1b52   :  { %v4080_v59 = vsel %vm568_vm7, %v4065_v31, -inf }
0x1b53   :  { %4081 = vmax.xlane.f32.xlu0 %v4080_v59 }
0x1b57   :  { %4084 = vmax.xlane.f32.xlu0 %v4083_v60 }
0x1b5b   :  { %4102 = vadd.xlane.f32.xlu0 %v4101_v1 }
0x1bac   :  { %v4100_v61 = vpop.xlane.xlu1 %4099 }
0x1bad   :  { %6855 = vrcp.f32 %v4100_v61 }
0x1bb7   :  { %v6856_v5 = vpop.eup %6855 }
0x1bb8   :  { %v4114_v63 = vmul.f32 %v6856_v5, %v6852_v53 }
0x1bba   :  { %6171 = vmatprep.mubr.msk.f32.mxu1 %vm568_vm7, %v4114_v63 }
0x1be0   :  { %v4082_v6 = vpop.xlane.xlu0 %4081 }
0x1be1   :  { %v4088_v7 = vsub.f32 %v4065_v31, %v4082_v6 }
0x1be3   :  { %v4094_v40 = vmul.f32 1.442695, %v4088_v7 }
0x1be4   :  { %v4085_v10 = vpop.xlane.xlu0 %4084 }
0x1be5   :  { %6857 = vpow2.f32 %v4094_v40  ;;  %v4089_v11 = vsub.f32 %v6166_v58, %v4085_v10 }
0x1be7   :  { %v4096_v12 = vmul.f32 1.442695, %v4089_v11 }
0x1be8   :  { %v4103_v18 = vpop.xlane.xlu0 %4102 }
0x1be9   :  { %6859 = vpow2.f32 %v4096_v12 }
0x1bea   :  { %6861 = vrcp.f32 %v4103_v18 }
0x1bef   :  { %v6858_v13 = vpop.eup %6857 }
0x1bf0   :  { %v4104_v14 = vsel %vm568_vm7, %v6858_v13, 0.0 }
0x1bf1   :  { %4105 = vadd.xlane.f32.xlu1 %v4104_v14 }
0x1bf3   :  { %v6860_v8 = vpop.eup %6859 }
0x1bf4   :  { %v4107_v15 = vsel %vm568_vm7, %v6860_v8, 0.0  ;;  %v6862_v51 = vpop.eup %6861 }
0x1bf5   :  { %4108 = vadd.xlane.f32.xlu0 %v4107_v15  ;;  %v4115_v46 = vmul.f32 %v6862_v51, %v6854_v0 }
0x1c02   :  { %6694 = vrot.lane.b32.xlu1 %v7504_v4, %s6931_s17 }
0x1c06   :  { %6704 = vrot.lane.b32.xlu1 %v7504_v4, %s7852_s28 }
0x1c0a   :  { %6709 = vrot.lane.b32.xlu1 %v7516_v34, %s7852_s28 }
0x1c0b   :  { %6699 = vrot.lane.b32.xlu0 %v7516_v34, %s6931_s17  ;;  %s7854_s17 = smov 40  }
0x1c0e   :  { %4395 = vrot.lane.b32.xlu1 %v7496_v2, %s7853_s16 }
0x1c0f   :  { %4393 = vrot.lane.b32.xlu0 %v7498_v3, %s7853_s16 }
0x1c12   :  { %4486 = vrot.lane.b32.xlu1 %v7506_v27, %s7853_s16 }
0x1c13   :  { %4484 = vrot.lane.b32.xlu0 %v7510_v39, %s7853_s16 }
0x1c7e   :  { %v4106_v19 = vpop.xlane.xlu1 %4105 }
0x1c7f   :  { %6863 = vrcp.f32 %v4106_v19 }
0x1c82   :  { %v6695_v2 = vpop.permute.xlu1 %6694  ;;  %v4109_v49 = vpop.xlane.xlu0 %4108 }
0x1c83   :  { %v6697_v20 = vunpack.i.h.bf16 %v6695_v2  ;;  %v6696_v38 = vunpack.i.l.bf16 %v6695_v2  ;;  %6865 = vrcp.f32 %v4109_v49 }
0x1c85   :  { %v6465_v21 = vpack.c.bf16 %v6697_v20, %v6696_v38 }
0x1c86   :  { %v6705_v3 = vpop.permute.xlu1 %6704  ;;  %v6700_v22 = vpop.permute.xlu0 %6699 }
0x1c87   :  { %v6707_v23 = vunpack.i.h.bf16 %v6705_v3  ;;  %v6706_v24 = vunpack.i.l.bf16 %v6705_v3  ;;  %v6702_v43 = vunpack.i.h.bf16 %v6700_v22  ;;  %v6701_v27 = vunpack.i.l.bf16 %v6700_v22  ;;  %6466 = vmatprep.subr.bf16.mxu1 %v6465_v21 }
0x1c88   :  { %6468 = vmatpush3.bf16.msra.mxu1 %v6465_v21 }
0x1c89   :  { %v6864_v39 = vpop.eup %6863  ;;  %v6469_v16 = vpack.c.bf16 %v6702_v43, %v6701_v27  ;;  %v6473_v30 = vpack.c.bf16 %v6707_v23, %v6706_v24 }
0x1c8a   :  { %v6710_v36 = vpop.permute.xlu1 %6709  ;;  %v4116_v29 = vmul.f32 %v6864_v39, %v6858_v13  ;;  %v4394_v44 = vpop.permute.xlu0 %4393 }
0x1c8b   :  { %v6712_v32 = vunpack.i.h.bf16 %v6710_v36  ;;  %v6711_v35 = vunpack.i.l.bf16 %v6710_v36  ;;  %6172 = vmatmul.mubr.msk.f32.vlgmr.msra.gmra.mrb[40].mxu1 %vm568_vm7, %v4115_v46  ;;  %6470 = vmatprep.subr.bf16.mxu1 %v6469_v16 }
0x1c8c   :  { %6472 = vmatpush3.bf16.msra.mxu1 %v6469_v16  ;;  %6178 = vmatprep.mubr.msk.f32.mxu1 %vm568_vm7, %v4116_v29 }
0x1c8d   :  { %v6866_v37 = vpop.eup %6865  ;;  %v6479_v41 = vpack.c.bf16 %v6712_v32, %v6711_v35  ;;  %6475 = vmatprep.subr.msk.bf16.mxu1 %vm7183_vm6, %v6473_v30 }
0x1c8e   :  { %v4117_v25 = vmul.f32 %v6866_v37, %v6860_v8  ;;  %v4396_v9 = vpop.permute.xlu1 %4395  ;;  %v4485_v52 = vpop.permute.xlu0 %4484 }
0x1c8f   :  { %6481 = vmatprep.subr.msk.bf16.mxu0 %vm7183_vm6, %v6479_v41 }
0x1c90   :  { %6179 = vmatmul.mubr.msk.f32.vlgmr.msra.gmra.mrb[42].mxu1 %vm568_vm7, %v4117_v25 }
0x1c91   :  { %6193 = vmatprep.mubr.msk.f32.mxu1 %vm395_vm5, %v4394_v44 }
0x1c92   :  { %v4487_v53 = vpop.permute.xlu1 %4486 }
0x1c95   :  { %6478 = vmatpush3.bf16.xpose.msk.msra.mxu1 %vm7183_vm6, %v6473_v30  ;;  %v5487_v30 = vld [vmem:[%s7833_s5 + $0x38] sm:$0xff] }
0x1c9c   :  { %6194 = vmatmul.mubr.msk.f32.vlgmr.msra.gmra.mrb[44].mxu1 %vm395_vm5, %v4396_v9  ;;  %v5506_v9 = vld [vmem:[%s7834_s6 + $0x1] ss:$0 sm:$0xff] }
0x1d5e   :  { %v6173_v45 = vpop.f32.mrb[40].mxu1 }
0x1d5f   :  { %v4196_v47 = vpop.f32.mrb[41].mxu1 }
0x1d60   :  { %6183 = vmatprep.mubr.msk.f32.mxu0 %vm395_vm5, %v4196_v47 }
0x1d61   :  { %6184 = vmatmul.mubr.msk.f32.vlgmr.msra.gmra.mrb[30].mxu0 %vm395_vm5, %v6173_v45 }
0x1d62   :  { %6484 = vmatpush3.bf16.xpose.msk.msra.mxu0 %vm7183_vm6, %v6479_v41 }
0x1d63   :  { %v6180_v48 = vpop.f32.mrb[42].mxu1 }
0x1d64   :  { %v4283_v50 = vpop.f32.mrb[43].mxu1 }
0x1d65   :  { %6186 = vmatprep.mubr.msk.f32.mxu0 %vm395_vm5, %v4283_v50 }
0x1d66   :  { %6187 = vmatmul.mubr.msk.f32.gmra.mrb[32].mxu0 %vm395_vm5, %v6180_v48 }
0x1d67   :  { %6200 = vmatprep.mubr.msk.f32.mxu0 %vm395_vm5, %v4485_v52 }
0x1d6a   :  { %6201 = vmatmul.mubr.msk.f32.vlgmr.msra.gmra.mrb[40].mxu0 %vm395_vm5, %v4487_v53 }
0x1d6f   :  { %v6195_v54 = vpop.f32.mrb[44].mxu1 }
0x1d70   :  { %v4475_v55 = vpop.f32.mrb[45].mxu1  ;;  %v4578_v56 = vsel %vm568_vm7, %v6195_v54, -inf }
0x1d71   :  { %4579 = vmax.xlane.f32.xlu1 %v4578_v56  ;;  %v4575_v42 = vsel %vm568_vm7, %v4475_v55, -inf }
0x1d72   :  { %4576 = vmax.xlane.f32.xlu0 %v4575_v42 }
0x1dfe   :  { %v4580_v0 = vpop.xlane.xlu1 %4579 }
0x1dff   :  { %v4577_v57 = vpop.xlane.xlu0 %4576  ;;  %v4588_v1 = vsub.f32 %v6195_v54, %v4580_v0 }
0x1e00   :  { %v4587_v58 = vsub.f32 %v4475_v55, %v4577_v57 }
0x1e01   :  { %v4593_v61 = vmul.f32 1.442695, %v4588_v1 }
0x1e02   :  { %v4591_v31 = vmul.f32 1.442695, %v4587_v58 }
0x1e04   :  { %6867 = vpow2.f32 %v4591_v31 }
0x1e05   :  { %6869 = vpow2.f32 %v4593_v61 }
0x1e0e   :  { %v6868_v59 = vpop.eup %6867 }
0x1e0f   :  { %v4599_v60 = vsel %vm568_vm7, %v6868_v59, 0.0  ;;  %v6870_v40 = vpop.eup %6869 }
0x1e10   :  { %4600 = vadd.xlane.f32.xlu1 %v4599_v60  ;;  %v4602_v10 = vsel %vm568_vm7, %v6870_v40, 0.0 }
0x1e3d   :  { %v6202_v5 = vpop.f32.mrb[40].mxu0 }
0x1e3e   :  { %v4566_v63 = vpop.f32.mrb[41].mxu0  ;;  %v4584_v7 = vsel %vm568_vm7, %v6202_v5, -inf }
0x1e3f   :  { %v4581_v6 = vsel %vm568_vm7, %v4566_v63, -inf }
0x1e40   :  { %4582 = vmax.xlane.f32.xlu0 %v4581_v6 }
0x1e44   :  { %4585 = vmax.xlane.f32.xlu0 %v4584_v7 }
0x1e48   :  { %4603 = vadd.xlane.f32.xlu0 %v4602_v10 }
0x1e9d   :  { %v4601_v11 = vpop.xlane.xlu1 %4600 }
0x1e9e   :  { %6871 = vrcp.f32 %v4601_v11 }
0x1ea8   :  { %v6872_v12 = vpop.eup %6871 }
0x1ea9   :  { %v4615_v13 = vmul.f32 %v6872_v12, %v6868_v59 }
0x1eab   :  { %6207 = vmatprep.mubr.msk.f32.mxu1 %vm568_vm7, %v4615_v13 }
0x1ecd   :  { %v4583_v14 = vpop.xlane.xlu0 %4582 }
0x1ece   :  { %v4589_v8 = vsub.f32 %v4566_v63, %v4583_v14 }
0x1ed0   :  { %v4595_v15 = vmul.f32 1.442695, %v4589_v8 }
0x1ed1   :  { %v4586_v17 = vpop.xlane.xlu0 %4585 }
0x1ed2   :  { %6873 = vpow2.f32 %v4595_v15  ;;  %v4590_v18 = vsub.f32 %v6202_v5, %v4586_v17 }
0x1ed4   :  { %v4597_v19 = vmul.f32 1.442695, %v4590_v18 }
0x1ed5   :  { %v4604_v21 = vpop.xlane.xlu0 %4603 }
0x1ed6   :  { %6875 = vpow2.f32 %v4597_v19  ;;  %v5563_v19 = vld [vmem:[%s7835_s7 + $0x20] sm:$0xff] }
0x1ed7   :  { %6877 = vrcp.f32 %v4604_v21 }
0x1edc   :  { %v6874_v2 = vpop.eup %6873 }
0x1edd   :  { %v4605_v49 = vsel %vm568_vm7, %v6874_v2, 0.0 }
0x1ede   :  { %4606 = vadd.xlane.f32.xlu1 %v4605_v49  ;;  %v5565_v49 = vld [vmem:[%s7835_s7 + $0x30] sm:$0xff] }
0x1ee0   :  { %v6876_v20 = vpop.eup %6875 }
0x1ee1   :  { %v4608_v38 = vsel %vm568_vm7, %v6876_v20, 0.0  ;;  %v6878_v27 = vpop.eup %6877 }
0x1ee2   :  { %4609 = vadd.xlane.f32.xlu0 %v4608_v38  ;;  %v4616_v36 = vmul.f32 %v6878_v27, %v6870_v40  ;;  %v5566_v38 = vld [vmem:[%s7835_s7 + $0x38] sm:$0xff]  ;;  %v5577_v27 = vld [vmem:[%s7837_s9 + $0x60] sm:$0xff] }
0x1ee3   :  { %v6497_v21 = vpack.c.bf16 %v5566_v38, %v5565_v49 }
0x1eef   :  { %6714 = vrot.lane.b32.xlu1 %v7504_v4, %s7854_s17 }
0x1ef8   :  { %6719 = vrot.lane.b32.xlu0 %v7516_v34, %s7854_s17 }
0x1f6b   :  { %v4607_v51 = vpop.xlane.xlu1 %4606 }
0x1f6c   :  { %6879 = vrcp.f32 %v4607_v51  ;;  %v5573_v51 = vld [vmem:[%s7837_s9 + $0x40] sm:$0xff] }
0x1f6f   :  { %v6715_v3 = vpop.permute.xlu1 %6714  ;;  %v4610_v22 = vpop.xlane.xlu0 %4609 }
0x1f70   :  { %v6717_v23 = vunpack.i.h.bf16 %v6715_v3  ;;  %v6716_v24 = vunpack.i.l.bf16 %v6715_v3  ;;  %6881 = vrcp.f32 %v4610_v22  ;;  %v5574_v3 = vld [vmem:[%s7837_s9 + $0x48] sm:$0xff]  ;;  %v5575_v22 = vld [vmem:[%s7837_s9 + $0x50] sm:$0xff] }
0x1f72   :  { %v6485_v43 = vpack.c.bf16 %v6717_v23, %v6716_v24  ;;  %v6501_v23 = vpack.c.bf16 %v5574_v3, %v5573_v51  ;;  %v5576_v24 = vld [vmem:[%s7837_s9 + $0x58] sm:$0xff] }
0x1f73   :  { %v6720_v39 = vpop.permute.xlu0 %6719 }
0x1f74   :  { %v6722_v46 = vunpack.i.h.bf16 %v6720_v39  ;;  %v6721_v16 = vunpack.i.l.bf16 %v6720_v39  ;;  %6486 = vmatprep.subr.bf16.mxu1 %v6485_v43  ;;  %v5578_v39 = vld [vmem:[%s7837_s9 + $0x68] sm:$0xff] }
0x1f75   :  { %6488 = vmatpush3.bf16.msra.mxu1 %v6485_v43  ;;  %v6505_v43 = vpack.c.bf16 %v5576_v24, %v5575_v22 }
0x1f76   :  { %v6880_v4 = vpop.eup %6879  ;;  %v6489_v29 = vpack.c.bf16 %v6722_v46, %v6721_v16  ;;  %v6509_v46 = vpack.c.bf16 %v5578_v39, %v5577_v27 }
0x1f77   :  { %v4617_v34 = vmul.f32 %v6880_v4, %v6874_v2  ;;  %v5564_v2 = vld [vmem:[%s7835_s7 + $0x28] sm:$0xff] }
0x1f78   :  { %6208 = vmatmul.mubr.msk.f32.vlgmr.msra.gmra.mrb[46].mxu1 %vm568_vm7, %v4616_v36  ;;  %6490 = vmatprep.subr.bf16.mxu0 %v6489_v29 }
0x1f79   :  { %6492 = vmatpush3.bf16.msra.mxu0 %v6489_v29  ;;  %6214 = vmatprep.mubr.msk.f32.mxu0 %vm568_vm7, %v4617_v34 }
0x1f7a   :  { %v6882_v32 = vpop.eup %6881  ;;  %6217 = vmatprep.subr.mxu0 %v5487_v30 }
0x1f7b   :  { %v4618_v35 = vmul.f32 %v6882_v32, %v6876_v20  ;;  %v6493_v20 = vpack.c.bf16 %v5564_v2, %v5563_v19 }
0x1f7d   :  { %6215 = vmatmul.mubr.msk.f32.vlgmr.msra.gmra.mrb[42].mxu0 %vm568_vm7, %v4618_v35  ;;  %6494 = vmatprep.subr.bf16.mxu1 %v6493_v20 }
0x1f7e   :  { %6218 = vmatpush3.msra.mxu0 %v5487_v30  ;;  %6496 = vmatpush3.bf16.msra.mxu1 %v6493_v20 }
0x1f7f   :  { %6498 = vmatprep.subr.bf16.mxu1 %v6497_v21  ;;  %6502 = vmatprep.subr.bf16.mxu0 %v6501_v23 }
0x1f82   :  { %6500 = vmatpush3.bf16.msra.mxu1 %v6497_v21 }
0x204b   :  { %v6209_v37 = vpop.f32.mrb[46].mxu1 }
0x204c   :  { %v4697_v41 = vpop.f32.mrb[47].mxu1 }
0x204d   :  { %6219 = vmatprep.mubr.msk.f32.mxu0 %vm395_vm5, %v4697_v41 }
0x204e   :  { %6220 = vmatmul.mubr.msk.f32.vlgmr.msra.gmra.mrb[30].mxu0 %vm395_vm5, %v6209_v37 }
0x204f   :  { %6504 = vmatpush3.bf16.msra.mxu0 %v6501_v23 }
0x2050   :  { %v6216_v25 = vpop.f32.mrb[42].mxu0  ;;  %6506 = vmatprep.subr.bf16.mxu0 %v6505_v43 }
0x2051   :  { %v4784_v44 = vpop.f32.mrb[43].mxu0 }
0x2052   :  { %6222 = vmatprep.mubr.msk.f32.mxu0 %vm395_vm5, %v4784_v44 }
0x2053   :  { %6223 = vmatmul.mubr.msk.f32.gmra.mrb[32].mxu0 %vm395_vm5, %v6216_v25 }
0x2054   :  { %6508 = vmatpush3.bf16.msra.mxu0 %v6505_v43 }
0x2055   :  { %6510 = vmatprep.subr.bf16.mxu0 %v6509_v46 }
0x2058   :  { %6512 = vmatpush3.bf16.msra.mxu0 %v6509_v46 }
0x2121   :  { %v6221_v45 = vpop.f32.mrb[30].mxu0 }
0x2122   :  { %v6521_v47 = vadd.f32 %v6221_v45, %v5506_v9  ;;  %v4871_v48 = vpop.f32.mrb[31].mxu0  ;;  %v5561_v45 = vld [vmem:[%s7839_s11 + $0x1] ss:$0 sm:$0xff] }
0x2123   :  { %v6522_v50 = vadd.f32 %v5506_v9, %v4871_v48 }
0x2124   :  { %v4895_v52 = vadd.f32 %v6521_v47, %v7479_v26 }
0x2125   :  { %v4894_v53 = vadd.f32 %v6522_v50, %v7477_v28 }
0x2126   :  { %v6224_v54 = vpop.f32.mrb[32].mxu0  ;;  %v4905_v55 = vsel %vm291_vm4, %v4895_v52, 0.0 }
0x2127   :  { %v6523_v56 = vadd.f32 %v6224_v54, %v5506_v9  ;;  %4906 = vadd.xlane.f32.xlu0 %v4905_v55  ;;  %v4881_v42 = vpop.f32.mrb[33].mxu0  ;;  %v4902_v57 = vsel %vm291_vm4, %v4894_v53, 0.0 }
0x2128   :  { %v6524_v58 = vadd.f32 %v5506_v9, %v4881_v42  ;;  %4903 = vadd.xlane.f32.xlu1 %v4902_v57 }
0x2129   :  { %v4897_v31 = vadd.f32 %v6523_v56, %v7487_v62 }
0x212a   :  { %v4896_v59 = vadd.f32 %v6524_v58, %v7485_v33 }
0x212b   :  { %v4911_v60 = vsel %vm291_vm4, %v4897_v31, 0.0 }
0x212c   :  { %4912 = vadd.xlane.f32.xlu0 %v4911_v60  ;;  %v4908_v26 = vsel %vm291_vm4, %v4896_v59, 0.0 }
0x212d   :  { %4909 = vadd.xlane.f32.xlu1 %v4908_v26 }
0x21b4   :  { %v4907_v28 = vpop.xlane.xlu0 %4906 }
0x21b5   :  { %v4915_v0 = vmul.f32 0.03125, %v4907_v28  ;;  %v4904_v1 = vpop.xlane.xlu1 %4903 }
0x21b6   :  { %v4914_v61 = vmul.f32 0.03125, %v4904_v1  ;;  %v5580_v1 = vld [vmem:[%s7837_s9 + $0x78] sm:$0xff] }
0x21b7   :  { %v7707_v5 = vsub.f32 %v4895_v52, %v4915_v0  ;;  %v5562_v52 = vld [vmem:[%s7840_s12 + $0x1] ss:$0 sm:$0xff]  ;;  %v5579_v0 = vld [vmem:[%s7837_s9 + $0x70] sm:$0xff] }
0x21b8   :  { %v7709_v63 = vsub.f32 %v4894_v53, %v4914_v61  ;;  %v6513_v61 = vpack.c.bf16 %v5580_v1, %v5579_v0 }
0x21b9   :  { %v4913_v6 = vpop.xlane.xlu0 %4912  ;;  %v4923_v62 = vmul.f32 %v7707_v5, %v7707_v5 }
0x21ba   :  { %v4917_v7 = vmul.f32 0.03125, %v4913_v6  ;;  %v4910_v33 = vpop.xlane.xlu1 %4909  ;;  %v4922_v40 = vmul.f32 %v7709_v63, %v7709_v63  ;;  %6514 = vmatprep.subr.bf16.mxu0 %v6513_v61 }
0x21bb   :  { %v4916_v10 = vmul.f32 0.03125, %v4910_v33  ;;  %v4929_v11 = vsel %vm291_vm4, %v4923_v62, 0.0  ;;  %6516 = vmatpush3.bf16.msra.mxu0 %v6513_v61 }
0x21bc   :  { %v7716_v12 = vsub.f32 %v4897_v31, %v4917_v7  ;;  %4930 = vadd.xlane.f32.xlu0 %v4929_v11  ;;  %v4926_v13 = vsel %vm291_vm4, %v4922_v40, 0.0 }
0x21bd   :  { %v4920_v14 = vsub.f32 %v4896_v59, %v4916_v10  ;;  %4927 = vadd.xlane.f32.xlu1 %v4926_v13 }
0x21be   :  { %v4925_v8 = vmul.f32 %v7716_v12, %v7716_v12 }
0x21bf   :  { %v4924_v15 = vmul.f32 %v4920_v14, %v4920_v14 }
0x21c0   :  { %v4935_v17 = vsel %vm291_vm4, %v4925_v8, 0.0 }
0x21c1   :  { %4936 = vadd.xlane.f32.xlu0 %v4935_v17  ;;  %v4932_v18 = vsel %vm291_vm4, %v4924_v15, 0.0  ;;  %v5582_v15 = vld [vmem:[%s7838_s10 + $0x1] ss:$0 sm:$0xff] }
0x21c2   :  { %4933 = vadd.xlane.f32.xlu1 %v4932_v18 }
0x2249   :  { %v4931_v16 = vpop.xlane.xlu0 %4930 }
0x224a   :  { %v4939_v4 = vmul.f32 0.03125, %v4931_v16  ;;  %v4928_v36 = vpop.xlane.xlu1 %4927 }
0x224b   :  { %v4938_v29 = vmul.f32 0.03125, %v4928_v36 }
0x224c   :  { %v4943_v34 = vadd.f32 1e-05, %v4939_v4 }
0x224d   :  { %v4942_v30 = vadd.f32 1e-05, %v4938_v29 }
0x224e   :  { %6883 = vrsqrt.f32 %v4943_v34  ;;  %v4937_v32 = vpop.xlane.xlu0 %4936 }
0x224f   :  { %6885 = vrsqrt.f32 %v4942_v30  ;;  %v4941_v35 = vmul.f32 0.03125, %v4937_v32  ;;  %v4934_v37 = vpop.xlane.xlu1 %4933 }
0x2250   :  { %v4940_v41 = vmul.f32 0.03125, %v4934_v37 }
0x2251   :  { %v4945_v25 = vadd.f32 1e-05, %v4941_v35 }
0x2252   :  { %v4944_v44 = vadd.f32 1e-05, %v4940_v41 }
0x2253   :  { %6887 = vrsqrt.f32 %v4945_v25 }
0x2254   :  { %6889 = vrsqrt.f32 %v4944_v44 }
0x2258   :  { %v6884_v9 = vpop.eup %6883 }
0x2259   :  { %v6886_v47 = vpop.eup %6885  ;;  %v4951_v48 = vmul.f32 %v6884_v9, %v7707_v5  ;;  %v5568_v5 = vld [vmem:[%s7836_s8 + $0x1] ss:$0 sm:$0xff] }
0x225a   :  { %v4950_v50 = vmul.f32 %v6886_v47, %v7709_v63 }
0x225b   :  { %v4961_v53 = vmul.f32 %v5561_v45, %v4951_v48 }
0x225c   :  { %v4960_v54 = vmul.f32 %v5561_v45, %v4950_v50 }
0x225d   :  { %v6888_v55 = vpop.eup %6887  ;;  %v4971_v58 = vadd.f32 %v5562_v52, %v4961_v53 }
0x225e   :  { %v6890_v56 = vpop.eup %6889  ;;  %v4970_v42 = vadd.f32 %v5562_v52, %v4960_v54  ;;  %v4953_v57 = vmul.f32 %v6888_v55, %v7716_v12 }
0x225f   :  { %v4952_v31 = vmul.f32 %v6890_v56, %v4920_v14 }
0x2260   :  { %6233 = vmatprep.mubr.msk.f32.mxu1 %vm291_vm4, %v4970_v42  ;;  %v4963_v59 = vmul.f32 %v5561_v45, %v4953_v57 }
0x2261   :  { %6234 = vmatmul.mubr.msk.f32.vlgmr.msra.gmra.mrb[48].mxu1 %vm291_vm4, %v4971_v58  ;;  %v4962_v60 = vmul.f32 %v5561_v45, %v4952_v31 }
0x2262   :  { %v4973_v28 = vadd.f32 %v5562_v52, %v4963_v59 }
0x2263   :  { %v4972_v26 = vadd.f32 %v5562_v52, %v4962_v60 }
0x2265   :  { %6236 = vmatprep.mubr.msk.f32.mxu1 %vm291_vm4, %v4972_v26 }
0x2266   :  { %6237 = vmatmul.mubr.msk.f32.gmra.mrb[50].mxu1 %vm291_vm4, %v4973_v28 }
0x2334   :  { %v6235_v63 = vpop.f32.mrb[48].mxu1 }
0x2335   :  { %v5071_v6 = vadd.f32 %v6235_v63, %v5568_v5  ;;  %v5065_v62 = vpop.f32.mrb[49].mxu1 }
0x2336   :  { %v5066_v7 = vadd.f32 %v5568_v5, %v5065_v62  ;;  %v5590_v62 = vld [vmem:[%s7842_s14 + $0x1] ss:$0 sm:$0xff] }
0x2337   :  { %v5085_v40 = vmax.f32 %v5071_v6, 0.0 }
0x2338   :  { %v5084_v33 = vmax.f32 %v5066_v7, 0.0 }
0x2339   :  { %v6238_v10 = vpop.f32.mrb[50].mxu1 }
0x233a   :  { %v5081_v11 = vadd.f32 %v6238_v10, %v5568_v5  ;;  %v5075_v12 = vpop.f32.mrb[51].mxu1  ;;  %6255 = vmatprep.mubr.msk.f32.mxu0 %vm2599_vm8, %v5084_v33 }
0x233b   :  { %v5076_v13 = vadd.f32 %v5568_v5, %v5075_v12  ;;  %6256 = vmatmul.mubr.msk.f32.vlgmr.msra.gmra.mrb[44].mxu0 %vm2599_vm8, %v5085_v40  ;;  %v5589_v5 = vld [vmem:[%s7841_s13 + $0x1] ss:$0 sm:$0xff]  ;;  %s6936_s13 = smov [#allocation2]  }
0x233c   :  { %v5087_v8 = vmax.f32 %v5081_v11, 0.0  ;;  %s5386_s14 = sshll.u32 %s6936_s13, 4  ;;  %s5387_s14 = int_to_ptr.vmem [resolvable:$true] %s5386_s14 }
0x233d   :  { %v5086_v14 = vmax.f32 %v5076_v13, 0.0  ;;  %p6904_p1 = scmp.lt.s32.totalorder %s5387_s14, %s5387_s14 }
0x233f   :  { %6258 = vmatprep.mubr.msk.f32.mxu0 %vm2599_vm8, %v5086_v14 }
0x2340   :  { %6259 = vmatmul.mubr.msk.f32.gmra.mrb[46].mxu0 %vm2599_vm8, %v5087_v8 }
0x240e   :  { %v6257_v17 = vpop.f32.mrb[44].mxu0 }
0x240f   :  { %v5189_v18 = vadd.f32 %v6257_v17, %v5582_v15  ;;  %v5183_v19 = vpop.f32.mrb[45].mxu0 }
0x2410   :  { %v5184_v2 = vadd.f32 %v5582_v15, %v5183_v19 }
0x2411   :  { %v5203_v49 = vadd.f32 %v5189_v18, %v4971_v58 }
0x2412   :  { %v5202_v20 = vadd.f32 %v5184_v2, %v4970_v42 }
0x2413   :  { %v6260_v38 = vpop.f32.mrb[46].mxu0  ;;  %v5213_v21 = vsel %vm291_vm4, %v5203_v49, 0.0 }
0x2414   :  { %v5199_v51 = vadd.f32 %v6260_v38, %v5582_v15  ;;  %5214 = vadd.xlane.f32.xlu0 %v5213_v21  ;;  %v5193_v3 = vpop.f32.mrb[47].mxu0  ;;  %v5210_v22 = vsel %vm291_vm4, %v5202_v20, 0.0 }
0x2415   :  { %v5194_v23 = vadd.f32 %v5582_v15, %v5193_v3  ;;  %5211 = vadd.xlane.f32.xlu1 %v5210_v22 }
0x2416   :  { %v5205_v24 = vadd.f32 %v5199_v51, %v4973_v28 }
0x2417   :  { %v5204_v43 = vadd.f32 %v5194_v23, %v4972_v26 }
0x2418   :  { %v5219_v27 = vsel %vm291_vm4, %v5205_v24, 0.0 }
0x2419   :  { %5220 = vadd.xlane.f32.xlu0 %v5219_v27  ;;  %v5216_v39 = vsel %vm291_vm4, %v5204_v43, 0.0 }
0x241a   :  { %5217 = vadd.xlane.f32.xlu1 %v5216_v39 }
0x24a1   :  { %v5215_v46 = vpop.xlane.xlu0 %5214 }
0x24a2   :  { %v5223_v16 = vmul.f32 0.03125, %v5215_v46  ;;  %v5212_v4 = vpop.xlane.xlu1 %5211 }
0x24a3   :  { %v5222_v36 = vmul.f32 0.03125, %v5212_v4 }
0x24a4   :  { %v5227_v29 = vsub.f32 %v5203_v49, %v5223_v16 }
0x24a5   :  { %v5226_v34 = vsub.f32 %v5202_v20, %v5222_v36 }
0x24a6   :  { %v5221_v30 = vpop.xlane.xlu0 %5220  ;;  %v5231_v32 = vmul.f32 %v5227_v29, %v5227_v29 }
0x24a7   :  { %v5225_v35 = vmul.f32 0.03125, %v5221_v30  ;;  %v5218_v37 = vpop.xlane.xlu1 %5217  ;;  %v5230_v41 = vmul.f32 %v5226_v34, %v5226_v34 }
0x24a8   :  { %v5224_v25 = vmul.f32 0.03125, %v5218_v37  ;;  %v5237_v44 = vsel %vm291_vm4, %v5231_v32, 0.0 }
0x24a9   :  { %v5229_v9 = vsub.f32 %v5205_v24, %v5225_v35  ;;  %5238 = vadd.xlane.f32.xlu0 %v5237_v44  ;;  %v5234_v45 = vsel %vm291_vm4, %v5230_v41, 0.0 }
0x24aa   :  { %v5228_v47 = vsub.f32 %v5204_v43, %v5224_v25  ;;  %5235 = vadd.xlane.f32.xlu1 %v5234_v45 }
0x24ab   :  { %v5233_v48 = vmul.f32 %v5229_v9, %v5229_v9 }
0x24ac   :  { %v5232_v50 = vmul.f32 %v5228_v47, %v5228_v47 }
0x24ad   :  { %v5243_v52 = vsel %vm291_vm4, %v5233_v48, 0.0 }
0x24ae   :  { %5244 = vadd.xlane.f32.xlu0 %v5243_v52  ;;  %v5240_v53 = vsel %vm291_vm4, %v5232_v50, 0.0 }
0x24af   :  { %5241 = vadd.xlane.f32.xlu1 %v5240_v53 }
0x2536   :  { %v5239_v54 = vpop.xlane.xlu0 %5238 }
0x2537   :  { %v5247_v55 = vmul.f32 0.03125, %v5239_v54  ;;  %v5236_v56 = vpop.xlane.xlu1 %5235 }
0x2538   :  { %v5246_v42 = vmul.f32 0.03125, %v5236_v56 }
0x2539   :  { %v5251_v57 = vadd.f32 1e-05, %v5247_v55 }
0x253a   :  { %v5250_v58 = vadd.f32 1e-05, %v5246_v42 }
0x253b   :  { %6891 = vrsqrt.f32 %v5251_v57  ;;  %v5245_v31 = vpop.xlane.xlu0 %5244 }
0x253c   :  { %6893 = vrsqrt.f32 %v5250_v58  ;;  %v5249_v59 = vmul.f32 0.03125, %v5245_v31  ;;  %v5242_v60 = vpop.xlane.xlu1 %5241 }
0x253d   :  { %v5248_v26 = vmul.f32 0.03125, %v5242_v60 }
0x253e   :  { %v5253_v0 = vadd.f32 1e-05, %v5249_v59 }
0x253f   :  { %v5252_v28 = vadd.f32 1e-05, %v5248_v26 }
0x2541   :  { %6895 = vrsqrt.f32 %v5252_v28 }
0x2542   :  { %6897 = vrsqrt.f32 %v5253_v0 }
0x2545   :  { %v6892_v1 = vpop.eup %6891 }
0x2546   :  { %v6894_v61 = vpop.eup %6893  ;;  %v5259_v63 = vmul.f32 %v6892_v1, %v5227_v29 }
0x2547   :  { %v5258_v6 = vmul.f32 %v6894_v61, %v5226_v34 }
0x2548   :  { %v5269_v7 = vmul.f32 %v5589_v5, %v5259_v63 }
0x2549   :  { %v5268_v33 = vmul.f32 %v5589_v5, %v5258_v6 }
0x254a   :  { %v5279_v14 = vadd.f32 %v5590_v62, %v5269_v7 }
0x254b   :  { %v6896_v40 = vpop.eup %6895  ;;  %v5278_v10 = vadd.f32 %v5590_v62, %v5268_v33 }
0x254c   :  { %v5260_v11 = vmul.f32 %v6896_v40, %v5228_v47  ;;  %v6898_v8 = vpop.eup %6897  ;;  %v5304_v18 = vrot.slane %v5279_v14, 2  ;;  %v5300_v19 = vrot.slane %v5279_v14, 1  ;;  %v5308_v21 = vrot.slane %v5279_v14, 3 }
0x254d   :  { %v5287_v12 = vrot.slane %v5278_v10, 2  ;;  %v5283_v13 = vrot.slane %v5278_v10, 1  ;;  %v5261_v17 = vmul.f32 %v6898_v8, %v5229_v9  ;;  %v5291_v20 = vrot.slane %v5278_v10, 3 }
0x254e   :  { %v5270_v15 = vmul.f32 %v5589_v5, %v5260_v11 }
0x254f   :  { %5288 = vrot.lane.b32.xlu0 %v5287_v12, %s6925_s23  ;;  %5284 = vrot.lane.b32.xlu1 %v5283_v13, %s6935_s27  ;;  %v5271_v49 = vmul.f32 %v5589_v5, %v5261_v17 }
0x2550   :  { %v5280_v2 = vadd.f32 %v5590_v62, %v5270_v15 }
0x2551   :  { %v5281_v3 = vadd.f32 %v5590_v62, %v5271_v49 }
0x2552   :  { %v5316_v38 = vrot.slane %v5280_v2, 1  ;;  %v5324_v51 = vrot.slane %v5280_v2, 3  ;;  %v5320_v24 = vrot.slane %v5280_v2, 2 }
0x2553   :  { %5305 = vrot.lane.b32.xlu0 %v5304_v18, %s6925_s23  ;;  %5301 = vrot.lane.b32.xlu1 %v5300_v19, %s6935_s27  ;;  %v5332_v22 = vrot.slane %v5281_v3, 1  ;;  %v5336_v23 = vrot.slane %v5281_v3, 2  ;;  %v5340_v43 = vrot.slane %v5281_v3, 3 }
0x2557   :  { %5292 = vrot.lane.b32.xlu1 %v5291_v20, %s6924_s22  ;;  %5317 = vrot.lane.b32.xlu0 %v5316_v38, %s6935_s27 }
0x255b   :  { %5309 = vrot.lane.b32.xlu1 %v5308_v21, %s6924_s22  ;;  %5325 = vrot.lane.b32.xlu0 %v5324_v51, %s6924_s22 }
0x255f   :  { %5333 = vrot.lane.b32.xlu1 %v5332_v22, %s6935_s27  ;;  %5337 = vrot.lane.b32.xlu0 %v5336_v23, %s6925_s23 }
0x2563   :  { %5321 = vrot.lane.b32.xlu1 %v5320_v24, %s6925_s23 }
0x2567   :  { %5341 = vrot.lane.b32.xlu1 %v5340_v43, %s6924_s22  ;;  %s6899_s22 = scalar_lea.vmem %s5387_s14, 128 }
0x2568   :  { %p6900_p0 = scmp.ne.s32.totalorder %s5387_s14, %s6899_s22  ;;  %p6905_p2 = scmp.lt.s32.totalorder %s6899_s22, %s6899_s22 }
0x256a   :  { %p6906_p3 = por %p6905_p2, %p6904_p1 }
0x256c   :  { %p6907_p4 = pnand %p6906_p3, %p6900_p0 }
0x25c1   :  { %v5289_v27 = vpop.permute.xlu0 %5288  ;;  %v5285_v39 = vpop.permute.xlu1 %5284 }
0x25c2   :  { %v5295_v36 = vsel %vm291_vm4, %v5278_v10, %v5285_v39 }
0x25c3   :  { %v5296_v30 = vsel %vm2599_vm8, %v5295_v36, %v5289_v27 }
0x25c5   :  { %v5306_v46 = vpop.permute.xlu0 %5305  ;;  %v5302_v16 = vpop.permute.xlu1 %5301 }
0x25c6   :  { %v5312_v34 = vsel %vm291_vm4, %v5279_v14, %v5302_v16 }
0x25c7   :  { %v5313_v37 = vsel %vm2599_vm8, %v5312_v34, %v5306_v46 }
0x25c9   :  { %v5293_v4 = vpop.permute.xlu1 %5292  ;;  %v5318_v29 = vpop.permute.xlu0 %5317 }
0x25ca   :  { %v5298_v35 = vsel %vm5297_vm9, %v5296_v30, %v5293_v4  ;;  %v5328_v47 = vsel %vm291_vm4, %v5280_v2, %v5318_v29 }
0x25cb   :  { %v5348_v44 = vrot.slane %v5298_v35, 3 }
0x25cd   :  { %v5310_v32 = vpop.permute.xlu1 %5309  ;;  %v5326_v25 = vpop.permute.xlu0 %5325  ;;  %v5366_v48 = vsel %vm5365_vm10, %v5298_v35, %v5348_v44 }
0x25ce   :  { %v5314_v41 = vsel %vm5297_vm9, %v5313_v37, %v5310_v32 }
0x25cf   :  { %v5351_v45 = vrot.slane %v5314_v41, 6  ;;  %v5353_v50 = vrot.slane %v5314_v41, 1 }
0x25d1   :  { %v5334_v9 = vpop.permute.xlu1 %5333  ;;  %v5368_v53 = vsel %vm5367_vm11, %v5366_v48, %v5351_v45  ;;  %v5338_v54 = vpop.permute.xlu0 %5337 }
0x25d2   :  { %v5344_v55 = vsel %vm291_vm4, %v5281_v3, %v5334_v9  ;;  %v5370_v31 = vsel %vm5369_vm12, %v5368_v53, %v5353_v50 }
0x25d3   :  { %v5345_v59 = vsel %vm2599_vm8, %v5344_v55, %v5338_v54 }
0x25d5   :  { %v5322_v52 = vpop.permute.xlu1 %5321 }
0x25d6   :  { %v5329_v56 = vsel %vm2599_vm8, %v5328_v47, %v5322_v52 }
0x25d7   :  { %v5330_v42 = vsel %vm5297_vm9, %v5329_v56, %v5326_v25 }
0x25d8   :  { %v5356_v57 = vrot.slane %v5330_v42, 4  ;;  %v5358_v58 = vrot.slane %v5330_v42, 7 }
0x25d9   :  { %v5342_v60 = vpop.permute.xlu1 %5341 }
0x25da   :  { %v5346_v26 = vsel %vm5297_vm9, %v5345_v59, %v5342_v60  ;;  %v5372_v28 = vsel %vm5371_vm13, %v5370_v31, %v5356_v57 }
0x25db   :  { %v5361_v0 = vrot.slane %v5346_v26, 2  ;;  %v5363_v1 = vrot.slane %v5346_v26, 5  ;;  %v5374_v61 = vsel %vm5373_vm14, %v5372_v28, %v5358_v58 }
0x25dd   :  { %v5376_v5 = vsel %vm5375_vm15, %v5374_v61, %v5361_v0 }
0x25de   :  { %v5378_v63 = vsel %vm5377_vm0, %v5376_v5, %v5363_v1 }
0x25df   :  { %5379 = vst [vmem:[#allocation2] sm:$0xff] %v5378_v63 }
0x25e0   :  { %6910 = shalt.err (!%p6907_p4)
}
0x25e1   :  { %s6911_s16 = scalar_lea.hbm %s7843_s15, 128 }
0x25e2   :  { %p6912_p5 = scmp.ne.s32.totalorder %s7843_s15, %s6911_s16  ;;  %p6915_p6 = scmp.lt.u32.totalorder %s6911_s16, %s7843_s15 }
0x25e4   :  { %p6917_p7 = pnand %p6915_p6, %p6912_p5 }
0x25e6   :  { %6920 = shalt.err (!%p6917_p7)
}
0x25e7   :  { %5389 = dma.vmem_to_hbm [thread:$0]  %s5387_s14, 128, %s7843_s15, [#allocation3]  }
0x25e8   :  { %6921 = dma.done.wait [#allocation3], 128  }
0x25e9   :  { %6922 = vsyncadd [#allocation3], 4294967168 }
0x25ea   :  { %5393 = vsyncpa [#allocation3], 1 }

</bundles_post_ra>
